<compile_context>
chip_gen: v5e
topology: v5e:2x2
jax: 0.10.0
libtpu: 0.0.40
codegen_flags: <defaults>
</compile_context>

<pallas_src>
import functools

import jax
import jax.numpy as jnp
from jax.experimental import pallas as pl
from jax.experimental.pallas import tpu as pltpu


IN_RAW, IN_PAD = 28 * 28, 896     # 896 = 7 * 128 (lane-aligned K for fc1)
OUT_RAW, OUT_PAD = 10, 128        # lane-dense output slab
DIMS_PAD = [(IN_PAD, 512), (512, 512), (512, 256), (256, 128), (128, OUT_PAD)]


def _round_up(x, m):
    return (x + m - 1) // m * m


def mlp5_kernel(x_ref,
                w1_ref, b1_ref,
                w2_ref, b2_ref,
                w3_ref, b3_ref,
                w4_ref, b4_ref,
                w5_ref, b5_ref,
                o_ref):
    # bf16 MXU inputs, f32 accumulation; bias + ReLU in f32; re-cast to bf16
    # before the next matmul.
    h = jnp.dot(x_ref[...], w1_ref[...], preferred_element_type=jnp.float32)
    h = jnp.maximum(h + b1_ref[...], 0.0).astype(jnp.bfloat16)
    h = jnp.dot(h, w2_ref[...], preferred_element_type=jnp.float32)
    h = jnp.maximum(h + b2_ref[...], 0.0).astype(jnp.bfloat16)
    h = jnp.dot(h, w3_ref[...], preferred_element_type=jnp.float32)
    h = jnp.maximum(h + b3_ref[...], 0.0).astype(jnp.bfloat16)
    h = jnp.dot(h, w4_ref[...], preferred_element_type=jnp.float32)
    h = jnp.maximum(h + b4_ref[...], 0.0).astype(jnp.bfloat16)
    h = jnp.dot(h, w5_ref[...], preferred_element_type=jnp.float32)
    o_ref[...] = (h + b5_ref[...]).astype(o_ref.dtype)


@functools.partial(jax.jit, static_argnames=("tile_b",))
def mlp5_forward(x, params, *, tile_b=512):
    # x: any shape whose trailing dims flatten to 784 (mirrors x.view(-1, 784))
    x = x.reshape(-1, IN_RAW).astype(jnp.float32)
    n = x.shape[0]

    # Clamp the batch tile to the (8-aligned) batch so tiny inputs don't pay
    # for a huge padded tile, then pad the batch to a tile multiple.
    tile = max(8, min(tile_b, _round_up(n, 8)))
    tile = _round_up(tile, 8)
    n_pad = _round_up(n, tile)

    # Pad features 784 -> 896 (zero columns) and cast to bf16 for the MXU.
    x = jnp.pad(x, ((0, n_pad - n), (0, IN_PAD - IN_RAW))).astype(jnp.bfloat16)

    (w1, b1), (w2, b2), (w3, b3), (w4, b4), (w5, b5) = params

    # One-time padding + bf16 cast of the weights (biases stay f32).
    w1 = jnp.pad(w1, ((0, IN_PAD - IN_RAW), (0, 0))).astype(jnp.bfloat16)
    w2 = w2.astype(jnp.bfloat16)
    w3 = w3.astype(jnp.bfloat16)
    w4 = w4.astype(jnp.bfloat16)
    w5 = jnp.pad(w5, ((0, 0), (0, OUT_PAD - OUT_RAW))).astype(jnp.bfloat16)
    b5 = jnp.pad(b5, ((0, 0), (0, OUT_PAD - OUT_RAW)))

    def full_spec(shape):
        # Whole array resident in VMEM; block index never changes.
        return pl.BlockSpec(shape, lambda i: (0, 0))

    in_specs = [
        pl.BlockSpec((tile, IN_PAD), lambda i: (i, 0)),   # x tile
        full_spec(w1.shape), full_spec(b1.shape),
        full_spec(w2.shape), full_spec(b2.shape),
        full_spec(w3.shape), full_spec(b3.shape),
        full_spec(w4.shape), full_spec(b4.shape),
        full_spec(w5.shape), full_spec(b5.shape),
    ]
    out_spec = pl.BlockSpec((tile, OUT_PAD), lambda i: (i, 0))

    flops = 2 * n_pad * sum(k * m for k, m in DIMS_PAD)
    operands = (x, w1, b1, w2, b2, w3, b3, w4, b4, w5, b5)
    bytes_accessed = (sum(int(a.size) * a.dtype.itemsize for a in operands)
                      + n_pad * OUT_PAD * 4)

    out = pl.pallas_call(
        mlp5_kernel,
        out_shape=jax.ShapeDtypeStruct((n_pad, OUT_PAD), jnp.float32),
        grid_spec=pltpu.PrefetchScalarGridSpec(
            num_scalar_prefetch=0,
            grid=(n_pad // tile,),
            in_specs=in_specs,
            out_specs=out_spec,
        ),
        compiler_params=pltpu.CompilerParams(
            dimension_semantics=("parallel",),
            vmem_limit_bytes=32 * 1024 * 1024,
        ),
        cost_estimate=pl.CostEstimate(
            flops=flops, transcendentals=0, bytes_accessed=bytes_accessed),
    )(*operands)

    return out[:n, :OUT_RAW]


def init_params(key):
    """Deterministic init mimicking nn.Linear default U(-1/sqrt(fan_in), +)."""
    dims = [(IN_RAW, 512), (512, 512), (512, 256), (256, 128), (128, OUT_RAW)]
    params = []
    for (fan_in, fan_out) in dims:
        key, kw, kb = jax.random.split(key, 3)
        bound = 1.0 / jnp.sqrt(jnp.float32(fan_in))
        w = jax.random.uniform(kw, (fan_in, fan_out), jnp.float32,
                               minval=-bound, maxval=bound)
        b = jax.random.uniform(kb, (1, fan_out), jnp.float32,
                               minval=-bound, maxval=bound)
        params.append((w, b))
    return params


def reference_forward(x, params):
    """Pure-f32 reference (matches the PyTorch module numerics)."""
    x = x.reshape(-1, IN_RAW)
    (w1, b1), (w2, b2), (w3, b3), (w4, b4), (w5, b5) = params
    h = jnp.maximum(x @ w1 + b1, 0.0)
    h = jnp.maximum(h @ w2 + b2, 0.0)
    h = jnp.maximum(h @ w3 + b3, 0.0)
    h = jnp.maximum(h @ w4 + b4, 0.0)
    return h @ w5 + b5


def reference_forward_bf16(x, params):
    """Reference with the same bf16-in / f32-accumulate casting as the kernel."""
    h = x.reshape(-1, IN_RAW).astype(jnp.bfloat16)
    (w1, b1), (w2, b2), (w3, b3), (w4, b4), (w5, b5) = params

    def layer(h, w, b, relu):
        y = jnp.dot(h, w.astype(jnp.bfloat16),
                    preferred_element_type=jnp.float32) + b
        if relu:
            return jnp.maximum(y, 0.0).astype(jnp.bfloat16)
        return y

    h = layer(h, w1, b1, True)
    h = layer(h, w2, b2, True)
    h = layer(h, w3, b3, True)
    h = layer(h, w4, b4, True)
    return layer(h, w5, b5, False)


if __name__ == "__main__":
    key = jax.random.PRNGKey(0)
    key, kx = jax.random.split(key)

    batch = 16
    x = jax.random.normal(kx, (batch, 1, 28, 28), jnp.float32)  # NCHW-style
    params = init_params(key)

    out = mlp5_forward(x, params)          # default tile_b=512, clamped to 16
    out = jax.block_until_ready(out)
    assert out.shape == (batch, OUT_RAW)

    # Kernel vs. same-casting reference (tight), and vs. the f32 PyTorch-like
    # reference (loose tolerance because of bf16 matmul inputs).
    ref_bf16 = reference_forward_bf16(x, params)
    ref_f32 = reference_forward(x, params)
    assert jnp.allclose(out, ref_bf16, atol=2e-3, rtol=2e-3), \
        float(jnp.max(jnp.abs(out - ref_bf16)))
    assert jnp.allclose(out, ref_f32, atol=5e-2, rtol=5e-2), \
        float(jnp.max(jnp.abs(out - ref_f32)))

    print("KERNEL_OK")
</pallas_src>

<mosaic_0001>
module attributes {stable_mosaic.version = 11 : i64} {
  func.func @mlp5_kernel(%arg0: i32, %arg1: memref<16x896xbf16, #tpu.memory_space<vmem>>, %arg2: memref<896x512xbf16, #tpu.memory_space<vmem>>, %arg3: memref<1x512xf32, #tpu.memory_space<vmem>>, %arg4: memref<512x512xbf16, #tpu.memory_space<vmem>>, %arg5: memref<1x512xf32, #tpu.memory_space<vmem>>, %arg6: memref<512x256xbf16, #tpu.memory_space<vmem>>, %arg7: memref<1x256xf32, #tpu.memory_space<vmem>>, %arg8: memref<256x128xbf16, #tpu.memory_space<vmem>>, %arg9: memref<1x128xf32, #tpu.memory_space<vmem>>, %arg10: memref<128x128xbf16, #tpu.memory_space<vmem>>, %arg11: memref<1x128xf32, #tpu.memory_space<vmem>>, %arg12: memref<16x128xf32, #tpu.memory_space<vmem>>) attributes {dimension_semantics = [#tpu.dimension_semantics<parallel>], iteration_bounds = array<i64: 1>, scalar_prefetch = 0 : i64, scratch_operands = 0 : i64, tpu.core_type = #tpu.core_type<tc>, window_params = [{transform_indices = @transform_0, window_bounds = array<i64: 16, 896>}, {pipeline_mode = #tpu.pipeline_mode<synchronous>, transform_indices = @transform_1, window_bounds = array<i64: 896, 512>}, {pipeline_mode = #tpu.pipeline_mode<synchronous>, transform_indices = @transform_2, window_bounds = array<i64: 1, 512>}, {pipeline_mode = #tpu.pipeline_mode<synchronous>, transform_indices = @transform_3, window_bounds = array<i64: 512, 512>}, {pipeline_mode = #tpu.pipeline_mode<synchronous>, transform_indices = @transform_4, window_bounds = array<i64: 1, 512>}, {pipeline_mode = #tpu.pipeline_mode<synchronous>, transform_indices = @transform_5, window_bounds = array<i64: 512, 256>}, {pipeline_mode = #tpu.pipeline_mode<synchronous>, transform_indices = @transform_6, window_bounds = array<i64: 1, 256>}, {pipeline_mode = #tpu.pipeline_mode<synchronous>, transform_indices = @transform_7, window_bounds = array<i64: 256, 128>}, {pipeline_mode = #tpu.pipeline_mode<synchronous>, transform_indices = @transform_8, window_bounds = array<i64: 1, 128>}, {pipeline_mode = #tpu.pipeline_mode<synchronous>, transform_indices = @transform_9, window_bounds = array<i64: 128, 128>}, {pipeline_mode = #tpu.pipeline_mode<synchronous>, transform_indices = @transform_10, window_bounds = array<i64: 1, 128>}, {transform_indices = @transform_11, window_bounds = array<i64: 16, 128>}]} {
    %c0 = arith.constant 0 : index
    %c0_0 = arith.constant 0 : index
    %0 = vector.load %arg1[%c0, %c0_0] : memref<16x896xbf16, #tpu.memory_space<vmem>>, vector<16x896xbf16>
    %c0_1 = arith.constant 0 : index
    %c0_2 = arith.constant 0 : index
    %1 = vector.load %arg2[%c0_1, %c0_2] : memref<896x512xbf16, #tpu.memory_space<vmem>>, vector<896x512xbf16>
    %cst = arith.constant dense<0.000000e+00> : vector<16x512xf32>
    %2 = tpu.matmul %0, %1, %cst {dimension_numbers = #tpu.dot_dimension_numbers<[1], [0], [0], [1], [0, 0, 1, 1], [], []>} : vector<16x896xbf16>, vector<896x512xbf16>, vector<16x512xf32> -> vector<16x512xf32>
    %c0_3 = arith.constant 0 : index
    %c0_4 = arith.constant 0 : index
    %3 = vector.load %arg3[%c0_3, %c0_4] : memref<1x512xf32, #tpu.memory_space<vmem>>, vector<1x512xf32>
    %4 = vector.broadcast %3 : vector<1x512xf32> to vector<16x512xf32>
    %5 = arith.addf %2, %4 : vector<16x512xf32>
    %cst_5 = arith.constant 0.000000e+00 : f32
    %6 = vector.broadcast %cst_5 : f32 to vector<16x512xf32>
    %7 = arith.maximumf %5, %6 : vector<16x512xf32>
    %8 = arith.truncf %7 : vector<16x512xf32> to vector<16x512xbf16>
    %c0_6 = arith.constant 0 : index
    %c0_7 = arith.constant 0 : index
    %9 = vector.load %arg4[%c0_6, %c0_7] : memref<512x512xbf16, #tpu.memory_space<vmem>>, vector<512x512xbf16>
    %cst_8 = arith.constant dense<0.000000e+00> : vector<16x512xf32>
    %10 = tpu.matmul %8, %9, %cst_8 {dimension_numbers = #tpu.dot_dimension_numbers<[1], [0], [0], [1], [0, 0, 1, 1], [], []>} : vector<16x512xbf16>, vector<512x512xbf16>, vector<16x512xf32> -> vector<16x512xf32>
    %c0_9 = arith.constant 0 : index
    %c0_10 = arith.constant 0 : index
    %11 = vector.load %arg5[%c0_9, %c0_10] : memref<1x512xf32, #tpu.memory_space<vmem>>, vector<1x512xf32>
    %12 = vector.broadcast %11 : vector<1x512xf32> to vector<16x512xf32>
    %13 = arith.addf %10, %12 : vector<16x512xf32>
    %cst_11 = arith.constant 0.000000e+00 : f32
    %14 = vector.broadcast %cst_11 : f32 to vector<16x512xf32>
    %15 = arith.maximumf %13, %14 : vector<16x512xf32>
    %16 = arith.truncf %15 : vector<16x512xf32> to vector<16x512xbf16>
    %c0_12 = arith.constant 0 : index
    %c0_13 = arith.constant 0 : index
    %17 = vector.load %arg6[%c0_12, %c0_13] : memref<512x256xbf16, #tpu.memory_space<vmem>>, vector<512x256xbf16>
    %cst_14 = arith.constant dense<0.000000e+00> : vector<16x256xf32>
    %18 = tpu.matmul %16, %17, %cst_14 {dimension_numbers = #tpu.dot_dimension_numbers<[1], [0], [0], [1], [0, 0, 1, 1], [], []>} : vector<16x512xbf16>, vector<512x256xbf16>, vector<16x256xf32> -> vector<16x256xf32>
    %c0_15 = arith.constant 0 : index
    %c0_16 = arith.constant 0 : index
    %19 = vector.load %arg7[%c0_15, %c0_16] : memref<1x256xf32, #tpu.memory_space<vmem>>, vector<1x256xf32>
    %20 = vector.broadcast %19 : vector<1x256xf32> to vector<16x256xf32>
    %21 = arith.addf %18, %20 : vector<16x256xf32>
    %cst_17 = arith.constant 0.000000e+00 : f32
    %22 = vector.broadcast %cst_17 : f32 to vector<16x256xf32>
    %23 = arith.maximumf %21, %22 : vector<16x256xf32>
    %24 = arith.truncf %23 : vector<16x256xf32> to vector<16x256xbf16>
    %c0_18 = arith.constant 0 : index
    %c0_19 = arith.constant 0 : index
    %25 = vector.load %arg8[%c0_18, %c0_19] : memref<256x128xbf16, #tpu.memory_space<vmem>>, vector<256x128xbf16>
    %cst_20 = arith.constant dense<0.000000e+00> : vector<16x128xf32>
    %26 = tpu.matmul %24, %25, %cst_20 {dimension_numbers = #tpu.dot_dimension_numbers<[1], [0], [0], [1], [0, 0, 1, 1], [], []>} : vector<16x256xbf16>, vector<256x128xbf16>, vector<16x128xf32> -> vector<16x128xf32>
    %c0_21 = arith.constant 0 : index
    %c0_22 = arith.constant 0 : index
    %27 = vector.load %arg9[%c0_21, %c0_22] : memref<1x128xf32, #tpu.memory_space<vmem>>, vector<1x128xf32>
    %28 = vector.broadcast %27 : vector<1x128xf32> to vector<16x128xf32>
    %29 = arith.addf %26, %28 : vector<16x128xf32>
    %cst_23 = arith.constant 0.000000e+00 : f32
    %30 = vector.broadcast %cst_23 : f32 to vector<16x128xf32>
    %31 = arith.maximumf %29, %30 : vector<16x128xf32>
    %32 = arith.truncf %31 : vector<16x128xf32> to vector<16x128xbf16>
    %c0_24 = arith.constant 0 : index
    %c0_25 = arith.constant 0 : index
    %33 = vector.load %arg10[%c0_24, %c0_25] : memref<128x128xbf16, #tpu.memory_space<vmem>>, vector<128x128xbf16>
    %cst_26 = arith.constant dense<0.000000e+00> : vector<16x128xf32>
    %34 = tpu.matmul %32, %33, %cst_26 {dimension_numbers = #tpu.dot_dimension_numbers<[1], [0], [0], [1], [0, 0, 1, 1], [], []>} : vector<16x128xbf16>, vector<128x128xbf16>, vector<16x128xf32> -> vector<16x128xf32>
    %c0_27 = arith.constant 0 : index
    %c0_28 = arith.constant 0 : index
    %35 = vector.load %arg11[%c0_27, %c0_28] : memref<1x128xf32, #tpu.memory_space<vmem>>, vector<1x128xf32>
    %36 = vector.broadcast %35 : vector<1x128xf32> to vector<16x128xf32>
    %37 = arith.addf %34, %36 : vector<16x128xf32>
    %c0_29 = arith.constant 0 : index
    %c0_30 = arith.constant 0 : index
    %38 = vector.load %arg12[%c0_29, %c0_30] : memref<16x128xf32, #tpu.memory_space<vmem>>, vector<16x128xf32>
    tpu.vector_store %arg12[%c0_29, %c0_30], %37 {strides = array<i32>} : memref<16x128xf32, #tpu.memory_space<vmem>>, vector<16x128xf32>,
    return
  }
  func.func @transform_0(%arg0: i32) -> (i32, i32) {
    %c0_i32 = arith.constant 0 : i32
    %c0_i32_0 = arith.constant 0 : i32
    return %arg0, %c0_i32 : i32, i32
  }
  func.func @transform_1(%arg0: i32) -> (i32, i32) {
    %c0_i32 = arith.constant 0 : i32
    %c0_i32_0 = arith.constant 0 : i32
    %c0_i32_1 = arith.constant 0 : i32
    return %c0_i32, %c0_i32_0 : i32, i32
  }
  func.func @transform_2(%arg0: i32) -> (i32, i32) {
    %c0_i32 = arith.constant 0 : i32
    %c0_i32_0 = arith.constant 0 : i32
    %c0_i32_1 = arith.constant 0 : i32
    return %c0_i32, %c0_i32_0 : i32, i32
  }
  func.func @transform_3(%arg0: i32) -> (i32, i32) {
    %c0_i32 = arith.constant 0 : i32
    %c0_i32_0 = arith.constant 0 : i32
    %c0_i32_1 = arith.constant 0 : i32
    return %c0_i32, %c0_i32_0 : i32, i32
  }
  func.func @transform_4(%arg0: i32) -> (i32, i32) {
    %c0_i32 = arith.constant 0 : i32
    %c0_i32_0 = arith.constant 0 : i32
    %c0_i32_1 = arith.constant 0 : i32
    return %c0_i32, %c0_i32_0 : i32, i32
  }
  func.func @transform_5(%arg0: i32) -> (i32, i32) {
    %c0_i32 = arith.constant 0 : i32
    %c0_i32_0 = arith.constant 0 : i32
    %c0_i32_1 = arith.constant 0 : i32
    return %c0_i32, %c0_i32_0 : i32, i32
  }
  func.func @transform_6(%arg0: i32) -> (i32, i32) {
    %c0_i32 = arith.constant 0 : i32
    %c0_i32_0 = arith.constant 0 : i32
    %c0_i32_1 = arith.constant 0 : i32
    return %c0_i32, %c0_i32_0 : i32, i32
  }
  func.func @transform_7(%arg0: i32) -> (i32, i32) {
    %c0_i32 = arith.constant 0 : i32
    %c0_i32_0 = arith.constant 0 : i32
    %c0_i32_1 = arith.constant 0 : i32
    return %c0_i32, %c0_i32_0 : i32, i32
  }
  func.func @transform_8(%arg0: i32) -> (i32, i32) {
    %c0_i32 = arith.constant 0 : i32
    %c0_i32_0 = arith.constant 0 : i32
    %c0_i32_1 = arith.constant 0 : i32
    return %c0_i32, %c0_i32_0 : i32, i32
  }
  func.func @transform_9(%arg0: i32) -> (i32, i32) {
    %c0_i32 = arith.constant 0 : i32
    %c0_i32_0 = arith.constant 0 : i32
    %c0_i32_1 = arith.constant 0 : i32
    return %c0_i32, %c0_i32_0 : i32, i32
  }
  func.func @transform_10(%arg0: i32) -> (i32, i32) {
    %c0_i32 = arith.constant 0 : i32
    %c0_i32_0 = arith.constant 0 : i32
    %c0_i32_1 = arith.constant 0 : i32
    return %c0_i32, %c0_i32_0 : i32, i32
  }
  func.func @transform_11(%arg0: i32) -> (i32, i32) {
    %c0_i32 = arith.constant 0 : i32
    %c0_i32_0 = arith.constant 0 : i32
    return %arg0, %c0_i32 : i32, i32
  }
}

</mosaic_0001>

<bundles_post_ra>
// kernel: mlp5_forward.1
= control target key start
LH: loop header
LB: loop body
LE: loop exit
PB: predicated region body
PF: predicated region fallthrough
CT: control target
= control target key end

     0   :  { %s8697_s0 = inlined_call_operand.vmem [shape: bf16[16,896], index: 0, kind: input, shape index: {}]   ;;  %s8698_s1 = inlined_call_operand.vmem [shape: bf16[896,512], index: 1, kind: input, shape index: {}]   ;;  %s8699_s2 = inlined_call_operand.vmem [shape: f32[1,512], index: 2, kind: input, shape index: {}]   ;;  %s8700_s3 = inlined_call_operand.vmem [shape: bf16[512,512], index: 3, kind: input, shape index: {}]   ;;  %s8701_s4 = inlined_call_operand.vmem [shape: f32[1,512], index: 4, kind: input, shape index: {}]   ;;  %s8702_s5 = inlined_call_operand.vmem [shape: bf16[512,256], index: 5, kind: input, shape index: {}]   ;;  %s8703_s6 = inlined_call_operand.vmem [shape: f32[1,256], index: 6, kind: input, shape index: {}]   ;;  %s8704_s7 = inlined_call_operand.vmem [shape: bf16[256,128], index: 7, kind: input, shape index: {}]   ;;  %s8705_s8 = inlined_call_operand.vmem [shape: f32[1,128], index: 8, kind: input, shape index: {}]   ;;  %s8706_s9 = inlined_call_operand.vmem [shape: bf16[128,128], index: 9, kind: input, shape index: {}]   ;;  %s8707_s10 = inlined_call_operand.vmem [shape: f32[1,128], index: 10, kind: input, shape index: {}]   ;;  %s8708_s11 = inlined_call_operand.hbm [shape: f32[16,128], index: 11, kind: output, shape index: {}]  }
   0x1   :  { %v3770_v0 = vld [vmem:[%s8698_s1 + $0xe0] sm:$0xf]  ;;  %v5453_v1 = vld [vmem:[%s8698_s1 + $0xec] sm:$0xf0] }
   0x2   :  { %v3898_v2 = vld [vmem:[%s8698_s1 + $0x1e0] sm:$0xf]  ;;  %v3771_v3 = vor.u32 %v5453_v1, %v3770_v0  ;;  %v5485_v4 = vld [vmem:[%s8698_s1 + $0x1ec] sm:$0xf0] }
   0x3   :  { %v4026_v5 = vld [vmem:[%s8698_s1 + $0x2e0] sm:$0xf]  ;;  %v5517_v6 = vld [vmem:[%s8698_s1 + $0x2ec] sm:$0xf0]  ;;  %v3899_v7 = vor.u32 %v5485_v4, %v3898_v2 }
   0x4   :  { %v4027_v8 = vor.u32 %v5517_v6, %v4026_v5  ;;  %v4154_v9 = vld [vmem:[%s8698_s1 + $0x3e0] sm:$0xf]  ;;  %v5549_v10 = vld [vmem:[%s8698_s1 + $0x3ec] sm:$0xf0]  ;;  %1437 = vmatpush.bf16.msra.mxu0 %v3771_v3 }
   0x5   :  { %v3754_v11 = vld [vmem:[%s8698_s1 + $0xc0] sm:$0xf]  ;;  %v4155_v12 = vor.u32 %v5549_v10, %v4154_v9  ;;  %v5449_v13 = vld [vmem:[%s8698_s1 + $0xcc] sm:$0xf0]  ;;  %1451 = vmatpush.bf16.msra.mxu1 %v3899_v7 }
   0x6   :  { %v3882_v14 = vld [vmem:[%s8698_s1 + $0x1c0] sm:$0xf]  ;;  %v5481_v15 = vld [vmem:[%s8698_s1 + $0x1cc] sm:$0xf0]  ;;  %1465 = vmatpush.bf16.msra.mxu2 %v4027_v8  ;;  %v3755_v16 = vor.u32 %v5449_v13, %v3754_v11 }
   0x7   :  { %v3883_v17 = vor.u32 %v5481_v15, %v3882_v14  ;;  %v4010_v18 = vld [vmem:[%s8698_s1 + $0x2c0] sm:$0xf]  ;;  %v5513_v19 = vld [vmem:[%s8698_s1 + $0x2cc] sm:$0xf0]  ;;  %1479 = vmatpush.bf16.msra.mxu3 %v4155_v12 }
   0x8   :  { %v4138_v20 = vld [vmem:[%s8698_s1 + $0x3c0] sm:$0xf]  ;;  %v4011_v21 = vor.u32 %v5513_v19, %v4010_v18  ;;  %v5545_v22 = vld [vmem:[%s8698_s1 + $0x3cc] sm:$0xf0]  ;;  %1438 = vmatpush.bf16.msra.mxu0 %v3755_v16 }
   0x9   :  { %v3738_v23 = vld [vmem:[%s8698_s1 + $0xa0] sm:$0xf]  ;;  %v5445_v24 = vld [vmem:[%s8698_s1 + $0xac] sm:$0xf0]  ;;  %v4139_v25 = vor.u32 %v5545_v22, %v4138_v20  ;;  %1452 = vmatpush.bf16.msra.mxu1 %v3883_v17 }
   0xa   :  { %v3866_v26 = vld [vmem:[%s8698_s1 + $0x1a0] sm:$0xf]  ;;  %v5477_v27 = vld [vmem:[%s8698_s1 + $0x1ac] sm:$0xf0]  ;;  %v3739_v29 = vor.u32 %v5445_v24, %v3738_v23  ;;  %1466 = vmatpush.bf16.msra.mxu2 %v4011_v21 }
   0xb   :  { %v3994_v28 = vld [vmem:[%s8698_s1 + $0x2a0] sm:$0xf]  ;;  %v5509_v30 = vld [vmem:[%s8698_s1 + $0x2ac] sm:$0xf0]  ;;  %v3867_v33 = vor.u32 %v5477_v27, %v3866_v26  ;;  %1480 = vmatpush.bf16.msra.mxu3 %v4139_v25 }
   0xc   :  { %v4122_v31 = vld [vmem:[%s8698_s1 + $0x3a0] sm:$0xf]  ;;  %v5541_v32 = vld [vmem:[%s8698_s1 + $0x3ac] sm:$0xf0]  ;;  %v3995_v34 = vor.u32 %v5509_v30, %v3994_v28  ;;  %1439 = vmatpush.bf16.msra.mxu0 %v3739_v29 }
   0xd   :  { %v3722_v35 = vld [vmem:[%s8698_s1 + $0x80] sm:$0xf]  ;;  %v5441_v36 = vld [vmem:[%s8698_s1 + $0x8c] sm:$0xf0]  ;;  %v4123_v38 = vor.u32 %v5541_v32, %v4122_v31  ;;  %1453 = vmatpush.bf16.msra.mxu1 %v3867_v33 }
   0xe   :  { %v3850_v37 = vld [vmem:[%s8698_s1 + $0x180] sm:$0xf]  ;;  %v5473_v39 = vld [vmem:[%s8698_s1 + $0x18c] sm:$0xf0]  ;;  %v3723_v44 = vor.u32 %v5441_v36, %v3722_v35  ;;  %1467 = vmatpush.bf16.msra.mxu2 %v3995_v34 }
   0xf   :  { %v3978_v40 = vld [vmem:[%s8698_s1 + $0x280] sm:$0xf]  ;;  %v5505_v41 = vld [vmem:[%s8698_s1 + $0x28c] sm:$0xf0]  ;;  %v3851_v45 = vor.u32 %v5473_v39, %v3850_v37  ;;  %1481 = vmatpush.bf16.msra.mxu3 %v4123_v38  ;;  %v5451_v37 = vld [vmem:[%s8698_s1 + $0xe4] sm:$0xf] }
  0x10   :  { %v4106_v42 = vld [vmem:[%s8698_s1 + $0x380] sm:$0xf]  ;;  %v5537_v43 = vld [vmem:[%s8698_s1 + $0x38c] sm:$0xf0]  ;;  %v3979_v46 = vor.u32 %v5505_v41, %v3978_v40  ;;  %1440 = vmatpush.bf16.msra.mxu0 %v3723_v44  ;;  %v3772_v38 = vld [vmem:[%s8698_s1 + $0xf0] sm:$0xf0] }
  0x11   :  { %v3706_v47 = vld [vmem:[%s8698_s1 + $0x60] sm:$0xf]  ;;  %v5437_v48 = vld [vmem:[%s8698_s1 + $0x6c] sm:$0xf0]  ;;  %v4107_v50 = vor.u32 %v5537_v43, %v4106_v42  ;;  %1454 = vmatpush.bf16.msra.mxu1 %v3851_v45 }
  0x12   :  { %v3834_v49 = vld [vmem:[%s8698_s1 + $0x160] sm:$0xf]  ;;  %v5469_v51 = vld [vmem:[%s8698_s1 + $0x16c] sm:$0xf0]  ;;  %v3707_v56 = vor.u32 %v5437_v48, %v3706_v47  ;;  %1468 = vmatpush.bf16.msra.mxu2 %v3979_v46  ;;  %v3775_v48 = vor.u32 %v5451_v37, %v3772_v38 }
  0x13   :  { %v3962_v52 = vld [vmem:[%s8698_s1 + $0x260] sm:$0xf]  ;;  %v5501_v53 = vld [vmem:[%s8698_s1 + $0x26c] sm:$0xf0]  ;;  %v3835_v57 = vor.u32 %v5469_v51, %v3834_v49  ;;  %1482 = vmatpush.bf16.msra.mxu3 %v4107_v50  ;;  %v5447_v50 = vld [vmem:[%s8698_s1 + $0xc4] sm:$0xf] }
  0x14   :  { %v4090_v54 = vld [vmem:[%s8698_s1 + $0x360] sm:$0xf]  ;;  %v5533_v55 = vld [vmem:[%s8698_s1 + $0x36c] sm:$0xf0]  ;;  %v3963_v58 = vor.u32 %v5501_v53, %v3962_v52  ;;  %1441 = vmatpush.bf16.msra.mxu0 %v3707_v56  ;;  %v3756_v51 = vld [vmem:[%s8698_s1 + $0xd0] sm:$0xf0] }
  0x15   :  { %v3690_v59 = vld [vmem:[%s8698_s1 + $0x40] sm:$0xf]  ;;  %v5433_v60 = vld [vmem:[%s8698_s1 + $0x4c] sm:$0xf0]  ;;  %v4091_v62 = vor.u32 %v5533_v55, %v4090_v54  ;;  %1455 = vmatpush.bf16.msra.mxu1 %v3835_v57  ;;  %v5419_v53 = vld [vmem:[%s8697_s0 + $0x18] sm:$0xf0] }
  0x16   :  { %v3818_v61 = vld [vmem:[%s8698_s1 + $0x140] sm:$0xf]  ;;  %v5465_v63 = vld [vmem:[%s8698_s1 + $0x14c] sm:$0xf0]  ;;  %v3691_v4 = vor.u32 %v5433_v60, %v3690_v59  ;;  %1469 = vmatpush.bf16.msra.mxu2 %v3963_v58  ;;  %v3638_v54 = vld [vmem:[%s8697_s0 + $0x8] sm:$0xf] }
  0x17   :  { %v3946_v0 = vld [vmem:[%s8698_s1 + $0x240] sm:$0xf]  ;;  %v5497_v1 = vld [vmem:[%s8698_s1 + $0x24c] sm:$0xf0]  ;;  %v3819_v5 = vor.u32 %v5465_v63, %v3818_v61  ;;  %1483 = vmatpush.bf16.msra.mxu3 %v4091_v62  ;;  %v5420_v58 = vld [vmem:[%s8697_s0 + $0x20] sm:$0xf0] }
  0x18   :  { %v4074_v2 = vld [vmem:[%s8698_s1 + $0x340] sm:$0xf]  ;;  %v5529_v3 = vld [vmem:[%s8698_s1 + $0x34c] sm:$0xf0]  ;;  %v3947_v6 = vor.u32 %v5497_v1, %v3946_v0  ;;  %1442 = vmatpush.bf16.msra.mxu0 %v3691_v4  ;;  %v6224_v0 = vor.u32 %v5420_v58, %v3638_v54  ;;  %v3759_v1 = vor.u32 %v5447_v50, %v3756_v51  ;;  %v5443_v4 = vld [vmem:[%s8698_s1 + $0xa4] sm:$0xf] }
  0x19   :  { %v3674_v7 = vld [vmem:[%s8698_s1 + $0x20] sm:$0xf]  ;;  %v5429_v8 = vld [vmem:[%s8698_s1 + $0x2c] sm:$0xf0]  ;;  %v4075_v10 = vor.u32 %v5529_v3, %v4074_v2  ;;  %1456 = vmatpush.bf16.msra.mxu1 %v3819_v5  ;;  %v3740_v5 = vld [vmem:[%s8698_s1 + $0xb0] sm:$0xf0] }
  0x1a   :  { %v3802_v9 = vld [vmem:[%s8698_s1 + $0x120] sm:$0xf]  ;;  %v5461_v11 = vld [vmem:[%s8698_s1 + $0x12c] sm:$0xf0]  ;;  %v3675_v16 = vor.u32 %v5429_v8, %v3674_v7  ;;  %1470 = vmatpush.bf16.msra.mxu2 %v3947_v6  ;;  %v5416_v6 = vld [vmem:[%s8697_s0 + $0x4] sm:$0xf] }
  0x1b   :  { %v3930_v12 = vld [vmem:[%s8698_s1 + $0x220] sm:$0xf]  ;;  %v5493_v13 = vld [vmem:[%s8698_s1 + $0x22c] sm:$0xf0]  ;;  %v3803_v19 = vor.u32 %v5461_v11, %v3802_v9  ;;  %1484 = vmatpush.bf16.msra.mxu3 %v4075_v10 }
  0x1c   :  { %v4058_v14 = vld [vmem:[%s8698_s1 + $0x320] sm:$0xf]  ;;  %v5525_v15 = vld [vmem:[%s8698_s1 + $0x32c] sm:$0xf0]  ;;  %v3931_v20 = vor.u32 %v5493_v13, %v3930_v12  ;;  %1443 = vmatpush.bf16.msra.mxu0 %v3675_v16 }
  0x1d   :  { %v3658_v17 = vld [vmem:[%s8698_s1] sm:$0xf]  ;;  %v5425_v18 = vld [vmem:[%s8698_s1 + $0xc] sm:$0xf0]  ;;  %v4059_v24 = vor.u32 %v5525_v15, %v4058_v14  ;;  %1457 = vmatpush.bf16.msra.mxu1 %v3803_v19  ;;  %v5417_v19 = vld [vmem:[%s8697_s0 + $0xc] sm:$0xf] }
  0x1e   :  { %v3786_v21 = vld [vmem:[%s8698_s1 + $0x100] sm:$0xf]  ;;  %v5457_v22 = vld [vmem:[%s8698_s1 + $0x10c] sm:$0xf0]  ;;  %v3659_v31 = vor.u32 %v5425_v18, %v3658_v17  ;;  %1471 = vmatpush.bf16.msra.mxu2 %v3931_v20  ;;  %v3743_v17 = vor.u32 %v5443_v4, %v3740_v5  ;;  %v3640_v20 = vld [vmem:[%s8697_s0 + $0x24] sm:$0xf0] }
  0x1f   :  { %v3914_v23 = vld [vmem:[%s8698_s1 + $0x200] sm:$0xf]  ;;  %v5489_v25 = vld [vmem:[%s8698_s1 + $0x20c] sm:$0xf0]  ;;  %v3787_v35 = vor.u32 %v5457_v22, %v3786_v21  ;;  %1485 = vmatpush.bf16.msra.mxu3 %v4059_v24  ;;  %v5439_v21 = vld [vmem:[%s8698_s1 + $0x84] sm:$0xf] }
  0x20   :  { %v4042_v26 = vld [vmem:[%s8698_s1 + $0x300] sm:$0xf]  ;;  %v5521_v27 = vld [vmem:[%s8698_s1 + $0x30c] sm:$0xf0]  ;;  %v3915_v36 = vor.u32 %v5489_v25, %v3914_v23  ;;  %1444 = vmatpush.bf16.msra.mxu0 %v3659_v31  ;;  %v3724_v22 = vld [vmem:[%s8698_s1 + $0x90] sm:$0xf0]  ;;  %v6279_v23 = vor.u32 %v5417_v19, %v3640_v20 }
  0x21   :  { %v4282_v28 = vld [vmem:[%s8698_s1 + $0x4e0] sm:$0xf]  ;;  %v5581_v29 = vld [vmem:[%s8698_s1 + $0x4ec] sm:$0xf0]  ;;  %v4043_v39 = vor.u32 %v5521_v27, %v4042_v26  ;;  %1458 = vmatpush.bf16.msra.mxu1 %v3787_v35  ;;  %v3708_v35 = vld [vmem:[%s8698_s1 + $0x70] sm:$0xf0] }
  0x22   :  { %v4410_v30 = vld [vmem:[%s8698_s1 + $0x5e0] sm:$0xf]  ;;  %v5613_v32 = vld [vmem:[%s8698_s1 + $0x5ec] sm:$0xf0]  ;;  %v4283_v40 = vor.u32 %v5581_v29, %v4282_v28  ;;  %1472 = vmatpush.bf16.msra.mxu2 %v3915_v36  ;;  %v4284_v19 = vld [vmem:[%s8698_s1 + $0x4f0] sm:$0xf0] }
  0x23   :  { %v4538_v33 = vld [vmem:[%s8698_s1 + $0x6e0] sm:$0xf]  ;;  %v5645_v34 = vld [vmem:[%s8698_s1 + $0x6ec] sm:$0xf0]  ;;  %v4411_v43 = vor.u32 %v5613_v32, %v4410_v30  ;;  %1486 = vmatpush.bf16.msra.mxu3 %v4043_v39  ;;  %v3727_v30 = vor.u32 %v5439_v21, %v3724_v22 }
  0x24   :  { %v4266_v41 = vld [vmem:[%s8698_s1 + $0x4c0] sm:$0xf]  ;;  %v5577_v42 = vld [vmem:[%s8698_s1 + $0x4cc] sm:$0xf0]  ;;  %v4539_v44 = vor.u32 %v5645_v34, %v4538_v33  ;;  %1493 = vmatpush.bf16.msrb.mxu0 %v4283_v40  ;;  %v5435_v34 = vld [vmem:[%s8698_s1 + $0x64] sm:$0xf] }
  0x25   :  { %v4394_v45 = vld [vmem:[%s8698_s1 + $0x5c0] sm:$0xf]  ;;  %v5609_v46 = vld [vmem:[%s8698_s1 + $0x5cc] sm:$0xf0]  ;;  %v4267_v55 = vor.u32 %v5577_v42, %v4266_v41  ;;  %1507 = vmatpush.bf16.msrb.mxu1 %v4411_v43  ;;  %1473 = vmatmul.bf16.vlgmr.msra.gmra.mxu2 %v6224_v0  ;;  %v3711_v42 = vor.u32 %v5435_v34, %v3708_v35  ;;  %v3884_v34 = vld [vmem:[%s8698_s1 + $0x1d0] sm:$0xf0] }
  0x26   :  { %v4522_v47 = vld [vmem:[%s8698_s1 + $0x6c0] sm:$0xf]  ;;  %v5641_v49 = vld [vmem:[%s8698_s1 + $0x6cc] sm:$0xf0]  ;;  %1521 = vmatpush.bf16.msrb.mxu2 %v4539_v44  ;;  %v4395_v59 = vor.u32 %v5609_v46, %v4394_v45  ;;  %1487 = vmatmul.bf16.vlgmr.msra.gmra.mxu3 %v6279_v23  ;;  %v5431_v46 = vld [vmem:[%s8698_s1 + $0x44] sm:$0xf] }
  0x27   :  { %v3630_v52 = vld [vmem:[%s8697_s0] sm:$0xf]  ;;  %v4523_v60 = vor.u32 %v5641_v49, %v4522_v47  ;;  %v5573_v61 = vld [vmem:[%s8698_s1 + $0x4ac] sm:$0xf0]  ;;  %1535 = vmatpush.bf16.msrb.mxu3 %v3775_v48  ;;  %v3692_v47 = vld [vmem:[%s8698_s1 + $0x50] sm:$0xf0] }
  0x28   :  { %v4250_v56 = vld [vmem:[%s8698_s1 + $0x4a0] sm:$0xf]  ;;  %v6210_v57 = vor.u32 %v5419_v53, %v3630_v52  ;;  %v5605_v63 = vld [vmem:[%s8698_s1 + $0x5ac] sm:$0xf0]  ;;  %1494 = vmatpush.bf16.msrb.mxu0 %v4267_v55  ;;  %v3695_v54 = vor.u32 %v5431_v46, %v3692_v47  ;;  %v5511_v35 = vld [vmem:[%s8698_s1 + $0x2c4] sm:$0xf] }
  0x29   :  { %v4378_v62 = vld [vmem:[%s8698_s1 + $0x5a0] sm:$0xf]  ;;  %v5637_v3 = vld [vmem:[%s8698_s1 + $0x6ac] sm:$0xf0]  ;;  %v4251_v8 = vor.u32 %v5573_v61, %v4250_v56  ;;  %1508 = vmatpush.bf16.msrb.mxu1 %v4395_v59  ;;  %v5427_v59 = vld [vmem:[%s8698_s1 + $0x24] sm:$0xf] }
  0x2a   :  { %v4506_v2 = vld [vmem:[%s8698_s1 + $0x6a0] sm:$0xf]  ;;  %1445 = vmatmul.bf16.vlgmr.msra.gmra.mxu0 %v6210_v57  ;;  %v5569_v10 = vld [vmem:[%s8698_s1 + $0x48c] sm:$0xf0]  ;;  %1522 = vmatpush.bf16.msrb.mxu2 %v4523_v60  ;;  %v4379_v12 = vor.u32 %v5605_v63, %v4378_v62  ;;  %v3676_v60 = vld [vmem:[%s8698_s1 + $0x30] sm:$0xf0] }
  0x2b   :  { %v3632_v7 = vld [vmem:[%s8697_s0 + $0x1c] sm:$0xf0]  ;;  %v4507_v13 = vor.u32 %v5637_v3, %v4506_v2  ;;  %v5601_v15 = vld [vmem:[%s8698_s1 + $0x58c] sm:$0xf0]  ;;  %1536 = vmatpush.bf16.msrb.mxu3 %v3759_v1 }
  0x2c   :  { %v4234_v9 = vld [vmem:[%s8698_s1 + $0x480] sm:$0xf]  ;;  %v6252_v11 = vor.u32 %v5416_v6, %v3632_v7  ;;  %v5633_v18 = vld [vmem:[%s8698_s1 + $0x68c] sm:$0xf0]  ;;  %1495 = vmatpush.bf16.msrb.mxu0 %v4251_v8  ;;  %v5423_v7 = vld [vmem:[%s8698_s1 + $0x4] sm:$0xf]  ;;  %v3679_v8 = vor.u32 %v5427_v59, %v3676_v60 }
  0x2d   :  { %v4362_v14 = vld [vmem:[%s8698_s1 + $0x580] sm:$0xf]  ;;  %v4235_v24 = vor.u32 %v5569_v10, %v4234_v9  ;;  %1509 = vmatpush.bf16.msrb.mxu1 %v4379_v12  ;;  %v5565_v28 = vld [vmem:[%s8698_s1 + $0x46c] sm:$0xf0]  ;;  %v3660_v9 = vld [vmem:[%s8698_s1 + $0x10] sm:$0xf0] }
  0x2e   :  { %v4490_v16 = vld [vmem:[%s8698_s1 + $0x680] sm:$0xf]  ;;  %1459 = vmatmul.bf16.vlgmr.msra.gmra.mxu1 %v6252_v11  ;;  %1523 = vmatpush.bf16.msrb.mxu2 %v4507_v13  ;;  %v4363_v25 = vor.u32 %v5601_v15, %v4362_v14  ;;  %v5597_v31 = vld [vmem:[%s8698_s1 + $0x56c] sm:$0xf0]  ;;  %v5483_v10 = vld [vmem:[%s8698_s1 + $0x1e4] sm:$0xf] }
  0x2f   :  { %v4491_v26 = vor.u32 %v5633_v18, %v4490_v16  ;;  %v4218_v27 = vld [vmem:[%s8698_s1 + $0x460] sm:$0xf]  ;;  %1537 = vmatpush.bf16.msrb.mxu3 %v3743_v17  ;;  %v5629_v33 = vld [vmem:[%s8698_s1 + $0x66c] sm:$0xf0]  ;;  %v3900_v12 = vld [vmem:[%s8698_s1 + $0x1f0] sm:$0xf0] }
  0x30   :  { %v4346_v29 = vld [vmem:[%s8698_s1 + $0x560] sm:$0xf]  ;;  %1496 = vmatpush.bf16.msrb.mxu0 %v4235_v24  ;;  %v4219_v36 = vor.u32 %v5565_v28, %v4218_v27  ;;  %v5561_v40 = vld [vmem:[%s8698_s1 + $0x44c] sm:$0xf0]  ;;  %v5515_v13 = vld [vmem:[%s8698_s1 + $0x2e4] sm:$0xf]  ;;  %v3903_v27 = vor.u32 %v5483_v10, %v3900_v12 }
  0x31   :  { %v4474_v32 = vld [vmem:[%s8698_s1 + $0x660] sm:$0xf]  ;;  %1510 = vmatpush.bf16.msrb.mxu1 %v4363_v25  ;;  %v4347_v37 = vor.u32 %v5597_v31, %v4346_v29  ;;  %v5593_v43 = vld [vmem:[%s8698_s1 + $0x54c] sm:$0xf0]  ;;  %v4028_v14 = vld [vmem:[%s8698_s1 + $0x2f0] sm:$0xf0] }
  0x32   :  { %1524 = vmatpush.bf16.msrb.mxu2 %v4491_v26  ;;  %v4475_v38 = vor.u32 %v5629_v33, %v4474_v32  ;;  %v4202_v39 = vld [vmem:[%s8698_s1 + $0x440] sm:$0xf]  ;;  %v5625_v45 = vld [vmem:[%s8698_s1 + $0x64c] sm:$0xf0]  ;;  %v5547_v15 = vld [vmem:[%s8698_s1 + $0x3e4] sm:$0xf]  ;;  %v3663_v26 = vor.u32 %v5423_v7, %v3660_v9  ;;  %v4031_v31 = vor.u32 %v5515_v13, %v4028_v14 }
  0x33   :  { %v4330_v41 = vld [vmem:[%s8698_s1 + $0x540] sm:$0xf]  ;;  %1538 = vmatpush.bf16.msrb.mxu3 %v3727_v30  ;;  %v4203_v48 = vor.u32 %v5561_v40, %v4202_v39  ;;  %v5557_v52 = vld [vmem:[%s8698_s1 + $0x42c] sm:$0xf0]  ;;  %v4156_v17 = vld [vmem:[%s8698_s1 + $0x3f0] sm:$0xf0] }
  0x34   :  { %v4458_v44 = vld [vmem:[%s8698_s1 + $0x640] sm:$0xf]  ;;  %1497 = vmatpush.bf16.msrb.mxu0 %v4219_v36  ;;  %v4331_v49 = vor.u32 %v5593_v43, %v4330_v41  ;;  %v5589_v55 = vld [vmem:[%s8698_s1 + $0x52c] sm:$0xf0]  ;;  %v5579_v18 = vld [vmem:[%s8698_s1 + $0x4e4] sm:$0xf]  ;;  %v4159_v32 = vor.u32 %v5547_v15, %v4156_v17 }
  0x35   :  { %1511 = vmatpush.bf16.msrb.mxu1 %v4347_v37  ;;  %v4459_v50 = vor.u32 %v5625_v45, %v4458_v44  ;;  %v4186_v51 = vld [vmem:[%s8698_s1 + $0x420] sm:$0xf]  ;;  %v5621_v58 = vld [vmem:[%s8698_s1 + $0x62c] sm:$0xf0]  ;;  %v5421_v24 = vld [vmem:[%s8697_s0 + $0x28] sm:$0xf0]  ;;  %v4287_v36 = vor.u32 %v5579_v18, %v4284_v19 }
  0x36   :  { %1525 = vmatpush.bf16.msrb.mxu2 %v4475_v38  ;;  %v4314_v53 = vld [vmem:[%s8698_s1 + $0x520] sm:$0xf]  ;;  %v4187_v62 = vor.u32 %v5557_v52, %v4186_v51  ;;  %v5553_v63 = vld [vmem:[%s8698_s1 + $0x40c] sm:$0xf0]  ;;  %v3654_v25 = vld [vmem:[%s8697_s0 + $0x18] sm:$0xf] }
  0x37   :  { %1539 = vmatpush.bf16.msrb.mxu3 %v3711_v42  ;;  %v4442_v56 = vld [vmem:[%s8698_s1 + $0x620] sm:$0xf]  ;;  %v5585_v2 = vld [vmem:[%s8698_s1 + $0x50c] sm:$0xf0]  ;;  %v4315_v3 = vor.u32 %v5589_v55, %v4314_v53  ;;  %v5422_v28 = vld [vmem:[%s8697_s0 + $0x30] sm:$0xf0] }
  0x38   :  { %v4170_v61 = vld [vmem:[%s8698_s1 + $0x400] sm:$0xf]  ;;  %1498 = vmatpush.bf16.msrb.mxu0 %v4203_v48  ;;  %v4443_v4 = vor.u32 %v5621_v58, %v4442_v56  ;;  %v5617_v6 = vld [vmem:[%s8698_s1 + $0x60c] sm:$0xf0]  ;;  %v5418_v29 = vld [vmem:[%s8697_s0 + $0x14] sm:$0xf]  ;;  %v6440_v41 = vor.u32 %v5422_v28, %v3654_v25 }
  0x39   :  { %v4298_v1 = vld [vmem:[%s8698_s1 + $0x500] sm:$0xf]  ;;  %1512 = vmatpush.bf16.msrb.mxu1 %v4331_v49  ;;  %v4171_v16 = vor.u32 %v5553_v63, %v4170_v61  ;;  %v3646_v22 = vld [vmem:[%s8697_s0 + $0x10] sm:$0xf]  ;;  %v5479_v33 = vld [vmem:[%s8698_s1 + $0x1c4] sm:$0xf] }
  0x3a   :  { %1526 = vmatpush.bf16.msrb.mxu2 %v4459_v50  ;;  %v4426_v5 = vld [vmem:[%s8698_s1 + $0x600] sm:$0xf]  ;;  %v4299_v20 = vor.u32 %v5585_v2, %v4298_v1  ;;  %v3648_v30 = vld [vmem:[%s8697_s0 + $0x2c] sm:$0xf0]  ;;  %v6429_v37 = vor.u32 %v5421_v24, %v3646_v22  ;;  %v4012_v38 = vld [vmem:[%s8698_s1 + $0x2d0] sm:$0xf0]  ;;  %v3887_v45 = vor.u32 %v5479_v33, %v3884_v34 }
  0x3b   :  { %1540 = vmatpush.bf16.msrb.mxu3 %v3695_v54  ;;  %v4427_v21 = vor.u32 %v5617_v6, %v4426_v5  ;;  %v5543_v39 = vld [vmem:[%s8698_s1 + $0x3c4] sm:$0xf]  ;;  %v4140_v40 = vld [vmem:[%s8698_s1 + $0x3d0] sm:$0xf0]  ;;  %v6442_v42 = vor.u32 %v5418_v29, %v3648_v30  ;;  %v4015_v46 = vor.u32 %v5511_v35, %v4012_v38 }
  0x3c   :  { %1499 = vmatpush.bf16.msrb.mxu0 %v4187_v62  ;;  %v5575_v43 = vld [vmem:[%s8698_s1 + $0x4c4] sm:$0xf]  ;;  %v4268_v44 = vld [vmem:[%s8698_s1 + $0x4d0] sm:$0xf0]  ;;  %v4143_v47 = vor.u32 %v5543_v39, %v4140_v40 }
  0x3d   :  { %1513 = vmatpush.bf16.msrb.mxu1 %v4315_v3  ;;  %v5475_v48 = vld [vmem:[%s8698_s1 + $0x1a4] sm:$0xf]  ;;  %v3868_v49 = vld [vmem:[%s8698_s1 + $0x1b0] sm:$0xf0]  ;;  %v4271_v51 = vor.u32 %v5575_v43, %v4268_v44 }
  0x3e   :  { %1527 = vmatpush.bf16.msrb.mxu2 %v4443_v4  ;;  %v5507_v50 = vld [vmem:[%s8698_s1 + $0x2a4] sm:$0xf]  ;;  %v3996_v52 = vld [vmem:[%s8698_s1 + $0x2b0] sm:$0xf0]  ;;  %v3871_v58 = vor.u32 %v5475_v48, %v3868_v49 }
  0x3f   :  { %1541 = vmatpush.bf16.msrb.mxu3 %v3679_v8  ;;  %v5539_v53 = vld [vmem:[%s8698_s1 + $0x3a4] sm:$0xf]  ;;  %v4124_v54 = vld [vmem:[%s8698_s1 + $0x3b0] sm:$0xf0]  ;;  %v3999_v59 = vor.u32 %v5507_v50, %v3996_v52 }
  0x40   :  { %1500 = vmatpush.bf16.msrb.mxu0 %v4171_v16  ;;  %v5571_v55 = vld [vmem:[%s8698_s1 + $0x4a4] sm:$0xf]  ;;  %v4252_v56 = vld [vmem:[%s8698_s1 + $0x4b0] sm:$0xf0]  ;;  %v4127_v60 = vor.u32 %v5539_v53, %v4124_v54 }
  0x41   :  { %1514 = vmatpush.bf16.msrb.mxu1 %v4299_v20  ;;  %v5471_v61 = vld [vmem:[%s8698_s1 + $0x184] sm:$0xf]  ;;  %v3852_v62 = vld [vmem:[%s8698_s1 + $0x190] sm:$0xf0]  ;;  %v4255_v1 = vor.u32 %v5571_v55, %v4252_v56 }
  0x42   :  { %1528 = vmatpush.bf16.msrb.mxu2 %v4427_v21  ;;  %v5503_v63 = vld [vmem:[%s8698_s1 + $0x284] sm:$0xf]  ;;  %v3980_v2 = vld [vmem:[%s8698_s1 + $0x290] sm:$0xf0]  ;;  %v3855_v7 = vor.u32 %v5471_v61, %v3852_v62 }
  0x43   :  { %1542 = vmatpush.bf16.msrb.mxu3 %v3663_v26  ;;  %1501 = vmatmul.bf16.vlgmr.msrb.gmra.mxu0 %v6429_v37  ;;  %v5535_v3 = vld [vmem:[%s8698_s1 + $0x384] sm:$0xf]  ;;  %v4108_v4 = vld [vmem:[%s8698_s1 + $0x390] sm:$0xf0]  ;;  %v3983_v8 = vor.u32 %v5503_v63, %v3980_v2 }
  0x44   :  { %1549 = vmatpush.bf16.msra.mxu0 %v3903_v27  ;;  %1515 = vmatmul.bf16.vlgmr.msrb.gmra.mxu1 %v6442_v42  ;;  %v5567_v5 = vld [vmem:[%s8698_s1 + $0x484] sm:$0xf]  ;;  %v4236_v6 = vld [vmem:[%s8698_s1 + $0x490] sm:$0xf0]  ;;  %v4111_v9 = vor.u32 %v5535_v3, %v4108_v4  ;;  %v3778_v3 = vld [vmem:[%s8698_s1 + $0xe8] sm:$0xf] }
  0x45   :  { %1563 = vmatpush.bf16.msra.mxu1 %v4031_v31  ;;  %1529 = vmatmul.bf16.vlgmr.msrb.gmra.mxu2 %v6440_v41  ;;  %v5467_v10 = vld [vmem:[%s8698_s1 + $0x164] sm:$0xf]  ;;  %v3836_v12 = vld [vmem:[%s8698_s1 + $0x170] sm:$0xf0]  ;;  %v4239_v14 = vor.u32 %v5567_v5, %v4236_v6  ;;  %v5454_v4 = vld [vmem:[%s8698_s1 + $0xf4] sm:$0xf0] }
  0x46   :  { %1577 = vmatpush.bf16.msra.mxu2 %v4159_v32  ;;  %1543 = vmatmul.bf16.vlgmr.msrb.gmra.mxu3 %v6210_v57  ;;  %v5499_v13 = vld [vmem:[%s8698_s1 + $0x264] sm:$0xf]  ;;  %v3964_v15 = vld [vmem:[%s8698_s1 + $0x270] sm:$0xf0]  ;;  %v3839_v20 = vor.u32 %v5467_v10, %v3836_v12 }
  0x47   :  { %1591 = vmatpush.bf16.msra.mxu3 %v4287_v36  ;;  %v5531_v16 = vld [vmem:[%s8698_s1 + $0x364] sm:$0xf]  ;;  %v4092_v17 = vld [vmem:[%s8698_s1 + $0x370] sm:$0xf0]  ;;  %v3967_v21 = vor.u32 %v5499_v13, %v3964_v15  ;;  %v3779_v13 = vor.u32 %v5454_v4, %v3778_v3 }
  0x48   :  { %1550 = vmatpush.bf16.msra.mxu0 %v3887_v45  ;;  %v5563_v18 = vld [vmem:[%s8698_s1 + $0x464] sm:$0xf]  ;;  %v4220_v19 = vld [vmem:[%s8698_s1 + $0x470] sm:$0xf0]  ;;  %v4095_v22 = vor.u32 %v5531_v16, %v4092_v17 }
  0x49   :  { %1564 = vmatpush.bf16.msra.mxu1 %v4015_v46  ;;  %v5463_v24 = vld [vmem:[%s8698_s1 + $0x144] sm:$0xf]  ;;  %v3820_v25 = vld [vmem:[%s8698_s1 + $0x150] sm:$0xf0]  ;;  %v4223_v27 = vor.u32 %v5563_v18, %v4220_v19  ;;  %v3762_v19 = vld [vmem:[%s8698_s1 + $0xc8] sm:$0xf] }
  0x4a   :  { %1578 = vmatpush.bf16.msra.mxu2 %v4143_v47  ;;  %v5495_v26 = vld [vmem:[%s8698_s1 + $0x244] sm:$0xf]  ;;  %v3948_v28 = vld [vmem:[%s8698_s1 + $0x250] sm:$0xf0]  ;;  %v3823_v33 = vor.u32 %v5463_v24, %v3820_v25 }
  0x4b   :  { %1592 = vmatpush.bf16.msra.mxu3 %v4271_v51  ;;  %v5527_v29 = vld [vmem:[%s8698_s1 + $0x344] sm:$0xf]  ;;  %v4076_v30 = vld [vmem:[%s8698_s1 + $0x350] sm:$0xf0]  ;;  %v3951_v34 = vor.u32 %v5495_v26, %v3948_v28 }
  0x4c   :  { %1551 = vmatpush.bf16.msra.mxu0 %v3871_v58  ;;  %v5559_v31 = vld [vmem:[%s8698_s1 + $0x444] sm:$0xf]  ;;  %v4204_v32 = vld [vmem:[%s8698_s1 + $0x450] sm:$0xf0]  ;;  %v4079_v35 = vor.u32 %v5527_v29, %v4076_v30 }
  0x4d   :  { %1565 = vmatpush.bf16.msra.mxu1 %v3999_v59  ;;  %v5459_v36 = vld [vmem:[%s8698_s1 + $0x124] sm:$0xf]  ;;  %v3804_v38 = vld [vmem:[%s8698_s1 + $0x130] sm:$0xf0]  ;;  %v4207_v40 = vor.u32 %v5559_v31, %v4204_v32 }
  0x4e   :  { %1579 = vmatpush.bf16.msra.mxu2 %v4127_v60  ;;  %v5491_v39 = vld [vmem:[%s8698_s1 + $0x224] sm:$0xf]  ;;  %v3932_v43 = vld [vmem:[%s8698_s1 + $0x230] sm:$0xf0]  ;;  %v3807_v48 = vor.u32 %v5459_v36, %v3804_v38 }
  0x4f   :  { %1593 = vmatpush.bf16.msra.mxu3 %v4255_v1  ;;  %v5523_v44 = vld [vmem:[%s8698_s1 + $0x324] sm:$0xf]  ;;  %v4060_v45 = vld [vmem:[%s8698_s1 + $0x330] sm:$0xf0]  ;;  %v3935_v51 = vor.u32 %v5491_v39, %v3932_v43 }
  0x50   :  { %1552 = vmatpush.bf16.msra.mxu0 %v3855_v7  ;;  %v5555_v46 = vld [vmem:[%s8698_s1 + $0x424] sm:$0xf]  ;;  %v4188_v47 = vld [vmem:[%s8698_s1 + $0x430] sm:$0xf0]  ;;  %v4063_v52 = vor.u32 %v5523_v44, %v4060_v45  ;;  %v3906_v7 = vld [vmem:[%s8698_s1 + $0x1e8] sm:$0xf] }
  0x51   :  { %1566 = vmatpush.bf16.msra.mxu1 %v3983_v8  ;;  %v5455_v49 = vld [vmem:[%s8698_s1 + $0x104] sm:$0xf]  ;;  %v3788_v50 = vld [vmem:[%s8698_s1 + $0x110] sm:$0xf0]  ;;  %v4191_v56 = vor.u32 %v5555_v46, %v4188_v47  ;;  %v5486_v8 = vld [vmem:[%s8698_s1 + $0x1f4] sm:$0xf0] }
  0x52   :  { %1580 = vmatpush.bf16.msra.mxu2 %v4111_v9  ;;  %v5487_v53 = vld [vmem:[%s8698_s1 + $0x204] sm:$0xf]  ;;  %v3916_v54 = vld [vmem:[%s8698_s1 + $0x210] sm:$0xf0]  ;;  %v3791_v1 = vor.u32 %v5455_v49, %v3788_v50  ;;  %v3907_v17 = vor.u32 %v5486_v8, %v3906_v7 }
  0x53   :  { %1594 = vmatpush.bf16.msra.mxu3 %v4239_v14  ;;  %v5519_v55 = vld [vmem:[%s8698_s1 + $0x304] sm:$0xf]  ;;  %v4044_v58 = vld [vmem:[%s8698_s1 + $0x310] sm:$0xf0]  ;;  %v3919_v5 = vor.u32 %v5487_v53, %v3916_v54 }
  0x54   :  { %1553 = vmatpush.bf16.msra.mxu0 %v3839_v20  ;;  %v5551_v59 = vld [vmem:[%s8698_s1 + $0x404] sm:$0xf]  ;;  %v4172_v60 = vld [vmem:[%s8698_s1 + $0x410] sm:$0xf0]  ;;  %v4047_v6 = vor.u32 %v5519_v55, %v4044_v58  ;;  %v5450_v20 = vld [vmem:[%s8698_s1 + $0xd4] sm:$0xf0] }
  0x55   :  { %1567 = vmatpush.bf16.msra.mxu1 %v3967_v21  ;;  %v5611_v61 = vld [vmem:[%s8698_s1 + $0x5e4] sm:$0xf]  ;;  %v4412_v62 = vld [vmem:[%s8698_s1 + $0x5f0] sm:$0xf0]  ;;  %v4175_v9 = vor.u32 %v5551_v59, %v4172_v60  ;;  %v3890_v21 = vld [vmem:[%s8698_s1 + $0x1c8] sm:$0xf] }
  0x56   :  { %1581 = vmatpush.bf16.msra.mxu2 %v4095_v22  ;;  %v5643_v63 = vld [vmem:[%s8698_s1 + $0x6e4] sm:$0xf]  ;;  %v4540_v2 = vld [vmem:[%s8698_s1 + $0x6f0] sm:$0xf0]  ;;  %v4415_v10 = vor.u32 %v5611_v61, %v4412_v62  ;;  %v5482_v22 = vld [vmem:[%s8698_s1 + $0x1d4] sm:$0xf0] }
  0x57   :  { %1595 = vmatpush.bf16.msra.mxu3 %v4223_v27  ;;  %v4543_v12 = vor.u32 %v5643_v63, %v4540_v2  ;;  %v5607_v14 = vld [vmem:[%s8698_s1 + $0x5c4] sm:$0xf]  ;;  %v4396_v15 = vld [vmem:[%s8698_s1 + $0x5d0] sm:$0xf0] }
  0x58   :  { %1554 = vmatpush.bf16.msra.mxu0 %v3823_v33  ;;  %v5639_v16 = vld [vmem:[%s8698_s1 + $0x6c4] sm:$0xf]  ;;  %v4524_v18 = vld [vmem:[%s8698_s1 + $0x6d0] sm:$0xf0]  ;;  %v4399_v24 = vor.u32 %v5607_v14, %v4396_v15 }
  0x59   :  { %1568 = vmatpush.bf16.msra.mxu1 %v3951_v34 }
  0x5a   :  { %1582 = vmatpush.bf16.msra.mxu2 %v4079_v35 }
  0x5b   :  { %1596 = vmatpush.bf16.msra.mxu3 %v4207_v40 }
  0x5c   :  { %1555 = vmatpush.bf16.msra.mxu0 %v3807_v48 }
  0x5d   :  { %1569 = vmatpush.bf16.msra.mxu1 %v3935_v51 }
  0x5e   :  { %1583 = vmatpush.bf16.msra.mxu2 %v4063_v52 }
  0x5f   :  { %1597 = vmatpush.bf16.msra.mxu3 %v4191_v56 }
  0x60   :  { %1556 = vmatpush.bf16.msra.mxu0 %v3791_v1 }
  0x61   :  { %1570 = vmatpush.bf16.msra.mxu1 %v3919_v5 }
  0x62   :  { %1584 = vmatpush.bf16.msra.mxu2 %v4047_v6 }
  0x63   :  { %1598 = vmatpush.bf16.msra.mxu3 %v4175_v9 }
  0x64   :  { %1605 = vmatpush.bf16.msrb.mxu0 %v4415_v10 }
  0x65   :  { %16 = vsyncpa [#allocation3], 0  ;;  %1619 = vmatpush.bf16.msrb.mxu1 %v4543_v12  ;;  %v4527_v25 = vor.u32 %v5639_v16, %v4524_v18  ;;  %v3763_v26 = vor.u32 %v5450_v20, %v3762_v19  ;;  %v5603_v27 = vld [vmem:[%s8698_s1 + $0x5a4] sm:$0xf]  ;;  %v4380_v28 = vld [vmem:[%s8698_s1 + $0x5b0] sm:$0xf0]  ;;  %1557 = vmatmul.bf16.vlgmr.msra.gmra.mxu0 %v6252_v11  ;;  %v3891_v30 = vor.u32 %v5482_v22, %v3890_v21 }
  0x66   :  { %1633 = vmatpush.bf16.msrb.mxu2 %v3779_v13  ;;  %v5635_v29 = vld [vmem:[%s8698_s1 + $0x6a4] sm:$0xf]  ;;  %v4508_v31 = vld [vmem:[%s8698_s1 + $0x6b0] sm:$0xf0]  ;;  %v3746_v32 = vld [vmem:[%s8698_s1 + $0xa8] sm:$0xf]  ;;  %1571 = vmatmul.bf16.vlgmr.msra.gmra.mxu1 %v6224_v0  ;;  %v4383_v36 = vor.u32 %v5603_v27, %v4380_v28 }
  0x67   :  { %1647 = vmatpush.bf16.msrb.mxu3 %v3907_v17  ;;  %v5446_v33 = vld [vmem:[%s8698_s1 + $0xb4] sm:$0xf0]  ;;  %1585 = vmatmul.bf16.vlgmr.msra.gmra.mxu2 %v6279_v23  ;;  %v3874_v34 = vld [vmem:[%s8698_s1 + $0x1a8] sm:$0xf]  ;;  %v4511_v38 = vor.u32 %v5635_v29, %v4508_v31  ;;  %v5599_v40 = vld [vmem:[%s8698_s1 + $0x584] sm:$0xf] }
  0x68   :  { %v5478_v35 = vld [vmem:[%s8698_s1 + $0x1b4] sm:$0xf0]  ;;  %1599 = vmatmul.bf16.vlgmr.msra.gmra.mxu3 %v6429_v37  ;;  %1606 = vmatpush.bf16.msrb.mxu0 %v4399_v24  ;;  %v3747_v39 = vor.u32 %v5446_v33, %v3746_v32  ;;  %v4364_v43 = vld [vmem:[%s8698_s1 + $0x590] sm:$0xf0]  ;;  %v5631_v44 = vld [vmem:[%s8698_s1 + $0x684] sm:$0xf] }
  0x69   :  { %1620 = vmatpush.bf16.msrb.mxu1 %v4527_v25  ;;  %v3875_v45 = vor.u32 %v5478_v35, %v3874_v34  ;;  %v4492_v46 = vld [vmem:[%s8698_s1 + $0x690] sm:$0xf0]  ;;  %v3730_v47 = vld [vmem:[%s8698_s1 + $0x88] sm:$0xf]  ;;  %v5442_v48 = vld [vmem:[%s8698_s1 + $0x94] sm:$0xf0]  ;;  %v4367_v51 = vor.u32 %v5599_v40, %v4364_v43 }
  0x6a   :  { %1634 = vmatpush.bf16.msrb.mxu2 %v3763_v26  ;;  %v3858_v49 = vld [vmem:[%s8698_s1 + $0x188] sm:$0xf]  ;;  %v5474_v50 = vld [vmem:[%s8698_s1 + $0x194] sm:$0xf0]  ;;  %v4495_v52 = vor.u32 %v5631_v44, %v4492_v46  ;;  %v3731_v53 = vor.u32 %v5442_v48, %v3730_v47  ;;  %v5595_v54 = vld [vmem:[%s8698_s1 + $0x564] sm:$0xf] }
  0x6b   :  { %1648 = vmatpush.bf16.msrb.mxu3 %v3891_v30  ;;  %v4348_v55 = vld [vmem:[%s8698_s1 + $0x570] sm:$0xf0]  ;;  %v5627_v56 = vld [vmem:[%s8698_s1 + $0x664] sm:$0xf]  ;;  %v3859_v58 = vor.u32 %v5474_v50, %v3858_v49  ;;  %v3714_v60 = vld [vmem:[%s8698_s1 + $0x68] sm:$0xf] }
  0x6c   :  { %1607 = vmatpush.bf16.msrb.mxu0 %v4383_v36  ;;  %v4476_v59 = vld [vmem:[%s8698_s1 + $0x670] sm:$0xf0]  ;;  %v5438_v61 = vld [vmem:[%s8698_s1 + $0x74] sm:$0xf0]  ;;  %v3842_v62 = vld [vmem:[%s8698_s1 + $0x168] sm:$0xf]  ;;  %v4351_v1 = vor.u32 %v5595_v54, %v4348_v55 }
  0x6d   :  { %1621 = vmatpush.bf16.msrb.mxu1 %v4511_v38  ;;  %v5470_v63 = vld [vmem:[%s8698_s1 + $0x174] sm:$0xf0]  ;;  %v4479_v2 = vor.u32 %v5627_v56, %v4476_v59  ;;  %v3715_v3 = vor.u32 %v5438_v61, %v3714_v60  ;;  %v5591_v4 = vld [vmem:[%s8698_s1 + $0x544] sm:$0xf]  ;;  %v4332_v5 = vld [vmem:[%s8698_s1 + $0x550] sm:$0xf0] }
  0x6e   :  { %1635 = vmatpush.bf16.msrb.mxu2 %v3747_v39  ;;  %v5623_v6 = vld [vmem:[%s8698_s1 + $0x644] sm:$0xf]  ;;  %v3843_v7 = vor.u32 %v5470_v63, %v3842_v62  ;;  %v4460_v8 = vld [vmem:[%s8698_s1 + $0x650] sm:$0xf0]  ;;  %v3698_v9 = vld [vmem:[%s8698_s1 + $0x48] sm:$0xf]  ;;  %v4335_v14 = vor.u32 %v5591_v4, %v4332_v5 }
  0x6f   :  { %1649 = vmatpush.bf16.msrb.mxu3 %v3875_v45  ;;  %v5434_v10 = vld [vmem:[%s8698_s1 + $0x54] sm:$0xf0]  ;;  %v3826_v12 = vld [vmem:[%s8698_s1 + $0x148] sm:$0xf]  ;;  %v4463_v15 = vor.u32 %v5623_v6, %v4460_v8  ;;  %v5587_v17 = vld [vmem:[%s8698_s1 + $0x524] sm:$0xf] }
  0x70   :  { %1608 = vmatpush.bf16.msrb.mxu0 %v4367_v51  ;;  %v5466_v13 = vld [vmem:[%s8698_s1 + $0x154] sm:$0xf0]  ;;  %v3699_v16 = vor.u32 %v5434_v10, %v3698_v9  ;;  %v4316_v18 = vld [vmem:[%s8698_s1 + $0x530] sm:$0xf0]  ;;  %v5619_v19 = vld [vmem:[%s8698_s1 + $0x624] sm:$0xf] }
  0x71   :  { %1622 = vmatpush.bf16.msrb.mxu1 %v4495_v52  ;;  %v3827_v20 = vor.u32 %v5466_v13, %v3826_v12  ;;  %v4444_v21 = vld [vmem:[%s8698_s1 + $0x630] sm:$0xf0]  ;;  %v3682_v22 = vld [vmem:[%s8698_s1 + $0x28] sm:$0xf]  ;;  %v5430_v24 = vld [vmem:[%s8698_s1 + $0x34] sm:$0xf0]  ;;  %v4319_v27 = vor.u32 %v5587_v17, %v4316_v18 }
  0x72   :  { %1636 = vmatpush.bf16.msrb.mxu2 %v3731_v53  ;;  %v3810_v25 = vld [vmem:[%s8698_s1 + $0x128] sm:$0xf]  ;;  %v5462_v26 = vld [vmem:[%s8698_s1 + $0x134] sm:$0xf0]  ;;  %v5583_v28 = vld [vmem:[%s8698_s1 + $0x504] sm:$0xf]  ;;  %v4447_v30 = vor.u32 %v5619_v19, %v4444_v21  ;;  %v3683_v31 = vor.u32 %v5430_v24, %v3682_v22 }
  0x73   :  { %1650 = vmatpush.bf16.msrb.mxu3 %v3859_v58  ;;  %v4300_v29 = vld [vmem:[%s8698_s1 + $0x510] sm:$0xf0]  ;;  %v5615_v32 = vld [vmem:[%s8698_s1 + $0x604] sm:$0xf]  ;;  %v3666_v34 = vld [vmem:[%s8698_s1 + $0x8] sm:$0xf]  ;;  %v3811_v35 = vor.u32 %v5462_v26, %v3810_v25 }
  0x74   :  { %1609 = vmatpush.bf16.msrb.mxu0 %v4351_v1  ;;  %v4428_v33 = vld [vmem:[%s8698_s1 + $0x610] sm:$0xf0]  ;;  %v5426_v36 = vld [vmem:[%s8698_s1 + $0x14] sm:$0xf0]  ;;  %v3794_v38 = vld [vmem:[%s8698_s1 + $0x108] sm:$0xf]  ;;  %v4303_v45 = vor.u32 %v5583_v28, %v4300_v29 }
  0x75   :  { %1623 = vmatpush.bf16.msrb.mxu1 %v4479_v2  ;;  %v5458_v39 = vld [vmem:[%s8698_s1 + $0x114] sm:$0xf0]  ;;  %v4034_v40 = vld [vmem:[%s8698_s1 + $0x2e8] sm:$0xf]  ;;  %v4431_v49 = vor.u32 %v5615_v32, %v4428_v33  ;;  %v3667_v50 = vor.u32 %v5426_v36, %v3666_v34  ;;  %s3616_s24 = sshll.u32 %s8708_s11, 4  ;;  %s5896_s25 = smov 128   ;;  %s3617_s24 = int_to_ptr.hbm [resolvable:$true] %s3616_s24 }
  0x76   :  { %1637 = vmatpush.bf16.msrb.mxu2 %v3715_v3  ;;  %v5518_v43 = vld [vmem:[%s8698_s1 + $0x2f4] sm:$0xf0]  ;;  %v4162_v44 = vld [vmem:[%s8698_s1 + $0x3e8] sm:$0xf]  ;;  %v3795_v53 = vor.u32 %v5458_v39, %v3794_v38 }
  0x77   :  { %1651 = vmatpush.bf16.msrb.mxu3 %v3843_v7  ;;  %v5550_v46 = vld [vmem:[%s8698_s1 + $0x3f4] sm:$0xf0]  ;;  %v4290_v47 = vld [vmem:[%s8698_s1 + $0x4e8] sm:$0xf]  ;;  %v4035_v54 = vor.u32 %v5518_v43, %v4034_v40 }
  0x78   :  { %1610 = vmatpush.bf16.msrb.mxu0 %v4335_v14  ;;  %v5582_v48 = vld [vmem:[%s8698_s1 + $0x4f4] sm:$0xf0]  ;;  %v4418_v51 = vld [vmem:[%s8698_s1 + $0x5e8] sm:$0xf]  ;;  %v4163_v55 = vor.u32 %v5550_v46, %v4162_v44 }
  0x79   :  { %1624 = vmatpush.bf16.msrb.mxu1 %v4463_v15  ;;  %v5614_v52 = vld [vmem:[%s8698_s1 + $0x5f4] sm:$0xf0]  ;;  %v4291_v56 = vor.u32 %v5582_v48, %v4290_v47  ;;  %v4018_v58 = vld [vmem:[%s8698_s1 + $0x2c8] sm:$0xf] }
  0x7a   :  { %1638 = vmatpush.bf16.msrb.mxu2 %v3699_v16  ;;  %v5514_v59 = vld [vmem:[%s8698_s1 + $0x2d4] sm:$0xf0]  ;;  %v4146_v60 = vld [vmem:[%s8698_s1 + $0x3c8] sm:$0xf]  ;;  %v4419_v61 = vor.u32 %v5614_v52, %v4418_v51 }
  0x7b   :  { %1652 = vmatpush.bf16.msrb.mxu3 %v3827_v20  ;;  %v5546_v62 = vld [vmem:[%s8698_s1 + $0x3d4] sm:$0xf0]  ;;  %v4274_v63 = vld [vmem:[%s8698_s1 + $0x4c8] sm:$0xf]  ;;  %v4019_v4 = vor.u32 %v5514_v59, %v4018_v58 }
  0x7c   :  { %1611 = vmatpush.bf16.msrb.mxu0 %v4319_v27  ;;  %v5578_v1 = vld [vmem:[%s8698_s1 + $0x4d4] sm:$0xf0]  ;;  %v4402_v2 = vld [vmem:[%s8698_s1 + $0x5c8] sm:$0xf]  ;;  %v4147_v5 = vor.u32 %v5546_v62, %v4146_v60 }
  0x7d   :  { %1625 = vmatpush.bf16.msrb.mxu1 %v4447_v30  ;;  %v5610_v3 = vld [vmem:[%s8698_s1 + $0x5d4] sm:$0xf0]  ;;  %v4275_v6 = vor.u32 %v5578_v1, %v4274_v63  ;;  %v4002_v7 = vld [vmem:[%s8698_s1 + $0x2a8] sm:$0xf] }
  0x7e   :  { %1639 = vmatpush.bf16.msrb.mxu2 %v3683_v31  ;;  %v5510_v8 = vld [vmem:[%s8698_s1 + $0x2b4] sm:$0xf0]  ;;  %v4130_v9 = vld [vmem:[%s8698_s1 + $0x3a8] sm:$0xf]  ;;  %v4403_v10 = vor.u32 %v5610_v3, %v4402_v2 }
  0x7f   :  { %1653 = vmatpush.bf16.msrb.mxu3 %v3811_v35  ;;  %v5542_v12 = vld [vmem:[%s8698_s1 + $0x3b4] sm:$0xf0]  ;;  %v4258_v13 = vld [vmem:[%s8698_s1 + $0x4a8] sm:$0xf]  ;;  %v4003_v17 = vor.u32 %v5510_v8, %v4002_v7 }
  0x80   :  { %1612 = vmatpush.bf16.msrb.mxu0 %v4303_v45  ;;  %v5574_v14 = vld [vmem:[%s8698_s1 + $0x4b4] sm:$0xf0]  ;;  %v4386_v15 = vld [vmem:[%s8698_s1 + $0x5a8] sm:$0xf]  ;;  %v4131_v18 = vor.u32 %v5542_v12, %v4130_v9 }
  0x81   :  { %1626 = vmatpush.bf16.msrb.mxu1 %v4431_v49  ;;  %v5606_v16 = vld [vmem:[%s8698_s1 + $0x5b4] sm:$0xf0]  ;;  %v4259_v19 = vor.u32 %v5574_v14, %v4258_v13  ;;  %v3986_v20 = vld [vmem:[%s8698_s1 + $0x288] sm:$0xf] }
  0x82   :  { %1640 = vmatpush.bf16.msrb.mxu2 %v3667_v50  ;;  %v5506_v21 = vld [vmem:[%s8698_s1 + $0x294] sm:$0xf0]  ;;  %v4114_v22 = vld [vmem:[%s8698_s1 + $0x388] sm:$0xf]  ;;  %v4387_v24 = vor.u32 %v5606_v16, %v4386_v15 }
  0x83   :  { %1654 = vmatpush.bf16.msrb.mxu3 %v3795_v53  ;;  %1613 = vmatmul.bf16.vlgmr.msrb.gmra.mxu0 %v6442_v42  ;;  %v5538_v25 = vld [vmem:[%s8698_s1 + $0x394] sm:$0xf0]  ;;  %v4242_v26 = vld [vmem:[%s8698_s1 + $0x488] sm:$0xf]  ;;  %v3987_v30 = vor.u32 %v5506_v21, %v3986_v20 }
  0x84   :  { %1661 = vmatpush.bf16.msra.mxu0 %v4035_v54  ;;  %1627 = vmatmul.bf16.vlgmr.msrb.gmra.mxu1 %v6440_v41  ;;  %v5570_v27 = vld [vmem:[%s8698_s1 + $0x494] sm:$0xf0]  ;;  %v4370_v28 = vld [vmem:[%s8698_s1 + $0x588] sm:$0xf]  ;;  %v4115_v31 = vor.u32 %v5538_v25, %v4114_v22  ;;  %v5452_v22 = vld [vmem:[%s8698_s1 + $0xec] sm:$0xf] }
  0x85   :  { %1675 = vmatpush.bf16.msra.mxu1 %v4163_v55  ;;  %1641 = vmatmul.bf16.vlgmr.msrb.gmra.mxu2 %v6210_v57  ;;  %v5602_v29 = vld [vmem:[%s8698_s1 + $0x594] sm:$0xf0]  ;;  %v4243_v32 = vor.u32 %v5570_v27, %v4242_v26  ;;  %v3970_v33 = vld [vmem:[%s8698_s1 + $0x268] sm:$0xf]  ;;  %v3780_v25 = vld [vmem:[%s8698_s1 + $0xf8] sm:$0xf0] }
  0x86   :  { %1689 = vmatpush.bf16.msra.mxu2 %v4291_v56  ;;  %1655 = vmatmul.bf16.vlgmr.msrb.gmra.mxu3 %v6252_v11  ;;  %v5502_v34 = vld [vmem:[%s8698_s1 + $0x274] sm:$0xf0]  ;;  %v4098_v35 = vld [vmem:[%s8698_s1 + $0x368] sm:$0xf]  ;;  %v4371_v36 = vor.u32 %v5602_v29, %v4370_v28  ;;  %v5484_v26 = vld [vmem:[%s8698_s1 + $0x1ec] sm:$0xf] }
  0x87   :  { %1703 = vmatpush.bf16.msra.mxu3 %v4419_v61  ;;  %v5534_v38 = vld [vmem:[%s8698_s1 + $0x374] sm:$0xf0]  ;;  %v4226_v39 = vld [vmem:[%s8698_s1 + $0x468] sm:$0xf]  ;;  %v3971_v45 = vor.u32 %v5502_v34, %v3970_v33  ;;  %v3908_v27 = vld [vmem:[%s8698_s1 + $0x1f8] sm:$0xf0]  ;;  %v3783_v34 = vor.u32 %v5452_v22, %v3780_v25 }
  0x88   :  { %1662 = vmatpush.bf16.msra.mxu0 %v4019_v4  ;;  %v5566_v40 = vld [vmem:[%s8698_s1 + $0x474] sm:$0xf0]  ;;  %v4354_v43 = vld [vmem:[%s8698_s1 + $0x568] sm:$0xf]  ;;  %v4099_v46 = vor.u32 %v5534_v38, %v4098_v35  ;;  %v3911_v35 = vor.u32 %v5484_v26, %v3908_v27  ;;  %v3972_v22 = vld [vmem:[%s8698_s1 + $0x278] sm:$0xf0] }
  0x89   :  { %1676 = vmatpush.bf16.msra.mxu1 %v4147_v5  ;;  %v5598_v44 = vld [vmem:[%s8698_s1 + $0x574] sm:$0xf0]  ;;  %v4227_v47 = vor.u32 %v5566_v40, %v4226_v39  ;;  %v3954_v48 = vld [vmem:[%s8698_s1 + $0x248] sm:$0xf]  ;;  %v5448_v39 = vld [vmem:[%s8698_s1 + $0xcc] sm:$0xf] }
  0x8a   :  { %1690 = vmatpush.bf16.msra.mxu2 %v4275_v6  ;;  %v5498_v49 = vld [vmem:[%s8698_s1 + $0x254] sm:$0xf0]  ;;  %v4082_v50 = vld [vmem:[%s8698_s1 + $0x348] sm:$0xf]  ;;  %v4355_v51 = vor.u32 %v5598_v44, %v4354_v43  ;;  %v3764_v43 = vld [vmem:[%s8698_s1 + $0xd8] sm:$0xf0] }
  0x8b   :  { %1704 = vmatpush.bf16.msra.mxu3 %v4403_v10  ;;  %v5530_v52 = vld [vmem:[%s8698_s1 + $0x354] sm:$0xf0]  ;;  %v4210_v53 = vld [vmem:[%s8698_s1 + $0x448] sm:$0xf]  ;;  %v3955_v58 = vor.u32 %v5498_v49, %v3954_v48  ;;  %v5480_v44 = vld [vmem:[%s8698_s1 + $0x1cc] sm:$0xf]  ;;  %v3767_v49 = vor.u32 %v5448_v39, %v3764_v43 }
  0x8c   :  { %1663 = vmatpush.bf16.msra.mxu0 %v4003_v17  ;;  %v5562_v54 = vld [vmem:[%s8698_s1 + $0x454] sm:$0xf0]  ;;  %v4338_v55 = vld [vmem:[%s8698_s1 + $0x548] sm:$0xf]  ;;  %v4083_v59 = vor.u32 %v5530_v52, %v4082_v50 }
  0x8d   :  { %1677 = vmatpush.bf16.msra.mxu1 %v4131_v18  ;;  %v5594_v56 = vld [vmem:[%s8698_s1 + $0x554] sm:$0xf0]  ;;  %v4211_v60 = vor.u32 %v5562_v54, %v4210_v53  ;;  %v3938_v61 = vld [vmem:[%s8698_s1 + $0x228] sm:$0xf]  ;;  %v5444_v53 = vld [vmem:[%s8698_s1 + $0xac] sm:$0xf] }
  0x8e   :  { %1691 = vmatpush.bf16.msra.mxu2 %v4259_v19  ;;  %v5494_v62 = vld [vmem:[%s8698_s1 + $0x234] sm:$0xf0]  ;;  %v4066_v63 = vld [vmem:[%s8698_s1 + $0x328] sm:$0xf]  ;;  %v4339_v1 = vor.u32 %v5594_v56, %v4338_v55  ;;  %v3748_v55 = vld [vmem:[%s8698_s1 + $0xb8] sm:$0xf0] }
  0x8f   :  { %1705 = vmatpush.bf16.msra.mxu3 %v4387_v24  ;;  %v5526_v2 = vld [vmem:[%s8698_s1 + $0x334] sm:$0xf0]  ;;  %v4194_v3 = vld [vmem:[%s8698_s1 + $0x428] sm:$0xf]  ;;  %v3939_v7 = vor.u32 %v5494_v62, %v3938_v61  ;;  %v5476_v56 = vld [vmem:[%s8698_s1 + $0x1ac] sm:$0xf]  ;;  %v3751_v62 = vor.u32 %v5444_v53, %v3748_v55 }
  0x90   :  { %1664 = vmatpush.bf16.msra.mxu0 %v3987_v30  ;;  %v5558_v4 = vld [vmem:[%s8698_s1 + $0x434] sm:$0xf0]  ;;  %v4322_v5 = vld [vmem:[%s8698_s1 + $0x528] sm:$0xf]  ;;  %v4067_v10 = vor.u32 %v5526_v2, %v4066_v63  ;;  %v5516_v30 = vld [vmem:[%s8698_s1 + $0x2ec] sm:$0xf] }
  0x91   :  { %1678 = vmatpush.bf16.msra.mxu1 %v4115_v31  ;;  %v5590_v6 = vld [vmem:[%s8698_s1 + $0x534] sm:$0xf0]  ;;  %v3922_v8 = vld [vmem:[%s8698_s1 + $0x208] sm:$0xf]  ;;  %v4195_v12 = vor.u32 %v5558_v4, %v4194_v3  ;;  %v4036_v31 = vld [vmem:[%s8698_s1 + $0x2f8] sm:$0xf0] }
  0x92   :  { %1692 = vmatpush.bf16.msra.mxu2 %v4243_v32  ;;  %v5490_v9 = vld [vmem:[%s8698_s1 + $0x214] sm:$0xf0]  ;;  %v4050_v13 = vld [vmem:[%s8698_s1 + $0x308] sm:$0xf]  ;;  %v4323_v16 = vor.u32 %v5590_v6, %v4322_v5  ;;  %v4039_v40 = vor.u32 %v5516_v30, %v4036_v31  ;;  %v5440_v3 = vld [vmem:[%s8698_s1 + $0x8c] sm:$0xf] }
  0x93   :  { %1706 = vmatpush.bf16.msra.mxu3 %v4371_v36  ;;  %v5522_v14 = vld [vmem:[%s8698_s1 + $0x314] sm:$0xf0]  ;;  %v4178_v15 = vld [vmem:[%s8698_s1 + $0x408] sm:$0xf]  ;;  %v3923_v24 = vor.u32 %v5490_v9, %v3922_v8  ;;  %v3732_v5 = vld [vmem:[%s8698_s1 + $0x98] sm:$0xf0] }
  0x94   :  { %1665 = vmatpush.bf16.msra.mxu0 %v3971_v45  ;;  %v5554_v17 = vld [vmem:[%s8698_s1 + $0x414] sm:$0xf0]  ;;  %v4306_v18 = vld [vmem:[%s8698_s1 + $0x508] sm:$0xf]  ;;  %v4051_v28 = vor.u32 %v5522_v14, %v4050_v13  ;;  %v3892_v45 = vld [vmem:[%s8698_s1 + $0x1d8] sm:$0xf0] }
  0x95   :  { %1679 = vmatpush.bf16.msra.mxu1 %v4099_v46  ;;  %v5586_v19 = vld [vmem:[%s8698_s1 + $0x514] sm:$0xf0]  ;;  %v4546_v20 = vld [vmem:[%s8698_s1 + $0x6e8] sm:$0xf]  ;;  %v4179_v29 = vor.u32 %v5554_v17, %v4178_v15  ;;  %v5512_v46 = vld [vmem:[%s8698_s1 + $0x2cc] sm:$0xf]  ;;  %v3895_v50 = vor.u32 %v5480_v44, %v3892_v45 }
  0x96   :  { %1693 = vmatpush.bf16.msra.mxu2 %v4227_v47  ;;  %v5646_v21 = vld [vmem:[%s8698_s1 + $0x6f4] sm:$0xf0]  ;;  %v4307_v32 = vor.u32 %v5586_v19, %v4306_v18  ;;  %v4530_v36 = vld [vmem:[%s8698_s1 + $0x6c8] sm:$0xf]  ;;  %v4020_v47 = vld [vmem:[%s8698_s1 + $0x2d8] sm:$0xf0] }
  0x97   :  { %1707 = vmatpush.bf16.msra.mxu3 %v4355_v51  ;;  %v4547_v33 = vor.u32 %v5646_v21, %v4546_v20  ;;  %v5642_v38 = vld [vmem:[%s8698_s1 + $0x6d4] sm:$0xf0]  ;;  %v4514_v51 = vld [vmem:[%s8698_s1 + $0x6a8] sm:$0xf]  ;;  %v4023_v54 = vor.u32 %v5512_v46, %v4020_v47  ;;  %v5472_v6 = vld [vmem:[%s8698_s1 + $0x18c] sm:$0xf] }
  0x98   :  { %1666 = vmatpush.bf16.msra.mxu0 %v3955_v58  ;;  %v4531_v48 = vor.u32 %v5642_v38, %v4530_v36  ;;  %v5638_v52 = vld [vmem:[%s8698_s1 + $0x6b4] sm:$0xf0]  ;;  %v3876_v58 = vld [vmem:[%s8698_s1 + $0x1b8] sm:$0xf0]  ;;  %v5504_v8 = vld [vmem:[%s8698_s1 + $0x28c] sm:$0xf] }
  0x99   :  { %1680 = vmatpush.bf16.msra.mxu1 %v4083_v59  ;;  %v5508_v59 = vld [vmem:[%s8698_s1 + $0x2ac] sm:$0xf]  ;;  %v4515_v61 = vor.u32 %v5638_v52, %v4514_v51  ;;  %v3879_v63 = vor.u32 %v5476_v56, %v3876_v58  ;;  %v5634_v2 = vld [vmem:[%s8698_s1 + $0x694] sm:$0xf0]  ;;  %v3988_v9 = vld [vmem:[%s8698_s1 + $0x298] sm:$0xf0] }
  0x9a   :  { %1694 = vmatpush.bf16.msra.mxu2 %v4211_v60  ;;  %v4004_v60 = vld [vmem:[%s8698_s1 + $0x2b8] sm:$0xf0]  ;;  %v4482_v14 = vld [vmem:[%s8698_s1 + $0x668] sm:$0xf]  ;;  %v5630_v15 = vld [vmem:[%s8698_s1 + $0x674] sm:$0xf0]  ;;  %v3991_v17 = vor.u32 %v5504_v8, %v3988_v9 }
  0x9b   :  { %1708 = vmatpush.bf16.msra.mxu3 %v4339_v1  ;;  %v4498_v1 = vld [vmem:[%s8698_s1 + $0x688] sm:$0xf]  ;;  %v4007_v4 = vor.u32 %v5508_v59, %v4004_v60  ;;  %v3716_v18 = vld [vmem:[%s8698_s1 + $0x78] sm:$0xf0]  ;;  %v5468_v19 = vld [vmem:[%s8698_s1 + $0x16c] sm:$0xf] }
  0x9c   :  { %1667 = vmatpush.bf16.msra.mxu0 %v3939_v7  ;;  %v3860_v7 = vld [vmem:[%s8698_s1 + $0x198] sm:$0xf0]  ;;  %v5500_v21 = vld [vmem:[%s8698_s1 + $0x26c] sm:$0xf]  ;;  %v4466_v27 = vld [vmem:[%s8698_s1 + $0x648] sm:$0xf] }
  0x9d   :  { %1681 = vmatpush.bf16.msra.mxu1 %v4067_v10  ;;  %v4499_v10 = vor.u32 %v5634_v2, %v4498_v1  ;;  %v3863_v13 = vor.u32 %v5472_v6, %v3860_v7  ;;  %v3844_v20 = vld [vmem:[%s8698_s1 + $0x178] sm:$0xf0]  ;;  %v3975_v30 = vor.u32 %v5500_v21, %v3972_v22  ;;  %v5622_v43 = vld [vmem:[%s8698_s1 + $0x634] sm:$0xf0]  ;;  %v5428_v44 = vld [vmem:[%s8698_s1 + $0x2c] sm:$0xf] }
  0x9e   :  { %1695 = vmatpush.bf16.msra.mxu2 %v4195_v12  ;;  %v3735_v12 = vor.u32 %v5440_v3, %v3732_v5  ;;  %v3847_v26 = vor.u32 %v5468_v19, %v3844_v20  ;;  %v3700_v31 = vld [vmem:[%s8698_s1 + $0x58] sm:$0xf0]  ;;  %v5460_v47 = vld [vmem:[%s8698_s1 + $0x12c] sm:$0xf]  ;;  %v4434_v52 = vld [vmem:[%s8698_s1 + $0x608] sm:$0xf] }
  0x9f   :  { %1709 = vmatpush.bf16.msra.mxu3 %v4323_v16  ;;  %v5436_v16 = vld [vmem:[%s8698_s1 + $0x6c] sm:$0xf]  ;;  %v3684_v46 = vld [vmem:[%s8698_s1 + $0x38] sm:$0xf0]  ;;  %v5618_v53 = vld [vmem:[%s8698_s1 + $0x614] sm:$0xf0] }
  0xa0   :  { %1668 = vmatpush.bf16.msra.mxu0 %v3923_v24  ;;  %v4483_v24 = vor.u32 %v5630_v15, %v4482_v14  ;;  %v3719_v25 = vor.u32 %v5436_v16, %v3716_v18  ;;  %v5424_v56 = vld [vmem:[%s8698_s1 + $0xc] sm:$0xf]  ;;  %v3668_v58 = vld [vmem:[%s8698_s1 + $0x18] sm:$0xf0] }
  0xa1   :  { %1682 = vmatpush.bf16.msra.mxu1 %v4051_v28  ;;  %v5626_v28 = vld [vmem:[%s8698_s1 + $0x654] sm:$0xf0]  ;;  %v5456_v59 = vld [vmem:[%s8698_s1 + $0x10c] sm:$0xf]  ;;  %v4164_v2 = vld [vmem:[%s8698_s1 + $0x3f8] sm:$0xf0]  ;;  %v3671_v8 = vor.u32 %v5424_v56, %v3668_v58 }
  0xa2   :  { %1696 = vmatpush.bf16.msra.mxu2 %v4179_v29  ;;  %v5432_v29 = vld [vmem:[%s8698_s1 + $0x4c] sm:$0xf]  ;;  %v4467_v36 = vor.u32 %v5626_v28, %v4466_v27  ;;  %v4292_v5 = vld [vmem:[%s8698_s1 + $0x4f8] sm:$0xf0] }
  0xa3   :  { %1710 = vmatpush.bf16.msra.mxu3 %v4307_v32  ;;  %1669 = vmatmul.bf16.vlgmr.msra.gmra.mxu0 %v6224_v0  ;;  %v5464_v32 = vld [vmem:[%s8698_s1 + $0x14c] sm:$0xf]  ;;  %v3703_v38 = vor.u32 %v5432_v29, %v3700_v31  ;;  %v4420_v7 = vld [vmem:[%s8698_s1 + $0x5f8] sm:$0xf0] }
  0xa4   :  { %1717 = vmatpush.bf16.msrb.mxu0 %v4547_v33  ;;  %1683 = vmatmul.bf16.vlgmr.msra.gmra.mxu1 %v6279_v23  ;;  %v3828_v33 = vld [vmem:[%s8698_s1 + $0x158] sm:$0xf0]  ;;  %v5548_v1 = vld [vmem:[%s8698_s1 + $0x3ec] sm:$0xf] }
  0xa5   :  { %1731 = vmatpush.bf16.msrb.mxu1 %v3783_v34  ;;  %1697 = vmatmul.bf16.vlgmr.msra.gmra.mxu2 %v6429_v37  ;;  %v5496_v34 = vld [vmem:[%s8698_s1 + $0x24c] sm:$0xf]  ;;  %v3831_v39 = vor.u32 %v5464_v32, %v3828_v33  ;;  %v4167_v14 = vor.u32 %v5548_v1, %v4164_v2  ;;  %v4148_v18 = vld [vmem:[%s8698_s1 + $0x3d8] sm:$0xf0] }
  0xa6   :  { %1745 = vmatpush.bf16.msrb.mxu2 %v3911_v35  ;;  %1711 = vmatmul.bf16.vlgmr.msra.gmra.mxu3 %v6442_v42  ;;  %v3956_v35 = vld [vmem:[%s8698_s1 + $0x258] sm:$0xf0]  ;;  %v5580_v3 = vld [vmem:[%s8698_s1 + $0x4ec] sm:$0xf] }
  0xa7   :  { %1759 = vmatpush.bf16.msrb.mxu3 %v4039_v40  ;;  %v4450_v40 = vld [vmem:[%s8698_s1 + $0x628] sm:$0xf]  ;;  %v3959_v45 = vor.u32 %v5496_v34, %v3956_v35  ;;  %v5612_v6 = vld [vmem:[%s8698_s1 + $0x5ec] sm:$0xf]  ;;  %v4295_v15 = vor.u32 %v5580_v3, %v4292_v5  ;;  %v4276_v21 = vld [vmem:[%s8698_s1 + $0x4d8] sm:$0xf0] }
  0xa8   :  { %1718 = vmatpush.bf16.msrb.mxu0 %v4531_v48  ;;  %v3812_v48 = vld [vmem:[%s8698_s1 + $0x138] sm:$0xf0]  ;;  %v4451_v51 = vor.u32 %v5622_v43, %v4450_v40  ;;  %v4423_v16 = vor.u32 %v5612_v6, %v4420_v7  ;;  %v5576_v19 = vld [vmem:[%s8698_s1 + $0x4cc] sm:$0xf] }
  0xa9   :  { %1732 = vmatpush.bf16.msrb.mxu1 %v3767_v49  ;;  %v5492_v49 = vld [vmem:[%s8698_s1 + $0x22c] sm:$0xf]  ;;  %v3815_v55 = vor.u32 %v5460_v47, %v3812_v48  ;;  %v4279_v28 = vor.u32 %v5576_v19, %v4276_v21  ;;  %v4132_v31 = vld [vmem:[%s8698_s1 + $0x3b8] sm:$0xf0] }
  0xaa   :  { %1746 = vmatpush.bf16.msrb.mxu2 %v3895_v50  ;;  %v3940_v50 = vld [vmem:[%s8698_s1 + $0x238] sm:$0xf0]  ;;  %v5608_v22 = vld [vmem:[%s8698_s1 + $0x5cc] sm:$0xf] }
  0xab   :  { %1760 = vmatpush.bf16.msrb.mxu3 %v4023_v54  ;;  %v3687_v54 = vor.u32 %v5428_v44, %v3684_v46  ;;  %v3943_v60 = vor.u32 %v5492_v49, %v3940_v50  ;;  %v5572_v32 = vld [vmem:[%s8698_s1 + $0x4ac] sm:$0xf]  ;;  %v4260_v34 = vld [vmem:[%s8698_s1 + $0x4b8] sm:$0xf0]  ;;  %v7312_v2 = vpop.f32.mrf.mxu1 }
  0xac   :  { %1719 = vmatpush.bf16.msrb.mxu0 %v4515_v61  ;;  %v3796_v61 = vld [vmem:[%s8698_s1 + $0x118] sm:$0xf0]  ;;  %v5604_v35 = vld [vmem:[%s8698_s1 + $0x5ac] sm:$0xf]  ;;  %v4263_v43 = vor.u32 %v5572_v32, %v4260_v34 }
  0xad   :  { %1733 = vmatpush.bf16.msrb.mxu1 %v3751_v62  ;;  %v5488_v62 = vld [vmem:[%s8698_s1 + $0x20c] sm:$0xf]  ;;  %v3799_v9 = vor.u32 %v5456_v59, %v3796_v61  ;;  %v4372_v48 = vld [vmem:[%s8698_s1 + $0x598] sm:$0xf0] }
  0xae   :  { %1747 = vmatpush.bf16.msrb.mxu2 %v3879_v63  ;;  %v3924_v63 = vld [vmem:[%s8698_s1 + $0x218] sm:$0xf0]  ;;  %v5600_v47 = vld [vmem:[%s8698_s1 + $0x58c] sm:$0xf] }
  0xaf   :  { %1761 = vmatpush.bf16.msrb.mxu3 %v4007_v4  ;;  %v4435_v4 = vor.u32 %v5618_v53, %v4434_v52  ;;  %v5632_v49 = vld [vmem:[%s8698_s1 + $0x68c] sm:$0xf]  ;;  %v4500_v50 = vld [vmem:[%s8698_s1 + $0x698] sm:$0xf0]  ;;  %v4375_v53 = vor.u32 %v5600_v47, %v4372_v48  ;;  %v5677_v47 = vld [vmem:[%s8700_s3 + $0xec] sm:$0xf0] }
  0xb0   :  { %1720 = vmatpush.bf16.msrb.mxu0 %v4499_v10  ;;  %v5644_v10 = vld [vmem:[%s8698_s1 + $0x6ec] sm:$0xf]  ;;  %v4503_v58 = vor.u32 %v5632_v49, %v4500_v50  ;;  %v4228_v59 = vld [vmem:[%s8698_s1 + $0x478] sm:$0xf0]  ;;  %v4794_v49 = vld [vmem:[%s8700_s3 + $0x1e0] sm:$0xf] }
  0xb1   :  { %1734 = vmatpush.bf16.msrb.mxu1 %v3735_v12  ;;  %v4548_v12 = vld [vmem:[%s8698_s1 + $0x6f8] sm:$0xf0]  ;;  %v5564_v56 = vld [vmem:[%s8698_s1 + $0x46c] sm:$0xf]  ;;  %v5709_v50 = vld [vmem:[%s8700_s3 + $0x1ec] sm:$0xf0] }
  0xb2   :  { %1748 = vmatpush.bf16.msrb.mxu2 %v3863_v13  ;;  %v3927_v13 = vor.u32 %v5488_v62, %v3924_v63  ;;  %v4551_v20 = vor.u32 %v5644_v10, %v4548_v12  ;;  %v4356_v61 = vld [vmem:[%s8698_s1 + $0x578] sm:$0xf0]  ;;  %v7304_v62 = vpop.f32.mrf.mxu0  ;;  %v5628_v63 = vld [vmem:[%s8698_s1 + $0x66c] sm:$0xf] }
  0xb3   :  { %1762 = vmatpush.bf16.msrb.mxu3 %v3991_v17  ;;  %v5544_v17 = vld [vmem:[%s8698_s1 + $0x3cc] sm:$0xf]  ;;  %v4484_v1 = vld [vmem:[%s8698_s1 + $0x678] sm:$0xf0] }
  0xb4   :  { %1721 = vmatpush.bf16.msrb.mxu0 %v4483_v24  ;;  %v4404_v24 = vld [vmem:[%s8698_s1 + $0x5d8] sm:$0xf0]  ;;  %v4151_v27 = vor.u32 %v5544_v17, %v4148_v18  ;;  %v5528_v6 = vld [vmem:[%s8698_s1 + $0x34c] sm:$0xf] }
  0xb5   :  { %1735 = vmatpush.bf16.msrb.mxu1 %v3719_v25  ;;  %v5640_v25 = vld [vmem:[%s8698_s1 + $0x6cc] sm:$0xf]  ;;  %v4407_v29 = vor.u32 %v5608_v22, %v4404_v24  ;;  %v4084_v7 = vld [vmem:[%s8698_s1 + $0x358] sm:$0xf0]  ;;  %v7347_v22 = vpop.f32.mrf.mxu2 }
  0xb6   :  { %1749 = vmatpush.bf16.msrb.mxu2 %v3847_v26  ;;  %v4532_v26 = vld [vmem:[%s8698_s1 + $0x6d8] sm:$0xf0]  ;;  %v5592_v12 = vld [vmem:[%s8698_s1 + $0x54c] sm:$0xf] }
  0xb7   :  { %1763 = vmatpush.bf16.msrb.mxu3 %v3975_v30  ;;  %v5540_v30 = vld [vmem:[%s8698_s1 + $0x3ac] sm:$0xf]  ;;  %v4535_v33 = vor.u32 %v5640_v25, %v4532_v26  ;;  %v4212_v10 = vld [vmem:[%s8698_s1 + $0x458] sm:$0xf0] }
  0xb8   :  { %1722 = vmatpush.bf16.msrb.mxu0 %v4467_v36  ;;  %v4388_v36 = vld [vmem:[%s8698_s1 + $0x5b8] sm:$0xf0]  ;;  %v4135_v40 = vor.u32 %v5540_v30, %v4132_v31  ;;  %v5524_v19 = vld [vmem:[%s8698_s1 + $0x32c] sm:$0xf]  ;;  %v7367_v30 = vld [vmem:[%s8699_s2] sm:$0xf] }
  0xb9   :  { %1736 = vmatpush.bf16.msrb.mxu1 %v3703_v38  ;;  %v5636_v38 = vld [vmem:[%s8698_s1 + $0x6ac] sm:$0xf]  ;;  %v4391_v44 = vor.u32 %v5604_v35, %v4388_v36  ;;  %v4196_v25 = vld [vmem:[%s8698_s1 + $0x438] sm:$0xf0] }
  0xba   :  { %1750 = vmatpush.bf16.msrb.mxu2 %v3831_v39  ;;  %v4516_v39 = vld [vmem:[%s8698_s1 + $0x6b8] sm:$0xf0]  ;;  %v5556_v21 = vld [vmem:[%s8698_s1 + $0x42c] sm:$0xf] }
  0xbb   :  { %1764 = vmatpush.bf16.msrb.mxu3 %v3959_v45  ;;  %v4116_v45 = vld [vmem:[%s8698_s1 + $0x398] sm:$0xf0]  ;;  %v4519_v46 = vor.u32 %v5636_v38, %v4516_v39  ;;  %v5588_v26 = vld [vmem:[%s8698_s1 + $0x52c] sm:$0xf]  ;;  %v4199_v34 = vor.u32 %v5556_v21, %v4196_v25  ;;  %v4602_v21 = vld [vmem:[%s8700_s3 + $0x60] sm:$0xf] }
  0xbc   :  { %1723 = vmatpush.bf16.msrb.mxu0 %v4451_v51  ;;  %v5520_v32 = vld [vmem:[%s8698_s1 + $0x30c] sm:$0xf]  ;;  %v4052_v36 = vld [vmem:[%s8698_s1 + $0x318] sm:$0xf0]  ;;  %v4730_v25 = vld [vmem:[%s8700_s3 + $0x160] sm:$0xf] }
  0xbd   :  { %1737 = vmatpush.bf16.msrb.mxu1 %v3687_v54  ;;  %v5532_v54 = vld [vmem:[%s8698_s1 + $0x36c] sm:$0xf]  ;;  %v4180_v39 = vld [vmem:[%s8698_s1 + $0x418] sm:$0xf0]  ;;  %v4055_v48 = vor.u32 %v5520_v32, %v4052_v36  ;;  %v4714_v36 = vld [vmem:[%s8700_s3 + $0x140] sm:$0xf] }
  0xbe   :  { %1751 = vmatpush.bf16.msrb.mxu2 %v3815_v55  ;;  %v4100_v55 = vld [vmem:[%s8698_s1 + $0x378] sm:$0xf0]  ;;  %v5552_v38 = vld [vmem:[%s8698_s1 + $0x40c] sm:$0xf] }
  0xbf   :  { %1765 = vmatpush.bf16.msrb.mxu3 %v3943_v60  ;;  %v5596_v60 = vld [vmem:[%s8698_s1 + $0x56c] sm:$0xf]  ;;  %v4103_v3 = vor.u32 %v5532_v54, %v4100_v55 }
  0xc0   :  { %1724 = vmatpush.bf16.msrb.mxu0 %v4435_v4  ;;  %v4231_v4 = vor.u32 %v5564_v56, %v4228_v59  ;;  %v4359_v5 = vor.u32 %v5596_v60, %v4356_v61  ;;  %v4795_v56 = vor.u32 %v5709_v50, %v4794_v49  ;;  %v5673_v59 = vld [vmem:[%s8700_s3 + $0xcc] sm:$0xf0]  ;;  %v1476_v60 = vpop.f32.mrf.mxu2  ;;  %v4778_v61 = vld [vmem:[%s8700_s3 + $0x1c0] sm:$0xf]  ;;  %v274_v50 = vperm.slane %v7367_v30, 1 }
  0xc1   :  { %1738 = vmatpush.bf16.msrb.mxu1 %v3671_v8  ;;  %v5560_v8 = vld [vmem:[%s8698_s1 + $0x44c] sm:$0xf] }
  0xc2   :  { %1752 = vmatpush.bf16.msrb.mxu2 %v3799_v9  ;;  %v4487_v9 = vor.u32 %v5628_v63, %v4484_v1  ;;  %v4215_v17 = vor.u32 %v5560_v8, %v4212_v10  ;;  %v5705_v63 = vld [vmem:[%s8700_s3 + $0x1cc] sm:$0xf0] }
  0xc3   :  { %1766 = vmatpush.bf16.msrb.mxu3 %v3927_v13  ;;  %1725 = vmatmul.bf16.vlgmr.msrb.gmra.mxu0 %v6440_v41  ;;  %v4340_v13 = vld [vmem:[%s8698_s1 + $0x558] sm:$0xf0]  ;;  %v5669_v8 = vld [vmem:[%s8700_s3 + $0xac] sm:$0xf0] }
  0xc4   :  { %1773 = vmatpush.bf16.msra.mxu0 %v4167_v14  ;;  %1739 = vmatmul.bf16.vlgmr.msrb.gmra.mxu1 %v6210_v57  ;;  %v4244_v57 = vld [vmem:[%s8698_s1 + $0x498] sm:$0xf0]  ;;  %v5624_v14 = vld [vmem:[%s8698_s1 + $0x64c] sm:$0xf]  ;;  %v4343_v18 = vor.u32 %v5592_v12, %v4340_v13 }
  0xc5   :  { %1787 = vmatpush.bf16.msra.mxu1 %v4295_v15  ;;  %1753 = vmatmul.bf16.vlgmr.msrb.gmra.mxu2 %v6252_v11  ;;  %v5536_v11 = vld [vmem:[%s8698_s1 + $0x38c] sm:$0xf]  ;;  %v4468_v15 = vld [vmem:[%s8698_s1 + $0x658] sm:$0xf0] }
  0xc6   :  { %1801 = vmatpush.bf16.msra.mxu2 %v4423_v16  ;;  %1767 = vmatmul.bf16.vlgmr.msrb.gmra.mxu3 %v6224_v0  ;;  %v5568_v0 = vld [vmem:[%s8698_s1 + $0x48c] sm:$0xf]  ;;  %v4119_v51 = vor.u32 %v5536_v11, %v4116_v45  ;;  %v4087_v16 = vor.u32 %v5528_v6, %v4084_v7  ;;  %v4471_v24 = vor.u32 %v5624_v14, %v4468_v15  ;;  %v4308_v11 = vld [vmem:[%s8698_s1 + $0x518] sm:$0xf0]  ;;  %v4634_v7 = vld [vmem:[%s8700_s3 + $0xa0] sm:$0xf] }
  0xc7   :  { %1815 = vmatpush.bf16.msra.mxu3 %v4551_v20  ;;  %v4247_v52 = vor.u32 %v5568_v0, %v4244_v57  ;;  %v4068_v20 = vld [vmem:[%s8698_s1 + $0x338] sm:$0xf0]  ;;  %v5616_v45 = vld [vmem:[%s8698_s1 + $0x60c] sm:$0xf]  ;;  %v7390_v0 = vpop.f32.mrf.mxu3  ;;  %v4666_v57 = vld [vmem:[%s8700_s3 + $0xe0] sm:$0xf]  ;;  %v4779_v6 = vor.u32 %v5705_v63, %v4778_v61  ;;  %v4635_v14 = vor.u32 %v5669_v8, %v4634_v7 }
  0xc8   :  { %1774 = vmatpush.bf16.msra.mxu0 %v4151_v27  ;;  %v4324_v27 = vld [vmem:[%s8698_s1 + $0x538] sm:$0xf0]  ;;  %v4071_v31 = vor.u32 %v5524_v19, %v4068_v20  ;;  %v4667_v55 = vor.u32 %v5677_v47, %v4666_v57  ;;  %v5665_v15 = vld [vmem:[%s8700_s3 + $0x8c] sm:$0xf0]  ;;  %v4796_v7 = vld [vmem:[%s8700_s3 + $0x1f0] sm:$0xf0] }
  0xc9   :  { %1788 = vmatpush.bf16.msra.mxu1 %v4279_v28  ;;  %v5620_v28 = vld [vmem:[%s8698_s1 + $0x62c] sm:$0xf]  ;;  %v4327_v35 = vor.u32 %v5588_v26, %v4324_v27  ;;  %v5685_v57 = vld [vmem:[%s8700_s3 + $0x12c] sm:$0xf0] }
  0xca   :  { %1802 = vmatpush.bf16.msra.mxu2 %v4407_v29  ;;  %v4452_v29 = vld [vmem:[%s8698_s1 + $0x638] sm:$0xf0]  ;;  %v5741_v61 = vld [vmem:[%s8700_s3 + $0x2ec] sm:$0xf0] }
  0xcb   :  { %1816 = vmatpush.bf16.msra.mxu3 %v4535_v33  ;;  %v1448_v33 = vpop.f32.mrf.mxu0  ;;  %v5681_v63 = vld [vmem:[%s8700_s3 + $0x10c] sm:$0xf0] }
  0xcc   :  { %1775 = vmatpush.bf16.msra.mxu0 %v4135_v40  ;;  %v1462_v40 = vpop.f32.mrf.mxu1 }
  0xcd   :  { %1789 = vmatpush.bf16.msra.mxu1 %v4263_v43  ;;  %v4455_v43 = vor.u32 %v5620_v28, %v4452_v29 }
  0xce   :  { %1803 = vmatpush.bf16.msra.mxu2 %v4391_v44  ;;  %v5584_v44 = vld [vmem:[%s8698_s1 + $0x50c] sm:$0xf] }
  0xcf   :  { %1817 = vmatpush.bf16.msra.mxu3 %v4519_v46  ;;  %v4436_v46 = vld [vmem:[%s8698_s1 + $0x618] sm:$0xf0]  ;;  %v1490_v13 = vpop.f32.mrf.mxu3  ;;  %s5897_s1 = smov 8  }
  0xd0   :  { %1776 = vmatpush.bf16.msra.mxu0 %v4119_v51  ;;  %v273_v51 = vperm.slane %v7367_v30, 0  ;;  %v4439_v54 = vor.u32 %v5616_v45, %v4436_v46  ;;  %v5653_v45 = vld [vmem:[%s8700_s3 + $0x2c] sm:$0xf0]  ;;  %v4698_v46 = vld [vmem:[%s8700_s3 + $0x120] sm:$0xf] }
  0xd1   :  { %1790 = vmatpush.bf16.msra.mxu1 %v4247_v52  ;;  %v4183_v52 = vor.u32 %v5552_v38, %v4180_v39  ;;  %v5689_v38 = vld [vmem:[%s8700_s3 + $0x14c] sm:$0xf0] }
  0xd2   :  { %1804 = vmatpush.bf16.msra.mxu2 %v4375_v53  ;;  %v4311_v53 = vor.u32 %v5584_v44, %v4308_v11  ;;  %v1447_v1 = vadd.f32 %v7304_v62, %v273_v51  ;;  %v4715_v44 = vor.u32 %v5689_v38, %v4714_v36  ;;  %v4570_v11 = vld [vmem:[%s8700_s3 + $0x20] sm:$0xf] }
  0xd3   :  { %1818 = vmatpush.bf16.msra.mxu3 %v4503_v58  ;;  %v4650_v58 = vld [vmem:[%s8700_s3 + $0xc0] sm:$0xf] }
  0xd4   :  { %1777 = vmatpush.bf16.msra.mxu0 %v4103_v3  ;;  %v1449_v3 = vadd.f32 %v1448_v33, %v273_v51  ;;  %v1516_v62 = vpop.f32.mrf.mxu1  ;;  %v1461_v10 = vadd.f32 %v7312_v2, %v1447_v1  ;;  %v4746_v2 = vld [vmem:[%s8700_s3 + $0x180] sm:$0xf]  ;;  %v5675_v1 = vld [vmem:[%s8700_s3 + $0xe4] sm:$0xf] }
  0xd5   :  { %1791 = vmatpush.bf16.msra.mxu1 %v4231_v4  ;;  %v4651_v4 = vor.u32 %v5673_v59, %v4650_v58  ;;  %v4699_v58 = vor.u32 %v5685_v57, %v4698_v46  ;;  %v4682_v59 = vld [vmem:[%s8700_s3 + $0x100] sm:$0xf]  ;;  %v4748_v46 = vld [vmem:[%s8700_s3 + $0x190] sm:$0xf0] }
  0xd6   :  { %1805 = vmatpush.bf16.msra.mxu2 %v4359_v5  ;;  %v1502_v5 = vpop.f32.mrf.mxu0  ;;  %v1463_v12 = vadd.f32 %v1462_v40, %v1449_v3  ;;  %v4668_v3 = vld [vmem:[%s8700_s3 + $0xf0] sm:$0xf0]  ;;  %v4874_v38 = vld [vmem:[%s8700_s3 + $0x280] sm:$0xf] }
  0xd7   :  { %1819 = vmatpush.bf16.msra.mxu3 %v4487_v9  ;;  %v4762_v9 = vld [vmem:[%s8700_s3 + $0x1a0] sm:$0xf]  ;;  %v1544_v29 = vpop.f32.mrf.mxu3 }
  0xd8   :  { %1778 = vmatpush.bf16.msra.mxu0 %v4087_v16  ;;  %v1475_v16 = vadd.f32 %v7347_v22, %v1461_v10  ;;  %v5693_v22 = vld [vmem:[%s8700_s3 + $0x16c] sm:$0xf0]  ;;  %v1545_v8 = vadd.f32 %v1544_v29, %v274_v50  ;;  %v4671_v10 = vor.u32 %v5675_v1, %v4668_v3  ;;  %v4636_v29 = vld [vmem:[%s8700_s3 + $0xb0] sm:$0xf0] }
  0xd9   :  { %1792 = vmatpush.bf16.msra.mxu1 %v4215_v17  ;;  %v1477_v17 = vadd.f32 %v1476_v60, %v1463_v12  ;;  %v4731_v33 = vor.u32 %v5693_v22, %v4730_v25  ;;  %v4922_v60 = vld [vmem:[%s8700_s3 + $0x2e0] sm:$0xf]  ;;  %v5733_v25 = vld [vmem:[%s8700_s3 + $0x2ac] sm:$0xf0] }
  0xda   :  { %1806 = vmatpush.bf16.msra.mxu2 %v4343_v18  ;;  %v1530_v18 = vpop.f32.mrf.mxu2  ;;  %v1489_v26 = vadd.f32 %v7390_v0, %v1475_v16  ;;  %v4906_v12 = vld [vmem:[%s8700_s3 + $0x2c0] sm:$0xf]  ;;  %v4780_v16 = vld [vmem:[%s8700_s3 + $0x1d0] sm:$0xf0] }
  0xdb   :  { %1820 = vmatpush.bf16.msra.mxu3 %v4471_v24  ;;  %v5661_v24 = vld [vmem:[%s8700_s3 + $0x6c] sm:$0xf0]  ;;  %v1491_v27 = vadd.f32 %v1490_v13, %v1477_v17 }
  0xdc   :  { %1779 = vmatpush.bf16.msra.mxu0 %v4071_v31  ;;  %v1518_v31 = vpop.f32.mrf.mxu1  ;;  %v4603_v32 = vor.u32 %v5661_v24, %v4602_v21  ;;  %v1503_v39 = vadd.f32 %v1502_v5, %v1489_v26  ;;  %v4890_v24 = vld [vmem:[%s8700_s3 + $0x2a0] sm:$0xf] }
  0xdd   :  { %1793 = vmatpush.bf16.msra.mxu1 %v4199_v34  ;;  %v4586_v34 = vld [vmem:[%s8700_s3 + $0x40] sm:$0xf] }
  0xde   :  { %1807 = vmatpush.bf16.msra.mxu2 %v4327_v35  ;;  %v1504_v28 = vpop.f32.mrf.mxu0  ;;  %v5657_v35 = vld [vmem:[%s8700_s3 + $0x4c] sm:$0xf0]  ;;  %v1517_v47 = vadd.f32 %v1516_v62, %v1503_v39 }
  0xdf   :  { %1821 = vmatpush.bf16.msra.mxu3 %v4455_v43  ;;  %v1505_v40 = vadd.f32 %v1504_v28, %v1491_v27  ;;  %v4587_v43 = vor.u32 %v5657_v35, %v4586_v34  ;;  %v5667_v28 = vld [vmem:[%s8700_s3 + $0xa4] sm:$0xf]  ;;  %v4764_v34 = vld [vmem:[%s8700_s3 + $0x1b0] sm:$0xf0]  ;;  %v5729_v39 = vld [vmem:[%s8700_s3 + $0x28c] sm:$0xf0] }
  0xe0   :  { %1780 = vmatpush.bf16.msra.mxu0 %v4055_v48  ;;  %v1531_v5 = vadd.f32 %v1530_v18, %v1517_v47  ;;  %v4639_v36 = vor.u32 %v5667_v28, %v4636_v29  ;;  %v5679_v28 = vld [vmem:[%s8700_s3 + $0x104] sm:$0xf]  ;;  %v4810_v29 = vld [vmem:[%s8700_s3 + $0x200] sm:$0xf] }
  0xe1   :  { %1794 = vmatpush.bf16.msra.mxu1 %v4183_v52  ;;  %v1519_v48 = vadd.f32 %v1518_v31, %v1505_v40  ;;  %v4571_v52 = vor.u32 %v5653_v45, %v4570_v11  ;;  %v4891_v31 = vor.u32 %v5733_v25, %v4890_v24  ;;  %v4620_v11 = vld [vmem:[%s8700_s3 + $0x90] sm:$0xf0]  ;;  %v4875_v45 = vor.u32 %v5729_v39, %v4874_v38 }
  0xe2   :  { %1808 = vmatpush.bf16.msra.mxu2 %v4311_v53  ;;  %v1532_v0 = vpop.f32.mrf.mxu2  ;;  %v4554_v53 = vld [vmem:[%s8700_s3] sm:$0xf]  ;;  %v4700_v24 = vld [vmem:[%s8700_s3 + $0x130] sm:$0xf0] }
  0xe3   :  { %1822 = vmatpush.bf16.msra.mxu3 %v4439_v54  ;;  %1781 = vmatmul.bf16.vlgmr.msra.gmra.mxu0 %v6279_v23  ;;  %v5701_v23 = vld [vmem:[%s8700_s3 + $0x1ac] sm:$0xf0]  ;;  %v4924_v38 = vld [vmem:[%s8700_s3 + $0x2f0] sm:$0xf0] }
  0xe4   :  { %2619 = vmatpush.bf16.msrb.mxu0 %v4667_v55  ;;  %1795 = vmatmul.bf16.vlgmr.msra.gmra.mxu1 %v6429_v37  ;;  %v4763_v37 = vor.u32 %v5701_v23, %v4762_v9  ;;  %v1572_v51 = vpop.f32.mrf.mxu1  ;;  %v5649_v54 = vld [vmem:[%s8700_s3 + $0xc] sm:$0xf0]  ;;  %v1533_v55 = vadd.f32 %v1532_v0, %v1519_v48  ;;  %v4683_v23 = vor.u32 %v5681_v63, %v4682_v59  ;;  %v5695_v0 = vld [vmem:[%s8700_s3 + $0x184] sm:$0xf]  ;;  %v4684_v39 = vld [vmem:[%s8700_s3 + $0x110] sm:$0xf0] }
  0xe5   :  { %2633 = vmatpush.bf16.msrb.mxu1 %v4795_v56  ;;  %1809 = vmatmul.bf16.vlgmr.msra.gmra.mxu2 %v6442_v42  ;;  %v4618_v42 = vld [vmem:[%s8700_s3 + $0x80] sm:$0xf]  ;;  %v1546_v56 = vpop.f32.mrf.mxu3  ;;  %v4555_v62 = vor.u32 %v5649_v54, %v4554_v53  ;;  %v4751_v53 = vor.u32 %v5695_v0, %v4748_v46  ;;  %v5691_v59 = vld [vmem:[%s8700_s3 + $0x164] sm:$0xf]  ;;  %v5710_v0 = vld [vmem:[%s8700_s3 + $0x1f4] sm:$0xf0] }
  0xe6   :  { %1823 = vmatmul.bf16.vlgmr.msra.gmra.mxu3 %v6440_v41  ;;  %v5697_v41 = vld [vmem:[%s8700_s3 + $0x18c] sm:$0xf0]  ;;  %v4619_v19 = vor.u32 %v5665_v15, %v4618_v42  ;;  %v1558_v49 = vpop.f32.mrf.mxu0  ;;  %v1833_v9 = vmax.f32 %v1533_v55, 0.0  ;;  %v1829_v15 = vmax.f32 %v1531_v5, 0.0  ;;  %v1547_v22 = vadd.f32 %v1546_v56, %v274_v50  ;;  %v4858_v50 = vld [vmem:[%s8700_s3 + $0x260] sm:$0xf] }
  0xe7   :  { %v4747_v20 = vor.u32 %v5697_v41, %v4746_v2  ;;  %v5737_v42 = vld [vmem:[%s8700_s3 + $0x2cc] sm:$0xf0]  ;;  %v5703_v41 = vld [vmem:[%s8700_s3 + $0x1c4] sm:$0xf]  ;;  %v1559_v18 = vadd.f32 %v1558_v49, %v1545_v8  ;;  %v4604_v56 = vld [vmem:[%s8700_s3 + $0x70] sm:$0xf0] }
  0xe8   :  { %2620 = vmatpush.bf16.msrb.mxu0 %v4651_v4  ;;  %v4923_v4 = vor.u32 %v5741_v61, %v4922_v60  ;;  %v4907_v17 = vor.u32 %v5737_v42, %v4906_v12  ;;  %v4783_v27 = vor.u32 %v5703_v41, %v4780_v16  ;;  %v5659_v55 = vld [vmem:[%s8700_s3 + $0x64] sm:$0xf]  ;;  %v4732_v60 = vld [vmem:[%s8700_s3 + $0x170] sm:$0xf0]  ;;  %v4842_v5 = vld [vmem:[%s8700_s3 + $0x240] sm:$0xf] }
  0xe9   :  { %2634 = vmatpush.bf16.msrb.mxu1 %v4779_v6  ;;  %v5707_v6 = vld [vmem:[%s8700_s3 + $0x1e4] sm:$0xf]  ;;  %v1573_v35 = vadd.f32 %v1572_v51, %v1559_v18  ;;  %v5725_v51 = vld [vmem:[%s8700_s3 + $0x26c] sm:$0xf0]  ;;  %v4607_v3 = vor.u32 %v5659_v55, %v4604_v56  ;;  %v4735_v8 = vor.u32 %v5691_v59, %v4732_v60  ;;  %v4826_v42 = vld [vmem:[%s8700_s3 + $0x220] sm:$0xf] }
  0xea   :  { %2647 = vmatpush.bf16.msrb.mxu2 %v4923_v4  ;;  %v4799_v13 = vor.u32 %v5707_v6, %v4796_v7  ;;  %v1586_v2 = vpop.f32.mrf.mxu2  ;;  %v5655_v4 = vld [vmem:[%s8700_s3 + $0x44] sm:$0xf]  ;;  %v5721_v6 = vld [vmem:[%s8700_s3 + $0x24c] sm:$0xf0]  ;;  %v4572_v18 = vld [vmem:[%s8700_s3 + $0x30] sm:$0xf0] }
  0xeb   :  { %v1587_v57 = vadd.f32 %v1586_v2, %v1573_v35  ;;  %v5050_v59 = vld [vmem:[%s8700_s3 + $0x3e0] sm:$0xf]  ;;  %v5773_v60 = vld [vmem:[%s8700_s3 + $0x3ec] sm:$0xf0] }
  0xec   :  { %2621 = vmatpush.bf16.msrb.mxu0 %v4635_v14  ;;  %v5671_v14 = vld [vmem:[%s8700_s3 + $0xc4] sm:$0xf]  ;;  %v1574_v26 = vpop.f32.mrf.mxu1 }
  0xed   :  { %2635 = vmatpush.bf16.msrb.mxu1 %v4763_v37  ;;  %v4652_v37 = vld [vmem:[%s8700_s3 + $0xd0] sm:$0xf0] }
  0xee   :  { %v4655_v21 = vor.u32 %v5671_v14, %v4652_v37  ;;  %2648 = vmatpush.bf16.msrb.mxu2 %v4907_v17  ;;  %v5651_v17 = vld [vmem:[%s8700_s3 + $0x24] sm:$0xf] }
  0xf0   :  { %2622 = vmatpush.bf16.msrb.mxu0 %v4619_v19  ;;  %v7537_v19 = vpack.c.bf16 %v1833_v9, %v1829_v15  ;;  %v5687_v9 = vld [vmem:[%s8700_s3 + $0x144] sm:$0xf]  ;;  %v5717_v15 = vld [vmem:[%s8700_s3 + $0x22c] sm:$0xf0] }
  0xf1   :  { %2636 = vmatpush.bf16.msrb.mxu1 %v4747_v20  ;;  %v1560_v20 = vpop.f32.mrf.mxu0 }
  0xf2   :  { %v1561_v40 = vadd.f32 %v1560_v20, %v1547_v22  ;;  %2649 = vmatpush.bf16.msrb.mxu2 %v4891_v31  ;;  %v1588_v47 = vpop.f32.mrf.mxu2  ;;  %v4827_v20 = vor.u32 %v5717_v15, %v4826_v42  ;;  %v5647_v22 = vld [vmem:[%s8700_s3 + $0x4] sm:$0xf]  ;;  %v5713_v31 = vld [vmem:[%s8700_s3 + $0x20c] sm:$0xf0]  ;;  %v4754_v42 = vld [vmem:[%s8700_s3 + $0x188] sm:$0xf] }
  0xf3   :  { %v4811_v35 = vor.u32 %v5713_v31, %v4810_v29  ;;  %v5698_v15 = vld [vmem:[%s8700_s3 + $0x194] sm:$0xf0] }
  0xf4   :  { %2623 = vmatpush.bf16.msrb.mxu0 %v4603_v32  ;;  %v1600_v32 = vpop.f32.mrf.mxu3 }
  0xf5   :  { %2637 = vmatpush.bf16.msrb.mxu1 %v4731_v33  ;;  %v5699_v33 = vld [vmem:[%s8700_s3 + $0x1a4] sm:$0xf]  ;;  %v1601_v61 = vadd.f32 %v1600_v32, %v1587_v57  ;;  %v4687_v57 = vor.u32 %v5679_v28, %v4684_v39  ;;  %v5694_v28 = vld [vmem:[%s8700_s3 + $0x174] sm:$0xf0] }
  0xf6   :  { %2650 = vmatpush.bf16.msrb.mxu2 %v4875_v45  ;;  %v4802_v45 = vld [vmem:[%s8700_s3 + $0x1e8] sm:$0xf]  ;;  %v5658_v39 = vld [vmem:[%s8700_s3 + $0x54] sm:$0xf0] }
  0xf8   :  { %2624 = vmatpush.bf16.msrb.mxu0 %v4587_v43  ;;  %v4767_v43 = vor.u32 %v5699_v33, %v4764_v34 }
  0xf9   :  { %2638 = vmatpush.bf16.msrb.mxu1 %v4715_v44  ;;  %v5663_v44 = vld [vmem:[%s8700_s3 + $0x84] sm:$0xf] }
  0xfa   :  { %v4623_v49 = vor.u32 %v5663_v44, %v4620_v11 }
  0xfc   :  { %2625 = vmatpush.bf16.msrb.mxu0 %v4571_v52  ;;  %v1575_v52 = vadd.f32 %v1574_v26, %v1561_v40  ;;  %v1602_v1 = vpop.f32.mrf.mxu3  ;;  %v4556_v26 = vld [vmem:[%s8700_s3 + $0x10] sm:$0xf0]  ;;  %v4674_v40 = vld [vmem:[%s8700_s3 + $0xe8] sm:$0xf] }
  0xfd   :  { %2639 = vmatpush.bf16.msrb.mxu1 %v4699_v58  ;;  %v4859_v58 = vor.u32 %v5725_v51, %v4858_v50  ;;  %v4559_v46 = vor.u32 %v5647_v22, %v4556_v26  ;;  %v4658_v50 = vld [vmem:[%s8700_s3 + $0xc8] sm:$0xf]  ;;  %v5674_v51 = vld [vmem:[%s8700_s3 + $0xd4] sm:$0xf0]  ;;  %v5723_v22 = vld [vmem:[%s8700_s3 + $0x264] sm:$0xf] }
  0xfe   :  { %v1589_v63 = vadd.f32 %v1588_v47, %v1575_v52  ;;  %v4908_v52 = vld [vmem:[%s8700_s3 + $0x2d0] sm:$0xf0]  ;;  %v4659_v56 = vor.u32 %v5674_v51, %v4658_v50  ;;  %v5654_v50 = vld [vmem:[%s8700_s3 + $0x34] sm:$0xf0] }
  0xff   :  { %2651 = vmatpush.bf16.msrb.mxu2 %v4859_v58  ;;  %v4642_v58 = vld [vmem:[%s8700_s3 + $0xa8] sm:$0xf]  ;;  %v4860_v26 = vld [vmem:[%s8700_s3 + $0x270] sm:$0xf0] }
 0x100   :  { %2626 = vmatpush.bf16.msrb.mxu0 %v4555_v62  ;;  %v1614_v48 = vpop.f32.mrf.mxu0  ;;  %v4588_v62 = vld [vmem:[%s8700_s3 + $0x50] sm:$0xf0]  ;;  %v1603_v12 = vadd.f32 %v1602_v1, %v1589_v63  ;;  %v5670_v63 = vld [vmem:[%s8700_s3 + $0xb4] sm:$0xf0]  ;;  %v5051_v1 = vor.u32 %v5773_v60, %v5050_v59  ;;  %v4863_v29 = vor.u32 %v5723_v22, %v4860_v26  ;;  %v4562_v60 = vld [vmem:[%s8700_s3 + $0x8] sm:$0xf] }
 0x101   :  { %2640 = vmatpush.bf16.msrb.mxu1 %v4683_v23  ;;  %v1628_v54 = vpop.f32.mrf.mxu1  ;;  %v1615_v7 = vadd.f32 %v1614_v48, %v1601_v61  ;;  %v4716_v23 = vld [vmem:[%s8700_s3 + $0x150] sm:$0xf0]  ;;  %v4591_v14 = vor.u32 %v5655_v4, %v4588_v62  ;;  %v5735_v48 = vld [vmem:[%s8700_s3 + $0x2c4] sm:$0xf]  ;;  %v5034_v62 = vld [vmem:[%s8700_s3 + $0x3c0] sm:$0xf] }
 0x102   :  { %v4719_v37 = vor.u32 %v5687_v9, %v4716_v23  ;;  %v4911_v55 = vor.u32 %v5735_v48, %v4908_v52  ;;  %v4892_v4 = vld [vmem:[%s8700_s3 + $0x2b0] sm:$0xf0]  ;;  %2661 = vmatpush.bf16.msrb.mxu3 %v5051_v1  ;;  %v5769_v9 = vld [vmem:[%s8700_s3 + $0x3cc] sm:$0xf0]  ;;  %v5727_v23 = vld [vmem:[%s8700_s3 + $0x284] sm:$0xf] }
 0x103   :  { %2627 = vmatmul.bf16.vlgmr.msrb.gmra.mxu0 %v7537_v19  ;;  %v1629_v2 = vadd.f32 %v1628_v54, %v1615_v7  ;;  %v5706_v54 = vld [vmem:[%s8700_s3 + $0x1d4] sm:$0xf0]  ;;  %v5757_v48 = vld [vmem:[%s8700_s3 + $0x36c] sm:$0xf0]  ;;  %v5715_v52 = vld [vmem:[%s8700_s3 + $0x224] sm:$0xf] }
 0x104   :  { %2675 = vmatpush.bf16.msra.mxu0 %v4671_v10  ;;  %v4843_v10 = vor.u32 %v5721_v6, %v4842_v5  ;;  %v4770_v5 = vld [vmem:[%s8700_s3 + $0x1a8] sm:$0xf]  ;;  %v5702_v6 = vld [vmem:[%s8700_s3 + $0x1b4] sm:$0xf0]  ;;  %v4788_v22 = vld [vmem:[%s8700_s3 + $0x1d8] sm:$0xf0] }
 0x105   :  { %2689 = vmatpush.bf16.msra.mxu1 %v4799_v13  ;;  %v1830_v32 = vmax.f32 %v1629_v2, 0.0  ;;  %v4690_v1 = vld [vmem:[%s8700_s3 + $0x108] sm:$0xf] }
 0x106   :  { %2652 = vmatpush.bf16.msrb.mxu2 %v4843_v10  ;;  %v4771_v10 = vor.u32 %v5702_v6, %v4770_v5  ;;  %v5753_v5 = vld [vmem:[%s8700_s3 + $0x34c] sm:$0xf0]  ;;  %v5711_v6 = vld [vmem:[%s8700_s3 + $0x204] sm:$0xf] }
 0x108   :  { %2676 = vmatpush.bf16.msra.mxu0 %v4655_v21  ;;  %v1616_v13 = vpop.f32.mrf.mxu0  ;;  %v5683_v21 = vld [vmem:[%s8700_s3 + $0x124] sm:$0xf] }
 0x109   :  { %2690 = vmatpush.bf16.msra.mxu1 %v4783_v27  ;;  %v1617_v41 = vadd.f32 %v1616_v13, %v1603_v12  ;;  %v1630_v16 = vpop.f32.mrf.mxu1  ;;  %v4575_v27 = vor.u32 %v5651_v17, %v4572_v18  ;;  %v4703_v34 = vor.u32 %v5683_v21, %v4700_v24  ;;  %v4626_v12 = vld [vmem:[%s8700_s3 + $0x88] sm:$0xf]  ;;  %v5666_v13 = vld [vmem:[%s8700_s3 + $0x94] sm:$0xf0]  ;;  %v5018_v17 = vld [vmem:[%s8700_s3 + $0x3a0] sm:$0xf]  ;;  %v4755_v21 = vor.u32 %v5698_v15, %v4754_v42 }
 0x10a   :  { %2653 = vmatpush.bf16.msrb.mxu2 %v4827_v20  ;;  %v5765_v18 = vld [vmem:[%s8700_s3 + $0x3ac] sm:$0xf0]  ;;  %v7745_v20 = vpop.f32.mrf.mxu2  ;;  %v5662_v24 = vld [vmem:[%s8700_s3 + $0x74] sm:$0xf0]  ;;  %v4954_v15 = vld [vmem:[%s8700_s3 + $0x320] sm:$0xf] }
 0x10b   :  { %v1631_v25 = vadd.f32 %v1630_v16, %v1617_v41  ;;  %v4627_v41 = vor.u32 %v5666_v13, %v4626_v12  ;;  %v4610_v16 = vld [vmem:[%s8700_s3 + $0x68] sm:$0xf]  ;;  %v5708_v13 = vld [vmem:[%s8700_s3 + $0x1ec] sm:$0xf] }
 0x10c   :  { %2677 = vmatpush.bf16.msra.mxu0 %v4639_v36  ;;  %v5739_v36 = vld [vmem:[%s8700_s3 + $0x2e4] sm:$0xf]  ;;  %v4611_v31 = vor.u32 %v5662_v24, %v4610_v16 }
 0x10d   :  { %2691 = vmatpush.bf16.msra.mxu1 %v4767_v43  ;;  %v1834_v33 = vmax.f32 %v1631_v25, 0.0  ;;  %v5678_v43 = vld [vmem:[%s8700_s3 + $0xf4] sm:$0xf0]  ;;  %v4927_v44 = vor.u32 %v5739_v36, %v4924_v38  ;;  %v5019_v25 = vor.u32 %v5765_v18, %v5018_v17  ;;  %v4594_v38 = vld [vmem:[%s8700_s3 + $0x48] sm:$0xf] }
 0x10e   :  { %v4675_v47 = vor.u32 %v5678_v43, %v4674_v40  ;;  %2654 = vmatpush.bf16.msrb.mxu2 %v4811_v35  ;;  %v7771_v35 = vpop.f32.mrf.mxu3  ;;  %v4844_v43 = vld [vmem:[%s8700_s3 + $0x250] sm:$0xf0] }
 0x10f   :  { %v7660_v11 = vpack.c.bf16 %v1834_v33, %v1830_v32  ;;  %v5002_v32 = vld [vmem:[%s8700_s3 + $0x380] sm:$0xf]  ;;  %v5761_v33 = vld [vmem:[%s8700_s3 + $0x38c] sm:$0xf0] }
 0x110   :  { %2678 = vmatpush.bf16.msra.mxu0 %v4623_v49  ;;  %v4803_v49 = vor.u32 %v5710_v0, %v4802_v45  ;;  %v5003_v40 = vor.u32 %v5761_v33, %v5002_v32  ;;  %v5690_v45 = vld [vmem:[%s8700_s3 + $0x154] sm:$0xf0] }
 0x111   :  { %2692 = vmatpush.bf16.msra.mxu1 %v4751_v53  ;;  %v4786_v53 = vld [vmem:[%s8700_s3 + $0x1c8] sm:$0xf] }
 0x112   :  { %2641 = vmatmul.bf16.vlgmr.msrb.gmra.mxu1 %v7660_v11  ;;  %2703 = vmatpush.bf16.msra.mxu2 %v4927_v44  ;;  %v4787_v61 = vor.u32 %v5706_v54, %v4786_v53  ;;  %v4722_v44 = vld [vmem:[%s8700_s3 + $0x148] sm:$0xf]  ;;  %v4828_v53 = vld [vmem:[%s8700_s3 + $0x230] sm:$0xf0]  ;;  %v1644_v59 = vpop.f32.mrf.mxu2 }
 0x113   :  { %v4706_v54 = vld [vmem:[%s8700_s3 + $0x128] sm:$0xf] }
 0x114   :  { %2679 = vmatpush.bf16.msra.mxu0 %v4607_v3  ;;  %v5731_v3 = vld [vmem:[%s8700_s3 + $0x2a4] sm:$0xf] }
 0x115   :  { %2693 = vmatpush.bf16.msra.mxu1 %v4735_v8  ;;  %v4895_v7 = vor.u32 %v5731_v3, %v4892_v4  ;;  %v4643_v8 = vor.u32 %v5670_v63, %v4642_v58  ;;  %v275_v58 = vperm.slane %v7367_v30, 2  ;;  %v5650_v63 = vld [vmem:[%s8700_s3 + $0x14] sm:$0xf0]  ;;  %v4970_v30 = vld [vmem:[%s8700_s3 + $0x340] sm:$0xf] }
 0x116   :  { %2704 = vmatpush.bf16.msra.mxu2 %v4911_v55  ;;  %v5686_v55 = vld [vmem:[%s8700_s3 + $0x134] sm:$0xf0]  ;;  %v1658_v12 = vpop.f32.mrf.mxu3  ;;  %v4563_v42 = vor.u32 %v5650_v63, %v4562_v60  ;;  %v5020_v63 = vld [vmem:[%s8700_s3 + $0x3b0] sm:$0xf0] }
 0x117   :  { %v4707_v4 = vor.u32 %v5686_v55, %v4706_v54  ;;  %v5696_v54 = vld [vmem:[%s8700_s3 + $0x18c] sm:$0xf]  ;;  %v4756_v55 = vld [vmem:[%s8700_s3 + $0x198] sm:$0xf0] }
 0x118   :  { %2680 = vmatpush.bf16.msra.mxu0 %v4591_v14  ;;  %v5035_v14 = vor.u32 %v5769_v9, %v5034_v62  ;;  %v5676_v62 = vld [vmem:[%s8700_s3 + $0xec] sm:$0xf]  ;;  %v4676_v9 = vld [vmem:[%s8700_s3 + $0xf8] sm:$0xf0] }
 0x119   :  { %2694 = vmatpush.bf16.msra.mxu1 %v4719_v37  ;;  %v4876_v37 = vld [vmem:[%s8700_s3 + $0x290] sm:$0xf0]  ;;  %v4679_v16 = vor.u32 %v5676_v62, %v4676_v9 }
 0x11a   :  { %2705 = vmatpush.bf16.msra.mxu2 %v4895_v7  ;;  %v4879_v2 = vor.u32 %v5727_v23, %v4876_v37  ;;  %2662 = vmatpush.bf16.msrb.mxu3 %v5035_v14  ;;  %v4812_v7 = vld [vmem:[%s8700_s3 + $0x210] sm:$0xf0]  ;;  %v4971_v23 = vor.u32 %v5753_v5, %v4970_v30  ;;  %v4804_v14 = vld [vmem:[%s8700_s3 + $0x1f8] sm:$0xf0]  ;;  %v1643_v37 = vadd.f32 %v7745_v20, %v275_v58  ;;  %v5672_v20 = vld [vmem:[%s8700_s3 + $0xcc] sm:$0xf] }
 0x11b   :  { %v4807_v18 = vor.u32 %v5708_v13, %v4804_v14  ;;  %v5660_v30 = vld [vmem:[%s8700_s3 + $0x6c] sm:$0xf] }
 0x11c   :  { %2681 = vmatpush.bf16.msra.mxu0 %v4575_v27  ;;  %v4738_v27 = vld [vmem:[%s8700_s3 + $0x168] sm:$0xf]  ;;  %v1657_v26 = vadd.f32 %v7771_v35, %v1643_v37  ;;  %v5052_v35 = vld [vmem:[%s8700_s3 + $0x3f0] sm:$0xf0]  ;;  %v5656_v37 = vld [vmem:[%s8700_s3 + $0x4c] sm:$0xf] }
 0x11d   :  { %2695 = vmatpush.bf16.msra.mxu1 %v4703_v34  ;;  %v5719_v34 = vld [vmem:[%s8700_s3 + $0x244] sm:$0xf]  ;;  %v4739_v36 = vor.u32 %v5694_v28, %v4738_v27  ;;  %v1645_v27 = vadd.f32 %v1644_v59, %v275_v58  ;;  %v4938_v28 = vld [vmem:[%s8700_s3 + $0x300] sm:$0xf] }
 0x11e   :  { %2706 = vmatpush.bf16.msra.mxu2 %v4879_v2  ;;  %2663 = vmatpush.bf16.msrb.mxu3 %v5019_v25  ;;  %v4847_v0 = vor.u32 %v5719_v34, %v4844_v43  ;;  %v5749_v2 = vld [vmem:[%s8700_s3 + $0x32c] sm:$0xf0]  ;;  %v5704_v25 = vld [vmem:[%s8700_s3 + $0x1cc] sm:$0xf]  ;;  %v5771_v34 = vld [vmem:[%s8700_s3 + $0x3e4] sm:$0xf] }
 0x11f   :  { %v4955_v17 = vor.u32 %v5749_v2, %v4954_v15  ;;  %v5055_v43 = vor.u32 %v5771_v34, %v5052_v35  ;;  %v4930_v34 = vld [vmem:[%s8700_s3 + $0x2e8] sm:$0xf]  ;;  %v5742_v35 = vld [vmem:[%s8700_s3 + $0x2f4] sm:$0xf0] }
 0x120   :  { %2682 = vmatpush.bf16.msra.mxu0 %v4559_v46  ;;  %v4595_v46 = vor.u32 %v5658_v39, %v4594_v38  ;;  %v1670_v3 = vpop.f32.mrf.mxu0  ;;  %v5668_v38 = vld [vmem:[%s8700_s3 + $0xac] sm:$0xf]  ;;  %v4644_v39 = vld [vmem:[%s8700_s3 + $0xb8] sm:$0xf0] }
 0x121   :  { %2696 = vmatpush.bf16.msra.mxu1 %v4687_v57  ;;  %v4578_v57 = vld [vmem:[%s8700_s3 + $0x28] sm:$0xf]  ;;  %v1684_v24 = vpop.f32.mrf.mxu1 }
 0x122   :  { %2707 = vmatpush.bf16.msra.mxu2 %v4863_v29  ;;  %2664 = vmatpush.bf16.msrb.mxu3 %v5003_v40  ;;  %v5745_v29 = vld [vmem:[%s8700_s3 + $0x30c] sm:$0xf0]  ;;  %v5700_v40 = vld [vmem:[%s8700_s3 + $0x1ac] sm:$0xf] }
 0x123   :  { %2683 = vmatmul.bf16.vlgmr.msra.gmra.mxu0 %v7537_v19  ;;  %v4939_v33 = vor.u32 %v5745_v29, %v4938_v28 }
 0x124   :  { %2731 = vmatpush.bf16.msrb.mxu0 %v4675_v47  ;;  %2697 = vmatmul.bf16.vlgmr.msra.gmra.mxu1 %v7660_v11  ;;  %v4986_v47 = vld [vmem:[%s8700_s3 + $0x360] sm:$0xf] }
 0x125   :  { %2745 = vmatpush.bf16.msrb.mxu1 %v4803_v49  ;;  %v4723_v49 = vor.u32 %v5690_v45, %v4722_v44  ;;  %v4987_v51 = vor.u32 %v5757_v48, %v4986_v47  ;;  %v4772_v45 = vld [vmem:[%s8700_s3 + $0x1b8] sm:$0xf0]  ;;  %v1671_v47 = vadd.f32 %v1670_v3, %v1657_v26  ;;  %v5652_v26 = vld [vmem:[%s8700_s3 + $0x2c] sm:$0xf] }
 0x126   :  { %2708 = vmatpush.bf16.msra.mxu2 %v4847_v0  ;;  %v5767_v0 = vld [vmem:[%s8700_s3 + $0x3c4] sm:$0xf]  ;;  %v4612_v3 = vld [vmem:[%s8700_s3 + $0x78] sm:$0xf0] }
 0x127   :  { %2665 = vmatpush.bf16.msrb.mxu3 %v4987_v51  ;;  %v4775_v51 = vor.u32 %v5700_v40, %v4772_v45  ;;  %v5648_v45 = vld [vmem:[%s8700_s3 + $0xc] sm:$0xf] }
 0x128   :  { %2732 = vmatpush.bf16.msrb.mxu0 %v4659_v56  ;;  %v4831_v56 = vor.u32 %v5715_v52, %v4828_v53  ;;  %v1672_v44 = vpop.f32.mrf.mxu0  ;;  %v5664_v52 = vld [vmem:[%s8700_s3 + $0x8c] sm:$0xf]  ;;  %v4628_v53 = vld [vmem:[%s8700_s3 + $0x98] sm:$0xf0] }
 0x129   :  { %2746 = vmatpush.bf16.msrb.mxu1 %v4787_v61  ;;  %v4579_v61 = vor.u32 %v5654_v50, %v4578_v57  ;;  %v1659_v57 = vadd.f32 %v1658_v12, %v1645_v27  ;;  %v1712_v48 = vpop.f32.mrf.mxu3  ;;  %v1686_v59 = vpop.f32.mrf.mxu1  ;;  %v4631_v60 = vor.u32 %v5664_v52, %v4628_v53  ;;  %v5004_v12 = vld [vmem:[%s8700_s3 + $0x390] sm:$0xf0]  ;;  %v4580_v27 = vld [vmem:[%s8700_s3 + $0x38] sm:$0xf0] }
 0x12a   :  { %2709 = vmatpush.bf16.msra.mxu2 %v4831_v56  ;;  %v1685_v56 = vadd.f32 %v1684_v24, %v1671_v47  ;;  %v5680_v47 = vld [vmem:[%s8700_s3 + $0x10c] sm:$0xf] }
 0x12b   :  { %2666 = vmatpush.bf16.msrb.mxu3 %v4971_v23  ;;  %v1673_v58 = vadd.f32 %v1672_v44, %v1659_v57  ;;  %v4615_v23 = vor.u32 %v5660_v30, %v4612_v3  ;;  %v4931_v57 = vor.u32 %v5742_v35, %v4930_v34  ;;  %v4940_v30 = vld [vmem:[%s8700_s3 + $0x310] sm:$0xf0]  ;;  %v4932_v34 = vld [vmem:[%s8700_s3 + $0x2f8] sm:$0xf0] }
 0x12c   :  { %2733 = vmatpush.bf16.msrb.mxu0 %v4643_v8  ;;  %v5682_v8 = vld [vmem:[%s8700_s3 + $0x114] sm:$0xf0] }
 0x12d   :  { %2747 = vmatpush.bf16.msrb.mxu1 %v4771_v10  ;;  %v4815_v10 = vor.u32 %v5711_v6, %v4812_v7  ;;  %v5692_v7 = vld [vmem:[%s8700_s3 + $0x16c] sm:$0xf]  ;;  %v1687_v9 = vadd.f32 %v1686_v59, %v1673_v58 }
 0x12f   :  { %2710 = vmatpush.bf16.msra.mxu2 %v4815_v10  ;;  %2667 = vmatpush.bf16.msrb.mxu3 %v4955_v17  ;;  %v5759_v10 = vld [vmem:[%s8700_s3 + $0x384] sm:$0xf] }
 0x130   :  { %2734 = vmatpush.bf16.msrb.mxu0 %v4627_v41  ;;  %v4691_v41 = vor.u32 %v5682_v8, %v4690_v1  ;;  %v4759_v1 = vor.u32 %v5696_v54, %v4756_v55  ;;  %v4740_v8 = vld [vmem:[%s8700_s3 + $0x178] sm:$0xf0]  ;;  %v5007_v15 = vor.u32 %v5759_v10, %v5004_v12  ;;  %v5747_v54 = vld [vmem:[%s8700_s3 + $0x324] sm:$0xf]  ;;  %v4956_v55 = vld [vmem:[%s8700_s3 + $0x330] sm:$0xf0] }
 0x131   :  { %2748 = vmatpush.bf16.msrb.mxu1 %v4755_v21  ;;  %v4660_v21 = vld [vmem:[%s8700_s3 + $0xd8] sm:$0xf0]  ;;  %v4743_v14 = vor.u32 %v5692_v7, %v4740_v8  ;;  %v1714_v2 = vpop.f32.mrf.mxu3  ;;  %v4959_v58 = vor.u32 %v5747_v54, %v4956_v55  ;;  %v4882_v8 = vld [vmem:[%s8700_s3 + $0x288] sm:$0xf]  ;;  %v5774_v55 = vld [vmem:[%s8700_s3 + $0x3f4] sm:$0xf0] }
 0x132   :  { %v4663_v32 = vor.u32 %v5672_v20, %v4660_v21  ;;  %v5755_v20 = vld [vmem:[%s8700_s3 + $0x364] sm:$0xf]  ;;  %v4988_v21 = vld [vmem:[%s8700_s3 + $0x370] sm:$0xf0]  ;;  %v4866_v12 = vld [vmem:[%s8700_s3 + $0x268] sm:$0xf] }
 0x133   :  { %2668 = vmatpush.bf16.msrb.mxu3 %v4939_v33  ;;  %v4991_v28 = vor.u32 %v5755_v20, %v4988_v21  ;;  %v4834_v21 = vld [vmem:[%s8700_s3 + $0x228] sm:$0xf] }
 0x134   :  { %2735 = vmatpush.bf16.msrb.mxu0 %v4611_v31  ;;  %v1698_v31 = vpop.f32.mrf.mxu2  ;;  %v5058_v54 = vld [vmem:[%s8700_s3 + $0x3e8] sm:$0xf] }
 0x135   :  { %2749 = vmatpush.bf16.msrb.mxu1 %v4739_v36  ;;  %v4791_v36 = vor.u32 %v5704_v25, %v4788_v22  ;;  %v1699_v62 = vadd.f32 %v1698_v31, %v1685_v56  ;;  %v5684_v31 = vld [vmem:[%s8700_s3 + $0x12c] sm:$0xf] }
 0x137   :  { %2717 = vmatpush.bf16.msra.mxu3 %v5055_v43  ;;  %v1713_v17 = vadd.f32 %v1712_v48, %v1699_v62  ;;  %v4692_v48 = vld [vmem:[%s8700_s3 + $0x118] sm:$0xf0]  ;;  %v5730_v62 = vld [vmem:[%s8700_s3 + $0x294] sm:$0xf0] }
 0x138   :  { %2736 = vmatpush.bf16.msrb.mxu0 %v4595_v46  ;;  %v5036_v46 = vld [vmem:[%s8700_s3 + $0x3d0] sm:$0xf0]  ;;  %v4695_v56 = vor.u32 %v5680_v47, %v4692_v48 }
 0x139   :  { %2750 = vmatpush.bf16.msrb.mxu1 %v4723_v49  ;;  %v4647_v49 = vor.u32 %v5668_v38, %v4644_v39  ;;  %v5039_v50 = vor.u32 %v5767_v0, %v5036_v46  ;;  %v5751_v38 = vld [vmem:[%s8700_s3 + $0x344] sm:$0xf]  ;;  %v4972_v39 = vld [vmem:[%s8700_s3 + $0x350] sm:$0xf0]  ;;  %v4564_v0 = vld [vmem:[%s8700_s3 + $0x18] sm:$0xf0] }
 0x13a   :  { %v4975_v46 = vor.u32 %v5751_v38, %v4972_v39  ;;  %v4567_v53 = vor.u32 %v5648_v45, %v4564_v0  ;;  %v4916_v45 = vld [vmem:[%s8700_s3 + $0x2d8] sm:$0xf0] }
 0x13b   :  { %2718 = vmatpush.bf16.msra.mxu3 %v5039_v50  ;;  %v4914_v50 = vld [vmem:[%s8700_s3 + $0x2c8] sm:$0xf] }
 0x13c   :  { %2737 = vmatpush.bf16.msrb.mxu0 %v4579_v61  ;;  %v5763_v61 = vld [vmem:[%s8700_s3 + $0x3a4] sm:$0xf]  ;;  %v1700_v5 = vpop.f32.mrf.mxu2 }
 0x13d   :  { %2751 = vmatpush.bf16.msrb.mxu1 %v4707_v4  ;;  %v5023_v4 = vor.u32 %v5763_v61, %v5020_v63  ;;  %v1701_v13 = vadd.f32 %v1700_v5, %v1687_v9  ;;  %v5734_v61 = vld [vmem:[%s8700_s3 + $0x2b4] sm:$0xf0] }
 0x13f   :  { %2719 = vmatpush.bf16.msra.mxu3 %v5023_v4  ;;  %v1715_v24 = vadd.f32 %v1714_v2, %v1701_v13  ;;  %v4850_v2 = vld [vmem:[%s8700_s3 + $0x248] sm:$0xf] }
 0x140   :  { %2738 = vmatpush.bf16.msrb.mxu0 %v4563_v42  ;;  %v1726_v6 = vpop.f32.mrf.mxu0  ;;  %v4596_v42 = vld [vmem:[%s8700_s3 + $0x58] sm:$0xf0] }
 0x141   :  { %2752 = vmatpush.bf16.msrb.mxu1 %v4691_v41  ;;  %v5688_v41 = vld [vmem:[%s8700_s3 + $0x14c] sm:$0xf]  ;;  %v1727_v25 = vadd.f32 %v1726_v6, %v1713_v17  ;;  %v1740_v52 = vpop.f32.mrf.mxu1  ;;  %v5868_v6 = vld [vmem:[%s8699_s2] sm:$0xf] }
 0x142   :  { %v276_v7 = vperm.slane %v5868_v6, 3  ;;  %v5724_v6 = vld [vmem:[%s8700_s3 + $0x26c] sm:$0xf] }
 0x143   :  { %2739 = vmatmul.bf16.vlgmr.msrb.gmra.mxu0 %v7537_v19  ;;  %2720 = vmatpush.bf16.msra.mxu3 %v5007_v15  ;;  %v1831_v40 = vmax.f32 %v1727_v25, 0.0 }
 0x144   :  { %2787 = vmatpush.bf16.msra.mxu0 %v4679_v16  ;;  %2753 = vmatmul.bf16.vlgmr.msrb.gmra.mxu1 %v7660_v11  ;;  %v4724_v16 = vld [vmem:[%s8700_s3 + $0x158] sm:$0xf0]  ;;  %v1741_v10 = vadd.f32 %v1740_v52, %v276_v7 }
 0x145   :  { %2801 = vmatpush.bf16.msra.mxu1 %v4807_v18  ;;  %v4599_v18 = vor.u32 %v5656_v37, %v4596_v42  ;;  %v4727_v22 = vor.u32 %v5688_v41, %v4724_v16  ;;  %v5722_v41 = vld [vmem:[%s8700_s3 + $0x254] sm:$0xf0]  ;;  %v4900_v52 = vld [vmem:[%s8700_s3 + $0x2b8] sm:$0xf0] }
 0x146   :  { %v4851_v17 = vor.u32 %v5722_v41, %v4850_v2  ;;  %v5758_v2 = vld [vmem:[%s8700_s3 + $0x374] sm:$0xf0] }
 0x147   :  { %2721 = vmatpush.bf16.msra.mxu3 %v4991_v28 }
 0x148   :  { %2788 = vmatpush.bf16.msra.mxu0 %v4663_v32  ;;  %v1728_v29 = vpop.f32.mrf.mxu0  ;;  %v4708_v32 = vld [vmem:[%s8700_s3 + $0x138] sm:$0xf0]  ;;  %v1754_v63 = vpop.f32.mrf.mxu2 }
 0x149   :  { %2802 = vmatpush.bf16.msra.mxu1 %v4791_v36  ;;  %v1729_v33 = vadd.f32 %v1728_v29, %v1715_v24  ;;  %v4583_v36 = vor.u32 %v5652_v26, %v4580_v27  ;;  %v4711_v44 = vor.u32 %v5684_v31, %v4708_v32  ;;  %v1768_v3 = vpop.f32.mrf.mxu3  ;;  %v1742_v9 = vpop.f32.mrf.mxu1  ;;  %v1755_v37 = vadd.f32 %v1754_v63, %v1741_v10  ;;  %v5718_v24 = vld [vmem:[%s8700_s3 + $0x234] sm:$0xf0]  ;;  %v4818_v31 = vld [vmem:[%s8700_s3 + $0x208] sm:$0xf]  ;;  %v4884_v63 = vld [vmem:[%s8700_s3 + $0x298] sm:$0xf0] }
 0x14a   :  { %v1743_v42 = vadd.f32 %v1742_v9, %v276_v7  ;;  %v4835_v26 = vor.u32 %v5718_v24, %v4834_v21  ;;  %v5714_v32 = vld [vmem:[%s8700_s3 + $0x214] sm:$0xf0]  ;;  %v4868_v7 = vld [vmem:[%s8700_s3 + $0x278] sm:$0xf0]  ;;  %v5720_v10 = vld [vmem:[%s8700_s3 + $0x24c] sm:$0xf] }
 0x14b   :  { %v1835_v43 = vmax.f32 %v1729_v33, 0.0  ;;  %2722 = vmatpush.bf16.msra.mxu3 %v4975_v46  ;;  %v5740_v33 = vld [vmem:[%s8700_s3 + $0x2ec] sm:$0xf]  ;;  %v4819_v38 = vor.u32 %v5714_v32, %v4818_v31  ;;  %v4871_v9 = vor.u32 %v5724_v6, %v4868_v7  ;;  %v5754_v21 = vld [vmem:[%s8700_s3 + $0x354] sm:$0xf0] }
 0x14c   :  { %2789 = vmatpush.bf16.msra.mxu0 %v4647_v49  ;;  %v5772_v31 = vld [vmem:[%s8700_s3 + $0x3ec] sm:$0xf]  ;;  %v5060_v32 = vld [vmem:[%s8700_s3 + $0x3f8] sm:$0xf0]  ;;  %v5784_v6 = vld [vmem:[%s8702_s5 + $0x44] sm:$0xf0] }
 0x14d   :  { %2803 = vmatpush.bf16.msra.mxu1 %v4775_v51  ;;  %v7992_v49 = vpack.c.bf16 %v1835_v43, %v1831_v40  ;;  %v5738_v51 = vld [vmem:[%s8700_s3 + $0x2d4] sm:$0xf0]  ;;  %v4935_v40 = vor.u32 %v5740_v33, %v4932_v34  ;;  %v5063_v34 = vor.u32 %v5772_v31, %v5060_v32  ;;  %v5154_v31 = vld [vmem:[%s8702_s5 + $0xb0] sm:$0xf] }
 0x14e   :  { %v4915_v59 = vor.u32 %v5738_v51, %v4914_v50  ;;  %v5732_v51 = vld [vmem:[%s8700_s3 + $0x2ac] sm:$0xf]  ;;  %v5798_v32 = vld [vmem:[%s8702_s5 + $0xb4] sm:$0xf0] }
 0x14f   :  { %2655 = vmatmul.bf16.vlgmr.msrb.gmra.mxu2 %v7992_v49  ;;  %2723 = vmatpush.bf16.msra.mxu3 %v4959_v58 }
 0x150   :  { %2790 = vmatpush.bf16.msra.mxu0 %v4631_v60  ;;  %2759 = vmatpush.bf16.msrb.mxu2 %v4931_v57  ;;  %v4898_v60 = vld [vmem:[%s8700_s3 + $0x2a8] sm:$0xf]  ;;  %v1756_v13 = vpop.f32.mrf.mxu2 }
 0x151   :  { %2804 = vmatpush.bf16.msra.mxu1 %v4759_v1  ;;  %v5743_v1 = vld [vmem:[%s8700_s3 + $0x304] sm:$0xf]  ;;  %v4899_v5 = vor.u32 %v5734_v61, %v4898_v60  ;;  %v1770_v15 = vpop.f32.mrf.mxu3  ;;  %v1757_v20 = vadd.f32 %v1756_v13, %v1743_v42  ;;  %v5059_v60 = vor.u32 %v5774_v55, %v5058_v54  ;;  %v5728_v61 = vld [vmem:[%s8700_s3 + $0x28c] sm:$0xf]  ;;  %v5762_v13 = vld [vmem:[%s8700_s3 + $0x394] sm:$0xf0] }
 0x152   :  { %v4943_v4 = vor.u32 %v5743_v1, %v4940_v30  ;;  %v5042_v30 = vld [vmem:[%s8700_s3 + $0x3c8] sm:$0xf]  ;;  %v5716_v42 = vld [vmem:[%s8700_s3 + $0x22c] sm:$0xf]  ;;  %v4948_v55 = vld [vmem:[%s8700_s3 + $0x318] sm:$0xf0] }
 0x153   :  { %v1771_v27 = vadd.f32 %v1770_v15, %v1757_v20  ;;  %v4836_v15 = vld [vmem:[%s8700_s3 + $0x238] sm:$0xf0]  ;;  %v4978_v20 = vld [vmem:[%s8700_s3 + $0x348] sm:$0xf]  ;;  %v5744_v54 = vld [vmem:[%s8700_s3 + $0x30c] sm:$0xf] }
 0x154   :  { %2791 = vmatpush.bf16.msra.mxu0 %v4615_v23  ;;  %2760 = vmatpush.bf16.msrb.mxu2 %v4915_v59  ;;  %v4883_v23 = vor.u32 %v5730_v62, %v4882_v8  ;;  %v4903_v59 = vor.u32 %v5732_v51, %v4900_v52  ;;  %v5026_v8 = vld [vmem:[%s8700_s3 + $0x3a8] sm:$0xf]  ;;  %v5766_v62 = vld [vmem:[%s8700_s3 + $0x3b4] sm:$0xf0]  ;;  %v4839_v41 = vor.u32 %v5716_v42, %v4836_v15  ;;  %v5748_v51 = vld [vmem:[%s8700_s3 + $0x32c] sm:$0xf] }
 0x155   :  { %2805 = vmatpush.bf16.msra.mxu1 %v4743_v14  ;;  %2724 = vmatpush.bf16.msra.mxu3 %v4943_v4  ;;  %v4887_v4 = vor.u32 %v5728_v61, %v4884_v63  ;;  %v4964_v52 = vld [vmem:[%s8700_s3 + $0x338] sm:$0xf0]  ;;  %v5114_v61 = vld [vmem:[%s8702_s5 + $0x60] sm:$0xf]  ;;  %v5788_v63 = vld [vmem:[%s8702_s5 + $0x64] sm:$0xf0] }
 0x156   :  { %v5804_v42 = vld [vmem:[%s8702_s5 + $0xe4] sm:$0xf0] }
 0x158   :  { %2792 = vmatpush.bf16.msra.mxu0 %v4599_v18  ;;  %2761 = vmatpush.bf16.msrb.mxu2 %v4899_v5  ;;  %v1769_v18 = vadd.f32 %v1768_v3, %v1755_v37  ;;  %v5770_v3 = vld [vmem:[%s8700_s3 + $0x3d4] sm:$0xf0] }
 0x159   :  { %2806 = vmatpush.bf16.msra.mxu1 %v4727_v22  ;;  %v5043_v5 = vor.u32 %v5770_v3, %v5042_v30  ;;  %v5115_v30 = vor.u32 %v5788_v63, %v5114_v61  ;;  %v5786_v3 = vld [vmem:[%s8702_s5 + $0x54] sm:$0xf0]  ;;  %v5792_v61 = vld [vmem:[%s8702_s5 + $0x84] sm:$0xf0]  ;;  %v5226_v63 = vld [vmem:[%s8702_s5 + $0x140] sm:$0xf] }
 0x15c   :  { %2793 = vmatpush.bf16.msra.mxu0 %v4583_v36  ;;  %2762 = vmatpush.bf16.msrb.mxu2 %v4883_v23  ;;  %v5027_v23 = vor.u32 %v5766_v62, %v5026_v8  ;;  %v5090_v8 = vld [vmem:[%s8702_s5 + $0x30] sm:$0xf]  ;;  %v5782_v62 = vld [vmem:[%s8702_s5 + $0x34] sm:$0xf0] }
 0x15d   :  { %2807 = vmatpush.bf16.msra.mxu1 %v4711_v44  ;;  %v5736_v44 = vld [vmem:[%s8700_s3 + $0x2cc] sm:$0xf] }
 0x15e   :  { %v4919_v48 = vor.u32 %v5736_v44, %v4916_v45  ;;  %v5012_v44 = vld [vmem:[%s8700_s3 + $0x398] sm:$0xf0] }
 0x15f   :  { %2711 = vmatmul.bf16.vlgmr.msra.gmra.mxu2 %v7992_v49 }
 0x160   :  { %2794 = vmatpush.bf16.msra.mxu0 %v4567_v53 }
 0x161   :  { %2808 = vmatpush.bf16.msra.mxu1 %v4695_v56  ;;  %v1796_v16 = vpop.f32.mrf.mxu1 }
 0x163   :  { %2795 = vmatmul.bf16.vlgmr.msra.gmra.mxu0 %v7537_v19  ;;  %v5726_v19 = vld [vmem:[%s8700_s3 + $0x274] sm:$0xf0] }
 0x164   :  { %2809 = vmatmul.bf16.vlgmr.msra.gmra.mxu1 %v7660_v11  ;;  %v4867_v14 = vor.u32 %v5726_v19, %v4866_v12  ;;  %v1782_v11 = vpop.f32.mrf.mxu0  ;;  %v4852_v12 = vld [vmem:[%s8700_s3 + $0x258] sm:$0xf0]  ;;  %v5010_v19 = vld [vmem:[%s8700_s3 + $0x388] sm:$0xf] }
 0x165   :  { %v1783_v25 = vadd.f32 %v1782_v11, %v1769_v18  ;;  %v5011_v37 = vor.u32 %v5762_v13, %v5010_v19  ;;  %v4994_v11 = vld [vmem:[%s8700_s3 + $0x368] sm:$0xf]  ;;  %v4820_v18 = vld [vmem:[%s8700_s3 + $0x218] sm:$0xf0]  ;;  %v5082_v19 = vld [vmem:[%s8702_s5 + $0x20] sm:$0xf] }
 0x166   :  { %2763 = vmatpush.bf16.msrb.mxu2 %v4867_v14  ;;  %v4855_v14 = vor.u32 %v5720_v10, %v4852_v12  ;;  %v5806_v10 = vld [vmem:[%s8702_s5 + $0xf4] sm:$0xf0]  ;;  %v5780_v13 = vld [vmem:[%s8702_s5 + $0x24] sm:$0xf0] }
 0x167   :  { %v1797_v35 = vadd.f32 %v1796_v16, %v1783_v25  ;;  %v4995_v16 = vor.u32 %v5758_v2, %v4994_v11  ;;  %v4979_v25 = vor.u32 %v5754_v21, %v4978_v20  ;;  %v5074_v11 = vld [vmem:[%s8702_s5 + $0x10] sm:$0xf]  ;;  %v5778_v2 = vld [vmem:[%s8702_s5 + $0x14] sm:$0xf0]  ;;  %v5066_v20 = vld [vmem:[%s8702_s5] sm:$0xf] }
 0x168   :  { %v1810_v22 = vpop.f32.mrf.mxu2  ;;  %v5776_v21 = vld [vmem:[%s8702_s5 + $0x4] sm:$0xf0] }
 0x169   :  { %v1824_v28 = vpop.f32.mrf.mxu3  ;;  %v1811_v39 = vadd.f32 %v1810_v22, %v1797_v35  ;;  %v1798_v43 = vpop.f32.mrf.mxu1  ;;  %v4962_v22 = vld [vmem:[%s8700_s3 + $0x328] sm:$0xf]  ;;  %v5768_v35 = vld [vmem:[%s8700_s3 + $0x3cc] sm:$0xf] }
 0x16a   :  { %2764 = vmatpush.bf16.msrb.mxu2 %v4851_v17  ;;  %v5712_v17 = vld [vmem:[%s8700_s3 + $0x20c] sm:$0xf] }
 0x16b   :  { %v1825_v57 = vadd.f32 %v1824_v28, %v1811_v39  ;;  %v4823_v24 = vor.u32 %v5712_v17, %v4820_v18  ;;  %v4946_v28 = vld [vmem:[%s8700_s3 + $0x308] sm:$0xf]  ;;  %v5028_v39 = vld [vmem:[%s8700_s3 + $0x3b8] sm:$0xf0]  ;;  %v5802_v17 = vld [vmem:[%s8702_s5 + $0xd4] sm:$0xf0] }
 0x16c   :  { %v1784_v29 = vpop.f32.mrf.mxu0 }
 0x16d   :  { %v1785_v36 = vadd.f32 %v1784_v29, %v1771_v27  ;;  %v1832_v56 = vmax.f32 %v1825_v57, 0.0  ;;  %v5746_v29 = vld [vmem:[%s8700_s3 + $0x314] sm:$0xf0] }
 0x16e   :  { %2765 = vmatpush.bf16.msrb.mxu2 %v4835_v26  ;;  %v5750_v26 = vld [vmem:[%s8700_s3 + $0x334] sm:$0xf0]  ;;  %v4947_v33 = vor.u32 %v5746_v29, %v4946_v28  ;;  %v5124_v28 = vld [vmem:[%s8702_s5 + $0x78] sm:$0xf0] }
 0x16f   :  { %v1799_v0 = vadd.f32 %v1798_v43, %v1785_v36  ;;  %v4963_v27 = vor.u32 %v5750_v26, %v4962_v22  ;;  %v5044_v36 = vld [vmem:[%s8700_s3 + $0x3d8] sm:$0xf0]  ;;  %v5760_v43 = vld [vmem:[%s8700_s3 + $0x38c] sm:$0xf]  ;;  %v5800_v22 = vld [vmem:[%s8702_s5 + $0xc4] sm:$0xf0] }
 0x170   :  { %v1812_v46 = vpop.f32.mrf.mxu2  ;;  %v5015_v45 = vor.u32 %v5760_v43, %v5012_v44  ;;  %v5796_v43 = vld [vmem:[%s8702_s5 + $0xa4] sm:$0xf0]  ;;  %v5242_v44 = vld [vmem:[%s8702_s5 + $0x160] sm:$0xf] }
 0x171   :  { %v1813_v47 = vadd.f32 %v1812_v46, %v1799_v0  ;;  %v1826_v50 = vpop.f32.mrf.mxu3  ;;  %v5756_v0 = vld [vmem:[%s8700_s3 + $0x36c] sm:$0xf]  ;;  %v4996_v46 = vld [vmem:[%s8700_s3 + $0x378] sm:$0xf0] }
 0x172   :  { %2766 = vmatpush.bf16.msrb.mxu2 %v4819_v38  ;;  %v5764_v38 = vld [vmem:[%s8700_s3 + $0x3ac] sm:$0xf]  ;;  %v4999_v57 = vor.u32 %v5756_v0, %v4996_v46 }
 0x173   :  { %v1827_v53 = vadd.f32 %v1826_v50, %v1813_v47  ;;  %v5752_v47 = vld [vmem:[%s8700_s3 + $0x34c] sm:$0xf] }
 0x175   :  { %2767 = vmatmul.bf16.vlgmr.msrb.gmra.mxu2 %v7992_v49  ;;  %v1836_v58 = vmax.f32 %v1827_v53, 0.0  ;;  %v4967_v53 = vor.u32 %v5748_v51, %v4964_v52  ;;  %v5794_v51 = vld [vmem:[%s8702_s5 + $0x94] sm:$0xf0]  ;;  %v5234_v52 = vld [vmem:[%s8702_s5 + $0x150] sm:$0xf] }
 0x176   :  { %2815 = vmatpush.bf16.msra.mxu2 %v4935_v40  ;;  %v5031_v40 = vor.u32 %v5764_v38, %v5028_v39 }
 0x177   :  { %v8086_v1 = vpack.c.bf16 %v1836_v58, %v1832_v56  ;;  %v4951_v56 = vor.u32 %v5744_v54, %v4948_v55  ;;  %v5122_v58 = vld [vmem:[%s8702_s5 + $0x70] sm:$0xf]  ;;  %v5818_v54 = vld [vmem:[%s8702_s5 + $0x154] sm:$0xf0]  ;;  %v5783_v55 = vld [vmem:[%s8702_s5 + $0x44] sm:$0xf] }
 0x179   :  { %2669 = vmatmul.bf16.vlgmr.msrb.gmra.mxu3 %v8086_v1 }
 0x17a   :  { %2816 = vmatpush.bf16.msra.mxu2 %v4919_v48  ;;  %2773 = vmatpush.bf16.msrb.mxu3 %v5059_v60  ;;  %v4980_v48 = vld [vmem:[%s8700_s3 + $0x358] sm:$0xf0] }
 0x17b   :  { %v4983_v50 = vor.u32 %v5752_v47, %v4980_v48  ;;  %v5108_v47 = vld [vmem:[%s8702_s5 + $0x58] sm:$0xf0] }
 0x17e   :  { %2817 = vmatpush.bf16.msra.mxu2 %v4903_v59  ;;  %2774 = vmatpush.bf16.msrb.mxu3 %v5043_v5  ;;  %v5790_v59 = vld [vmem:[%s8702_s5 + $0x74] sm:$0xf0]  ;;  %v5098_v5 = vld [vmem:[%s8702_s5 + $0x40] sm:$0xf] }
 0x17f   :  { %v5123_v60 = vor.u32 %v5790_v59, %v5122_v58  ;;  %v5099_v7 = vor.u32 %v5784_v6, %v5098_v5  ;;  %v5235_v58 = vor.u32 %v5818_v54, %v5234_v52  ;;  %v5252_v52 = vld [vmem:[%s8702_s5 + $0x178] sm:$0xf0] }
 0x181   :  { %3245 = vmatpush.bf16.msrb.mxu0 %v5123_v60  ;;  %v5130_v60 = vld [vmem:[%s8702_s5 + $0x80] sm:$0xf] }
 0x182   :  { %2818 = vmatpush.bf16.msra.mxu2 %v4887_v4  ;;  %2775 = vmatpush.bf16.msrb.mxu3 %v5027_v23  ;;  %v5091_v23 = vor.u32 %v5782_v62, %v5090_v8  ;;  %v5188_v8 = vld [vmem:[%s8702_s5 + $0xf8] sm:$0xf0]  ;;  %v2628_v62 = vpop.f32.mrf.mxu0 }
 0x185   :  { %3246 = vmatpush.bf16.msrb.mxu0 %v5115_v30  ;;  %v5131_v30 = vor.u32 %v5792_v61, %v5130_v60  ;;  %v5795_v61 = vld [vmem:[%s8702_s5 + $0xa4] sm:$0xf] }
 0x186   :  { %2819 = vmatpush.bf16.msra.mxu2 %v4871_v9  ;;  %2776 = vmatpush.bf16.msrb.mxu3 %v5011_v37  ;;  %v5186_v9 = vld [vmem:[%s8702_s5 + $0xf0] sm:$0xf]  ;;  %v5083_v37 = vor.u32 %v5780_v13, %v5082_v19 }
 0x187   :  { %v5187_v12 = vor.u32 %v5806_v10, %v5186_v9  ;;  %v5218_v10 = vld [vmem:[%s8702_s5 + $0x130] sm:$0xf] }
 0x189   :  { %2725 = vmatmul.bf16.vlgmr.msra.gmra.mxu3 %v8086_v1  ;;  %3259 = vmatpush.bf16.msrb.mxu1 %v5187_v12  ;;  %v5814_v12 = vld [vmem:[%s8702_s5 + $0x134] sm:$0xf0] }
 0x18a   :  { %2820 = vmatpush.bf16.msra.mxu2 %v4855_v14  ;;  %2777 = vmatpush.bf16.msrb.mxu3 %v4995_v16  ;;  %v5178_v14 = vld [vmem:[%s8702_s5 + $0xe0] sm:$0xf]  ;;  %v5075_v16 = vor.u32 %v5778_v2, %v5074_v11  ;;  %v5219_v13 = vor.u32 %v5814_v12, %v5218_v10  ;;  %v5180_v11 = vld [vmem:[%s8702_s5 + $0xe8] sm:$0xf0] }
 0x18b   :  { %v5179_v15 = vor.u32 %v5804_v42, %v5178_v14  ;;  %v5779_v14 = vld [vmem:[%s8702_s5 + $0x24] sm:$0xf] }
 0x18c   :  { %v5803_v42 = vld [vmem:[%s8702_s5 + $0xe4] sm:$0xf] }
 0x18d   :  { %3260 = vmatpush.bf16.msrb.mxu1 %v5179_v15  ;;  %v5183_v2 = vor.u32 %v5803_v42, %v5180_v11  ;;  %v5236_v11 = vld [vmem:[%s8702_s5 + $0x158] sm:$0xf0] }
 0x18e   :  { %2821 = vmatpush.bf16.msra.mxu2 %v4839_v41  ;;  %2778 = vmatpush.bf16.msrb.mxu3 %v4979_v25  ;;  %v5170_v41 = vld [vmem:[%s8702_s5 + $0xd0] sm:$0xf]  ;;  %v5067_v25 = vor.u32 %v5776_v21, %v5066_v20  ;;  %v5076_v20 = vld [vmem:[%s8702_s5 + $0x18] sm:$0xf0]  ;;  %v5801_v21 = vld [vmem:[%s8702_s5 + $0xd4] sm:$0xf] }
 0x18f   :  { %v5171_v18 = vor.u32 %v5802_v17, %v5170_v41  ;;  %v5210_v41 = vld [vmem:[%s8702_s5 + $0x120] sm:$0xf] }
 0x191   :  { %3261 = vmatpush.bf16.msrb.mxu1 %v5171_v18  ;;  %v5777_v18 = vld [vmem:[%s8702_s5 + $0x14] sm:$0xf] }
 0x192   :  { %2822 = vmatpush.bf16.msra.mxu2 %v4823_v24  ;;  %2779 = vmatpush.bf16.msrb.mxu3 %v4963_v27  ;;  %v5162_v24 = vld [vmem:[%s8702_s5 + $0xc0] sm:$0xf]  ;;  %v5789_v27 = vld [vmem:[%s8702_s5 + $0x74] sm:$0xf] }
 0x193   :  { %v5163_v26 = vor.u32 %v5800_v22, %v5162_v24  ;;  %v5127_v29 = vor.u32 %v5789_v27, %v5124_v28  ;;  %v5079_v24 = vor.u32 %v5777_v18, %v5076_v20  ;;  %v5202_v27 = vld [vmem:[%s8702_s5 + $0x110] sm:$0xf]  ;;  %v5810_v28 = vld [vmem:[%s8702_s5 + $0x114] sm:$0xf0]  ;;  %v5832_v18 = vld [vmem:[%s8702_s5 + $0x1c4] sm:$0xf0] }
 0x195   :  { %2823 = vmatmul.bf16.vlgmr.msra.gmra.mxu2 %v7992_v49  ;;  %v5047_v49 = vor.u32 %v5768_v35, %v5044_v36  ;;  %3262 = vmatpush.bf16.msrb.mxu1 %v5163_v26  ;;  %v5822_v35 = vld [vmem:[%s8702_s5 + $0x174] sm:$0xf0]  ;;  %v5787_v36 = vld [vmem:[%s8702_s5 + $0x64] sm:$0xf]  ;;  %v8406_v26 = vld [vmem:[%s8701_s4] sm:$0xf] }
 0x196   :  { %2780 = vmatpush.bf16.msrb.mxu3 %v4947_v33  ;;  %v5250_v33 = vld [vmem:[%s8702_s5 + $0x170] sm:$0xf] }
 0x197   :  { %v5251_v38 = vor.u32 %v5822_v35, %v5250_v33  ;;  %v5068_v33 = vld [vmem:[%s8702_s5 + $0x8] sm:$0xf0] }
 0x199   :  { %2781 = vmatmul.bf16.vlgmr.msrb.gmra.mxu3 %v8086_v1  ;;  %3273 = vmatpush.bf16.msrb.mxu2 %v5251_v38  ;;  %v1971_v38 = vperm.slane %v8406_v26, 0 }
 0x19a   :  { %2829 = vmatpush.bf16.msra.mxu3 %v5063_v34  ;;  %v5155_v34 = vor.u32 %v5798_v32, %v5154_v31  ;;  %v5203_v31 = vor.u32 %v5810_v28, %v5202_v27  ;;  %v5775_v32 = vld [vmem:[%s8702_s5 + $0x4] sm:$0xf] }
 0x19c   :  { %3263 = vmatpush.bf16.msrb.mxu1 %v5155_v34  ;;  %v5799_v34 = vld [vmem:[%s8702_s5 + $0xc4] sm:$0xf] }
 0x19e   :  { %2830 = vmatpush.bf16.msra.mxu3 %v5047_v49  ;;  %v5116_v49 = vld [vmem:[%s8702_s5 + $0x68] sm:$0xf0] }
 0x19f   :  { %v5119_v39 = vor.u32 %v5787_v36, %v5116_v49  ;;  %v5071_v36 = vor.u32 %v5775_v32, %v5068_v33  ;;  %v5164_v49 = vld [vmem:[%s8702_s5 + $0xc8] sm:$0xf0]  ;;  %v1972_v33 = vperm.slane %v8406_v26, 1 }
 0x1a2   :  { %2831 = vmatpush.bf16.msra.mxu3 %v5031_v40  ;;  %v5146_v40 = vld [vmem:[%s8702_s5 + $0xa0] sm:$0xf] }
 0x1a3   :  { %v5147_v0 = vor.u32 %v5796_v43, %v5146_v40  ;;  %v5167_v40 = vor.u32 %v5799_v34, %v5164_v49  ;;  %v5194_v43 = vld [vmem:[%s8702_s5 + $0x100] sm:$0xf] }
 0x1a5   :  { %3264 = vmatpush.bf16.msrb.mxu1 %v5147_v0 }
 0x1a6   :  { %2832 = vmatpush.bf16.msra.mxu3 %v5015_v45  ;;  %v5820_v45 = vld [vmem:[%s8702_s5 + $0x164] sm:$0xf0] }
 0x1a7   :  { %v5243_v46 = vor.u32 %v5820_v45, %v5242_v44  ;;  %v5808_v44 = vld [vmem:[%s8702_s5 + $0x104] sm:$0xf0]  ;;  %v5314_v45 = vld [vmem:[%s8702_s5 + $0x1f0] sm:$0xf] }
 0x1a8   :  { %v5195_v0 = vor.u32 %v5808_v44, %v5194_v43  ;;  %v5274_v44 = vld [vmem:[%s8702_s5 + $0x1a0] sm:$0xf] }
 0x1a9   :  { %3274 = vmatpush.bf16.msrb.mxu2 %v5243_v46  ;;  %v5838_v46 = vld [vmem:[%s8702_s5 + $0x1f4] sm:$0xf0] }
 0x1aa   :  { %2833 = vmatpush.bf16.msra.mxu3 %v4999_v57  ;;  %v5785_v57 = vld [vmem:[%s8702_s5 + $0x54] sm:$0xf] }
 0x1ab   :  { %v5111_v48 = vor.u32 %v5785_v57, %v5108_v47  ;;  %v5797_v57 = vld [vmem:[%s8702_s5 + $0xb4] sm:$0xf]  ;;  %v5156_v47 = vld [vmem:[%s8702_s5 + $0xb8] sm:$0xf0] }
 0x1ad   :  { %3275 = vmatpush.bf16.msrb.mxu2 %v5235_v58  ;;  %v5836_v58 = vld [vmem:[%s8702_s5 + $0x1e4] sm:$0xf0] }
 0x1ae   :  { %2834 = vmatpush.bf16.msra.mxu3 %v4983_v50  ;;  %v5138_v50 = vld [vmem:[%s8702_s5 + $0x90] sm:$0xf] }
 0x1b2   :  { %2835 = vmatpush.bf16.msra.mxu3 %v4967_v53  ;;  %v5139_v53 = vor.u32 %v5794_v51, %v5138_v50  ;;  %v5159_v50 = vor.u32 %v5797_v57, %v5156_v47  ;;  %v5821_v51 = vld [vmem:[%s8702_s5 + $0x174] sm:$0xf]  ;;  %v5212_v47 = vld [vmem:[%s8702_s5 + $0x128] sm:$0xf0] }
 0x1b3   :  { %v5255_v54 = vor.u32 %v5821_v51, %v5252_v52  ;;  %v5266_v52 = vld [vmem:[%s8702_s5 + $0x190] sm:$0xf] }
 0x1b4   :  { %3265 = vmatpush.bf16.msrb.mxu1 %v5139_v53 }
 0x1b6   :  { %2836 = vmatpush.bf16.msra.mxu3 %v4951_v56  ;;  %v5100_v56 = vld [vmem:[%s8702_s5 + $0x48] sm:$0xf0] }
 0x1b7   :  { %v5103_v59 = vor.u32 %v5783_v55, %v5100_v56  ;;  %v2629_v55 = vadd.f32 %v2628_v62, %v1971_v38  ;;  %v5306_v56 = vld [vmem:[%s8702_s5 + $0x1e0] sm:$0xf] }
 0x1b8   :  { %3266 = vmatpush.bf16.msrb.mxu1 %v5131_v30  ;;  %v5307_v60 = vor.u32 %v5836_v58, %v5306_v56  ;;  %v5819_v30 = vld [vmem:[%s8702_s5 + $0x164] sm:$0xf]  ;;  %v5809_v56 = vld [vmem:[%s8702_s5 + $0x114] sm:$0xf]  ;;  %v5204_v58 = vld [vmem:[%s8702_s5 + $0x118] sm:$0xf0] }
 0x1b9   :  { %2837 = vmatmul.bf16.vlgmr.msra.gmra.mxu3 %v8086_v1  ;;  %v5106_v1 = vld [vmem:[%s8702_s5 + $0x50] sm:$0xf] }
 0x1ba   :  { %v5107_v4 = vor.u32 %v5786_v3, %v5106_v1  ;;  %v5816_v1 = vld [vmem:[%s8702_s5 + $0x144] sm:$0xf0]  ;;  %v5781_v3 = vld [vmem:[%s8702_s5 + $0x34] sm:$0xf] }
 0x1bb   :  { %v5227_v5 = vor.u32 %v5816_v1, %v5226_v63  ;;  %v5148_v63 = vld [vmem:[%s8702_s5 + $0xa8] sm:$0xf0] }
 0x1bc   :  { %3247 = vmatpush.bf16.msrb.mxu0 %v5107_v4  ;;  %v5092_v4 = vld [vmem:[%s8702_s5 + $0x38] sm:$0xf0] }
 0x1bd   :  { %v5095_v6 = vor.u32 %v5781_v3, %v5092_v4  ;;  %3276 = vmatpush.bf16.msrb.mxu2 %v5227_v5  ;;  %v5151_v4 = vor.u32 %v5795_v61, %v5148_v63  ;;  %v5244_v5 = vld [vmem:[%s8702_s5 + $0x168] sm:$0xf0] }
 0x1c0   :  { %3248 = vmatpush.bf16.msrb.mxu0 %v5099_v7  ;;  %v5805_v7 = vld [vmem:[%s8702_s5 + $0xf4] sm:$0xf] }
 0x1c1   :  { %v5191_v9 = vor.u32 %v5805_v7, %v5188_v8  ;;  %3277 = vmatpush.bf16.msrb.mxu2 %v5219_v13  ;;  %v5247_v7 = vor.u32 %v5819_v30, %v5244_v5  ;;  %v5834_v8 = vld [vmem:[%s8702_s5 + $0x1d4] sm:$0xf0]  ;;  %v5793_v13 = vld [vmem:[%s8702_s5 + $0x94] sm:$0xf]  ;;  %v5207_v30 = vor.u32 %v5809_v56, %v5204_v58 }
 0x1c3   :  { %3315 = vmatpush.bf16.msra.mxu1 %v5191_v9 }
 0x1c4   :  { %3249 = vmatpush.bf16.msrb.mxu0 %v5091_v23  ;;  %v8363_v23 = vpop.f32.mrf.mxu1 }
 0x1c5   :  { %v2643_v3 = vadd.f32 %v8363_v23, %v2629_v55 }
 0x1c7   :  { %3316 = vmatpush.bf16.msra.mxu1 %v5183_v2 }
 0x1c8   :  { %3250 = vmatpush.bf16.msrb.mxu0 %v5083_v37  ;;  %v5084_v37 = vld [vmem:[%s8702_s5 + $0x28] sm:$0xf0] }
 0x1c9   :  { %v5087_v15 = vor.u32 %v5779_v14, %v5084_v37  ;;  %v5140_v14 = vld [vmem:[%s8702_s5 + $0x98] sm:$0xf0]  ;;  %v5817_v37 = vld [vmem:[%s8702_s5 + $0x154] sm:$0xf] }
 0x1cc   :  { %3251 = vmatpush.bf16.msrb.mxu0 %v5075_v16  ;;  %v5812_v16 = vld [vmem:[%s8702_s5 + $0x124] sm:$0xf0]  ;;  %v2644_v35 = vpop.f32.mrf.mxu1 }
 0x1cd   :  { %v5211_v17 = vor.u32 %v5812_v16, %v5210_v41  ;;  %v5239_v41 = vor.u32 %v5817_v37, %v5236_v11 }
 0x1cf   :  { %3278 = vmatpush.bf16.msrb.mxu2 %v5211_v17  ;;  %v5290_v17 = vld [vmem:[%s8702_s5 + $0x1c0] sm:$0xf] }
 0x1d0   :  { %3252 = vmatpush.bf16.msrb.mxu0 %v5067_v25  ;;  %v5172_v25 = vld [vmem:[%s8702_s5 + $0xd8] sm:$0xf0]  ;;  %v5291_v20 = vor.u32 %v5832_v18, %v5290_v17 }
 0x1d1   :  { %v5175_v22 = vor.u32 %v5801_v21, %v5172_v25  ;;  %v5791_v21 = vld [vmem:[%s8702_s5 + $0x84] sm:$0xf] }
 0x1d2   :  { %v8371_v19 = vpop.f32.mrf.mxu2  ;;  %v5815_v25 = vld [vmem:[%s8702_s5 + $0x144] sm:$0xf] }
 0x1d3   :  { %3317 = vmatpush.bf16.msra.mxu1 %v5175_v22  ;;  %3279 = vmatpush.bf16.msrb.mxu2 %v5203_v31  ;;  %v2657_v10 = vadd.f32 %v8371_v19, %v2643_v3  ;;  %v5143_v19 = vor.u32 %v5793_v13, %v5140_v14  ;;  %v5824_v3 = vld [vmem:[%s8702_s5 + $0x184] sm:$0xf0]  ;;  %v1973_v13 = vperm.slane %v8406_v26, 2 }
 0x1d4   :  { %3301 = vmatpush.bf16.msra.mxu0 %v5127_v29  ;;  %v2630_v29 = vpop.f32.mrf.mxu0  ;;  %v2698_v9 = vpop.f32.mrf.mxu1 }
 0x1d5   :  { %v2631_v1 = vadd.f32 %v2630_v29, %v1971_v38  ;;  %v5228_v29 = vld [vmem:[%s8702_s5 + $0x148] sm:$0xf0]  ;;  %v5813_v38 = vld [vmem:[%s8702_s5 + $0x134] sm:$0xf] }
 0x1d6   :  { %v5231_v32 = vor.u32 %v5815_v25, %v5228_v29  ;;  %v5300_v25 = vld [vmem:[%s8702_s5 + $0x1d8] sm:$0xf0] }
 0x1d7   :  { %3318 = vmatpush.bf16.msra.mxu1 %v5167_v40  ;;  %3280 = vmatpush.bf16.msrb.mxu2 %v5195_v0  ;;  %v2645_v62 = vadd.f32 %v2644_v35, %v2631_v1  ;;  %v5282_v35 = vld [vmem:[%s8702_s5 + $0x1b0] sm:$0xf]  ;;  %v5811_v0 = vld [vmem:[%s8702_s5 + $0x124] sm:$0xf]  ;;  %v5258_v1 = vld [vmem:[%s8702_s5 + $0x180] sm:$0xf] }
 0x1d8   :  { %3302 = vmatpush.bf16.msra.mxu0 %v5119_v39  ;;  %v5215_v51 = vor.u32 %v5811_v0, %v5212_v47 }
 0x1da   :  { %v2658_v39 = vpop.f32.mrf.mxu2 }
 0x1db   :  { %3319 = vmatpush.bf16.msra.mxu1 %v5159_v50  ;;  %3329 = vmatpush.bf16.msra.mxu2 %v5255_v54  ;;  %v2659_v42 = vadd.f32 %v2658_v39, %v2645_v62  ;;  %v5220_v39 = vld [vmem:[%s8702_s5 + $0x138] sm:$0xf0] }
 0x1dc   :  { %3303 = vmatpush.bf16.msra.mxu0 %v5111_v48  ;;  %v5315_v48 = vor.u32 %v5838_v46, %v5314_v45  ;;  %v2700_v40 = vpop.f32.mrf.mxu1  ;;  %v5223_v43 = vor.u32 %v5813_v38, %v5220_v39  ;;  %v5828_v45 = vld [vmem:[%s8702_s5 + $0x1a4] sm:$0xf0] }
 0x1dd   :  { %v5275_v50 = vor.u32 %v5828_v45, %v5274_v44 }
 0x1de   :  { %3287 = vmatpush.bf16.msrb.mxu3 %v5315_v48 }
 0x1df   :  { %3320 = vmatpush.bf16.msra.mxu1 %v5151_v4  ;;  %3330 = vmatpush.bf16.msra.mxu2 %v5247_v7 }
 0x1e0   :  { %3304 = vmatpush.bf16.msra.mxu0 %v5103_v59  ;;  %v8457_v59 = vpop.f32.mrf.mxu0 }
 0x1e1   :  { %v2685_v48 = vadd.f32 %v8457_v59, %v1972_v33 }
 0x1e2   :  { %3288 = vmatpush.bf16.msrb.mxu3 %v5307_v60  ;;  %v2712_v12 = vpop.f32.mrf.mxu2 }
 0x1e3   :  { %3321 = vmatpush.bf16.msra.mxu1 %v5143_v19  ;;  %3331 = vmatpush.bf16.msra.mxu2 %v5239_v41  ;;  %v2699_v55 = vadd.f32 %v2698_v9, %v2685_v48  ;;  %v5835_v41 = vld [vmem:[%s8702_s5 + $0x1e4] sm:$0xf] }
 0x1e4   :  { %3305 = vmatpush.bf16.msra.mxu0 %v5095_v6  ;;  %v5298_v6 = vld [vmem:[%s8702_s5 + $0x1d0] sm:$0xf]  ;;  %v2754_v62 = vpop.f32.mrf.mxu1 }
 0x1e5   :  { %v5299_v23 = vor.u32 %v5834_v8, %v5298_v6  ;;  %v2713_v61 = vadd.f32 %v2712_v12, %v2699_v55  ;;  %v5259_v8 = vor.u32 %v5824_v3, %v5258_v1  ;;  %v5837_v12 = vld [vmem:[%s8702_s5 + $0x1f4] sm:$0xf]  ;;  %v5260_v55 = vld [vmem:[%s8702_s5 + $0x188] sm:$0xf0] }
 0x1e7   :  { %3289 = vmatpush.bf16.msrb.mxu3 %v5299_v23  ;;  %3332 = vmatpush.bf16.msra.mxu2 %v5231_v32  ;;  %v5196_v23 = vld [vmem:[%s8702_s5 + $0x108] sm:$0xf0] }
 0x1e8   :  { %3306 = vmatpush.bf16.msra.mxu0 %v5087_v15  ;;  %v2686_v31 = vpop.f32.mrf.mxu0 }
 0x1e9   :  { %v2687_v54 = vadd.f32 %v2686_v31, %v1972_v33  ;;  %v5831_v33 = vld [vmem:[%s8702_s5 + $0x1c4] sm:$0xf] }
 0x1ea   :  { %v2714_v46 = vpop.f32.mrf.mxu2 }
 0x1eb   :  { %3290 = vmatpush.bf16.msrb.mxu3 %v5291_v20  ;;  %3333 = vmatpush.bf16.msra.mxu2 %v5223_v43  ;;  %v2701_v60 = vadd.f32 %v2700_v40, %v2687_v54  ;;  %v5829_v40 = vld [vmem:[%s8702_s5 + $0x1b4] sm:$0xf]  ;;  %v5284_v43 = vld [vmem:[%s8702_s5 + $0x1b8] sm:$0xf0]  ;;  %v5823_v54 = vld [vmem:[%s8702_s5 + $0x184] sm:$0xf] }
 0x1ec   :  { %3307 = vmatpush.bf16.msra.mxu0 %v5079_v24  ;;  %v5132_v24 = vld [vmem:[%s8702_s5 + $0x88] sm:$0xf0]  ;;  %v5287_v0 = vor.u32 %v5829_v40, %v5284_v43  ;;  %v5263_v56 = vor.u32 %v5823_v54, %v5260_v55 }
 0x1ed   :  { %v5135_v28 = vor.u32 %v5791_v21, %v5132_v24  ;;  %v2715_v4 = vadd.f32 %v2714_v46, %v2701_v60  ;;  %v5833_v24 = vld [vmem:[%s8702_s5 + $0x1d4] sm:$0xf]  ;;  %v5827_v46 = vld [vmem:[%s8702_s5 + $0x1a4] sm:$0xf]  ;;  %v1974_v60 = vperm.slane %v8406_v26, 3  ;;  %v5846_v26 = vld [vmem:[%s8704_s7 + $0x38] sm:$0xff] }
 0x1ef   :  { %3322 = vmatpush.bf16.msra.mxu1 %v5135_v28  ;;  %3334 = vmatpush.bf16.msra.mxu2 %v5215_v51  ;;  %v2756_v28 = vpop.f32.mrf.mxu1  ;;  %v5268_v51 = vld [vmem:[%s8702_s5 + $0x198] sm:$0xf0] }
 0x1f0   :  { %3308 = vmatpush.bf16.msra.mxu0 %v5071_v36  ;;  %v5830_v36 = vld [vmem:[%s8702_s5 + $0x1b4] sm:$0xf0]  ;;  %v2740_v59 = vpop.f32.mrf.mxu0 }
 0x1f1   :  { %v5283_v49 = vor.u32 %v5830_v36, %v5282_v35  ;;  %v2741_v17 = vadd.f32 %v2740_v59, %v1973_v13 }
 0x1f3   :  { %3291 = vmatpush.bf16.msrb.mxu3 %v5283_v49  ;;  %3335 = vmatpush.bf16.msra.mxu2 %v5207_v30 }
 0x1f7   :  { %3292 = vmatpush.bf16.msrb.mxu3 %v5275_v50  ;;  %v5825_v50 = vld [vmem:[%s8702_s5 + $0x194] sm:$0xf]  ;;  %v2810_v58 = vpop.f32.mrf.mxu1 }
 0x1f8   :  { %v2768_v9 = vpop.f32.mrf.mxu2 }
 0x1fc   :  { %v2670_v53 = vpop.f32.mrf.mxu3 }
 0x1fd   :  { %v2671_v15 = vadd.f32 %v2670_v53, %v2657_v10  ;;  %v5826_v53 = vld [vmem:[%s8702_s5 + $0x194] sm:$0xf0]  ;;  %v5807_v10 = vld [vmem:[%s8702_s5 + $0x104] sm:$0xf] }
 0x1fe   :  { %v5267_v63 = vor.u32 %v5826_v53, %v5266_v52  ;;  %v5271_v53 = vor.u32 %v5825_v50, %v5268_v51 }
 0x1ff   :  { %v2843_v22 = vmax.f32 %v2671_v15, 0.0  ;;  %v5316_v15 = vld [vmem:[%s8702_s5 + $0x1f8] sm:$0xf0] }
 0x200   :  { %3293 = vmatpush.bf16.msrb.mxu3 %v5267_v63  ;;  %v5319_v19 = vor.u32 %v5837_v12, %v5316_v15  ;;  %v2770_v29 = vpop.f32.mrf.mxu2  ;;  %v5842_v15 = vld [vmem:[%s8704_s7 + $0x18] sm:$0xff] }
 0x204   :  { %v2672_v2 = vpop.f32.mrf.mxu3  ;;  %3294 = vmatpush.bf16.msrb.mxu3 %v5259_v8 }
 0x205   :  { %v2673_v16 = vadd.f32 %v2672_v2, %v2659_v42  ;;  %v5199_v42 = vor.u32 %v5807_v10, %v5196_v23  ;;  %v2742_v2 = vpop.f32.mrf.mxu0 }
 0x206   :  { %v2743_v21 = vadd.f32 %v2742_v2, %v1973_v13  ;;  %v5853_v2 = vld [vmem:[%s8704_s7 + $0x70] sm:$0xff] }
 0x207   :  { %v2847_v27 = vmax.f32 %v2673_v16, 0.0  ;;  %3336 = vmatpush.bf16.msra.mxu2 %v5199_v42  ;;  %v5308_v16 = vld [vmem:[%s8702_s5 + $0x1e8] sm:$0xf0]  ;;  %v5843_v42 = vld [vmem:[%s8704_s7 + $0x20] sm:$0xff] }
 0x208   :  { %3343 = vmatpush.bf16.msra.mxu3 %v5319_v19  ;;  %v5311_v18 = vor.u32 %v5835_v41, %v5308_v16  ;;  %v2757_v31 = vadd.f32 %v2756_v28, %v2743_v21  ;;  %v5854_v19 = vld [vmem:[%s8704_s7 + $0x78] sm:$0xff]  ;;  %v5840_v41 = vld [vmem:[%s8704_s7 + $0x8] sm:$0xff]  ;;  %v2919_v28 = vld [vmem:[%s8703_s6] sm:$0x3] }
 0x209   :  { %v8510_v34 = vpack.c.bf16 %v2847_v27, %v2843_v22  ;;  %v2755_v22 = vadd.f32 %v2754_v62, %v2741_v17  ;;  %v5303_v27 = vor.u32 %v5833_v24, %v5300_v25  ;;  %v5852_v16 = vld [vmem:[%s8704_s7 + $0x68] sm:$0xff]  ;;  %v5839_v17 = vld [vmem:[%s8704_s7] sm:$0xff]  ;;  %v5849_v24 = vld [vmem:[%s8704_s7 + $0x50] sm:$0xff]  ;;  %v2922_v51 = vperm.slane %v2919_v28, 1 }
 0x20a   :  { %v2771_v35 = vadd.f32 %v2770_v29, %v2757_v31  ;;  %v5847_v29 = vld [vmem:[%s8704_s7 + $0x40] sm:$0xff] }
 0x20b   :  { %3253 = vmatmul.bf16.vlgmr.msrb.gmra.mxu0 %v8510_v34  ;;  %v2769_v32 = vadd.f32 %v2768_v9, %v2755_v22 }
 0x20c   :  { %v2726_v57 = vpop.f32.mrf.mxu3  ;;  %3344 = vmatpush.bf16.msra.mxu3 %v5311_v18  ;;  %3495 = vmatpush.bf16.msrb.mxu0 %v5846_v26  ;;  %v5851_v18 = vld [vmem:[%s8704_s7 + $0x60] sm:$0xff] }
 0x20d   :  { %v2727_v5 = vadd.f32 %v2726_v57, %v2713_v61  ;;  %v5276_v57 = vld [vmem:[%s8702_s5 + $0x1a8] sm:$0xf0]  ;;  %v2796_v52 = vpop.f32.mrf.mxu0  ;;  %v5855_v26 = vld [vmem:[%s8706_s9] sm:$0xff] }
 0x20e   :  { %v5279_v48 = vor.u32 %v5827_v46, %v5276_v57  ;;  %v2797_v63 = vadd.f32 %v2796_v52, %v1974_v60 }
 0x20f   :  { %v2844_v14 = vmax.f32 %v2727_v5, 0.0 }
 0x210   :  { %3345 = vmatpush.bf16.msra.mxu3 %v5303_v27  ;;  %v2811_v3 = vadd.f32 %v2810_v58, %v2797_v63  ;;  %v5848_v27 = vld [vmem:[%s8704_s7 + $0x48] sm:$0xff] }
 0x214   :  { %v2728_v6 = vpop.f32.mrf.mxu3 }
 0x215   :  { %v2729_v7 = vadd.f32 %v2728_v6, %v2715_v4  ;;  %v2798_v61 = vpop.f32.mrf.mxu0  ;;  %v2812_v4 = vpop.f32.mrf.mxu1 }
 0x216   :  { %v2799_v1 = vadd.f32 %v2798_v61, %v1974_v60 }
 0x217   :  { %v2848_v37 = vmax.f32 %v2729_v7, 0.0 }
 0x218   :  { %v2824_v59 = vpop.f32.mrf.mxu2  ;;  %v2813_v6 = vadd.f32 %v2812_v4, %v2799_v1 }
 0x219   :  { %v2852_v11 = vpack.c.bf16 %v2848_v37, %v2844_v14  ;;  %v2825_v7 = vadd.f32 %v2824_v59, %v2811_v3  ;;  %v5845_v14 = vld [vmem:[%s8704_s7 + $0x30] sm:$0xff]  ;;  %v5844_v37 = vld [vmem:[%s8704_s7 + $0x28] sm:$0xff] }
 0x21a   :  { %3496 = vmatpush.bf16.msrb.mxu0 %v5845_v14 }
 0x21b   :  { %3267 = vmatmul.bf16.vlgmr.msrb.gmra.mxu1 %v2852_v11  ;;  %3309 = vmatmul.bf16.vlgmr.msra.gmra.mxu0 %v8510_v34  ;;  %v5292_v34 = vld [vmem:[%s8702_s5 + $0x1c8] sm:$0xf0] }
 0x21c   :  { %v2782_v20 = vpop.f32.mrf.mxu3  ;;  %v5295_v49 = vor.u32 %v5831_v33, %v5292_v34  ;;  %3509 = vmatpush.bf16.msrb.mxu1 %v5854_v19 }
 0x21d   :  { %v2783_v36 = vadd.f32 %v2782_v20, %v2769_v32  ;;  %v5850_v20 = vld [vmem:[%s8704_s7 + $0x58] sm:$0xff]  ;;  %v2921_v32 = vperm.slane %v2919_v28, 0 }
 0x21e   :  { %3346 = vmatpush.bf16.msra.mxu3 %v5295_v49  ;;  %3497 = vmatpush.bf16.msrb.mxu0 %v5844_v37 }
 0x21f   :  { %v2845_v44 = vmax.f32 %v2783_v36, 0.0 }
 0x220   :  { %v2826_v5 = vpop.f32.mrf.mxu2  ;;  %3510 = vmatpush.bf16.msrb.mxu1 %v5853_v2 }
 0x221   :  { %v2827_v8 = vadd.f32 %v2826_v5, %v2813_v6 }
 0x222   :  { %3347 = vmatpush.bf16.msra.mxu3 %v5287_v0  ;;  %3498 = vmatpush.bf16.msrb.mxu0 %v5843_v42  ;;  %v5866_v42 = vld [vmem:[%s8705_s8] ss:$0 sm:$0xff] }
 0x224   :  { %v2784_v38 = vpop.f32.mrf.mxu3  ;;  %3511 = vmatpush.bf16.msrb.mxu1 %v5852_v16 }
 0x225   :  { %v2785_v39 = vadd.f32 %v2784_v38, %v2771_v35 }
 0x226   :  { %3348 = vmatpush.bf16.msra.mxu3 %v5279_v48  ;;  %3499 = vmatpush.bf16.msrb.mxu0 %v5842_v15 }
 0x227   :  { %v2849_v45 = vmax.f32 %v2785_v39, 0.0 }
 0x228   :  { %3512 = vmatpush.bf16.msrb.mxu1 %v5851_v18 }
 0x229   :  { %v2853_v47 = vpack.c.bf16 %v2849_v45, %v2845_v44 }
 0x22a   :  { %3349 = vmatpush.bf16.msra.mxu3 %v5271_v53 }
 0x22b   :  { %3281 = vmatmul.bf16.vlgmr.msrb.gmra.mxu2 %v2853_v47  ;;  %3323 = vmatmul.bf16.vlgmr.msra.gmra.mxu1 %v2852_v11  ;;  %v5841_v11 = vld [vmem:[%s8704_s7 + $0x10] sm:$0xff] }
 0x22c   :  { %3500 = vmatpush.bf16.msrb.mxu0 %v5841_v11  ;;  %3513 = vmatpush.bf16.msrb.mxu1 %v5850_v20 }
 0x22e   :  { %3350 = vmatpush.bf16.msra.mxu3 %v5263_v56 }
 0x230   :  { %3501 = vmatpush.bf16.msrb.mxu0 %v5840_v41  ;;  %3514 = vmatpush.bf16.msrb.mxu1 %v5849_v24 }
 0x234   :  { %3502 = vmatpush.bf16.msrb.mxu0 %v5839_v17  ;;  %3515 = vmatpush.bf16.msrb.mxu1 %v5848_v27 }
 0x238   :  { %3516 = vmatpush.bf16.msrb.mxu1 %v5847_v29 }
 0x23b   :  { %3337 = vmatmul.bf16.vlgmr.msra.gmra.mxu2 %v2853_v47 }
 0x23c   :  { %v2838_v30 = vpop.f32.mrf.mxu3 }
 0x23d   :  { %v2839_v62 = vadd.f32 %v2838_v30, %v2825_v7 }
 0x23f   :  { %v2846_v23 = vmax.f32 %v2839_v62, 0.0  ;;  %v5861_v62 = vld [vmem:[%s8706_s9 + $0x30] sm:$0xff] }
 0x244   :  { %v2840_v9 = vpop.f32.mrf.mxu3 }
 0x245   :  { %v2841_v10 = vadd.f32 %v2840_v9, %v2827_v8  ;;  %v5862_v8 = vld [vmem:[%s8706_s9 + $0x38] sm:$0xff]  ;;  %v5860_v9 = vld [vmem:[%s8706_s9 + $0x28] sm:$0xff] }
 0x246   :  { %3594 = vmatpush.bf16.msrb.mxu2 %v5862_v8 }
 0x247   :  { %v2850_v12 = vmax.f32 %v2841_v10, 0.0  ;;  %v5859_v10 = vld [vmem:[%s8706_s9 + $0x20] sm:$0xff] }
 0x249   :  { %v2854_v13 = vpack.c.bf16 %v2850_v12, %v2846_v23  ;;  %v5858_v23 = vld [vmem:[%s8706_s9 + $0x18] sm:$0xff]  ;;  %v5857_v12 = vld [vmem:[%s8706_s9 + $0x10] sm:$0xff] }
 0x24a   :  { %3595 = vmatpush.bf16.msrb.mxu2 %v5861_v62 }
 0x24b   :  { %3295 = vmatmul.bf16.vlgmr.msrb.gmra.mxu3 %v2854_v13 }
 0x24e   :  { %3596 = vmatpush.bf16.msrb.mxu2 %v5860_v9 }
 0x252   :  { %3597 = vmatpush.bf16.msrb.mxu2 %v5859_v10 }
 0x256   :  { %3598 = vmatpush.bf16.msrb.mxu2 %v5858_v23 }
 0x25a   :  { %3599 = vmatpush.bf16.msrb.mxu2 %v5857_v12 }
 0x25b   :  { %3351 = vmatmul.bf16.vlgmr.msra.gmra.mxu3 %v2854_v13  ;;  %v5856_v13 = vld [vmem:[%s8706_s9 + $0x8] sm:$0xff]  ;;  %s5895_s9 = smov [#allocation2]  }
 0x25c   :  { %s3614_s22 = sshll.u32 %s5895_s9, 4  ;;  %s3615_s22 = int_to_ptr.vmem [resolvable:$true] %s3614_s22 }
 0x25e   :  { %3600 = vmatpush.bf16.msrb.mxu2 %v5856_v13 }
 0x262   :  { %3601 = vmatpush.bf16.msrb.mxu2 %v5855_v26 }
 0x288   :  { %v3254_v21 = vpop.f32.mrf.mxu0 }
 0x289   :  { %v3255_v36 = vadd.f32 %v3254_v21, %v2921_v32  ;;  %v5867_v21 = vld [vmem:[%s8707_s10] ss:$0 sm:$0xff] }
 0x290   :  { %v3256_v31 = vpop.f32.mrf.mxu0 }
 0x291   :  { %v3257_v49 = vadd.f32 %v3256_v31, %v2921_v32 }
 0x298   :  { %v3268_v25 = vpop.f32.mrf.mxu1  ;;  %v3310_v43 = vpop.f32.mrf.mxu0 }
 0x299   :  { %v3269_v38 = vadd.f32 %v3268_v25, %v3255_v36  ;;  %v3311_v55 = vadd.f32 %v3310_v43, %v2922_v51 }
 0x2a0   :  { %v3270_v33 = vpop.f32.mrf.mxu1  ;;  %v3312_v53 = vpop.f32.mrf.mxu0 }
 0x2a1   :  { %v3271_v39 = vadd.f32 %v3270_v33, %v3257_v49  ;;  %v3313_v58 = vadd.f32 %v3312_v53, %v2922_v51 }
 0x2a8   :  { %v3324_v0 = vpop.f32.mrf.mxu1 }
 0x2a9   :  { %v3325_v59 = vadd.f32 %v3324_v0, %v3311_v55 }
 0x2ae   :  { %v3282_v22 = vpop.f32.mrf.mxu2 }
 0x2af   :  { %v3283_v40 = vadd.f32 %v3282_v22, %v3269_v38 }
 0x2b0   :  { %v3326_v56 = vpop.f32.mrf.mxu1 }
 0x2b1   :  { %v3327_v61 = vadd.f32 %v3326_v56, %v3313_v58 }
 0x2b6   :  { %v3284_v34 = vpop.f32.mrf.mxu2 }
 0x2b7   :  { %v3285_v44 = vadd.f32 %v3284_v34, %v3271_v39 }
 0x2be   :  { %v3338_v47 = vpop.f32.mrf.mxu2 }
 0x2bf   :  { %v3339_v63 = vadd.f32 %v3338_v47, %v3325_v59 }
 0x2c6   :  { %v3340_v60 = vpop.f32.mrf.mxu2 }
 0x2c7   :  { %v3341_v30 = vadd.f32 %v3340_v60, %v3327_v61 }
 0x2ce   :  { %v3296_v35 = vpop.f32.mrf.mxu3 }
 0x2cf   :  { %v3297_v45 = vadd.f32 %v3296_v35, %v3283_v40 }
 0x2d1   :  { %v3357_v48 = vmax.f32 %v3297_v45, 0.0 }
 0x2d6   :  { %v3298_v46 = vpop.f32.mrf.mxu3 }
 0x2d7   :  { %v3299_v57 = vadd.f32 %v3298_v46, %v3285_v44 }
 0x2d9   :  { %v3359_v50 = vmax.f32 %v3299_v57, 0.0 }
 0x2db   :  { %v3361_v52 = vpack.c.bf16 %v3359_v50, %v3357_v48 }
 0x2dd   :  { %3503 = vmatmul.bf16.vlgmr.msrb.gmra.mxu0 %v3361_v52 }
 0x2de   :  { %v3352_v54 = vpop.f32.mrf.mxu3 }
 0x2df   :  { %v3353_v1 = vadd.f32 %v3352_v54, %v3339_v63 }
 0x2e1   :  { %v3358_v5 = vmax.f32 %v3353_v1, 0.0 }
 0x2e6   :  { %v3354_v3 = vpop.f32.mrf.mxu3 }
 0x2e7   :  { %v3355_v4 = vadd.f32 %v3354_v3, %v3341_v30 }
 0x2e9   :  { %v3360_v6 = vmax.f32 %v3355_v4, 0.0 }
 0x2eb   :  { %v3362_v7 = vpack.c.bf16 %v3360_v6, %v3358_v5 }
 0x2ed   :  { %3517 = vmatmul.bf16.vlgmr.msrb.gmra.mxu1 %v3362_v7 }
 0x35a   :  { %v3504_v14 = vpop.f32.mrf.mxu0 }
 0x35b   :  { %v3505_v19 = vadd.f32 %v5866_v42, %v3504_v14 }
 0x362   :  { %v3506_v15 = vpop.f32.mrf.mxu0 }
 0x363   :  { %v3507_v11 = vadd.f32 %v5866_v42, %v3506_v15 }
 0x36a   :  { %v3518_v37 = vpop.f32.mrf.mxu1 }
 0x36b   :  { %v3519_v2 = vadd.f32 %v3518_v37, %v3505_v19 }
 0x36d   :  { %v3523_v17 = vmax.f32 %v3519_v2, 0.0 }
 0x372   :  { %v3520_v41 = vpop.f32.mrf.mxu1 }
 0x373   :  { %v3521_v16 = vadd.f32 %v3520_v41, %v3507_v11 }
 0x375   :  { %v3524_v18 = vmax.f32 %v3521_v16, 0.0 }
 0x377   :  { %v3525_v20 = vpack.c.bf16 %v3524_v18, %v3523_v17 }
 0x379   :  { %3602 = vmatmul.bf16.vlgmr.msrb.gmra.mxu2 %v3525_v20 }
 0x3fc   :  { %v3603_v24 = vpop.f32.mrf.mxu2 }
 0x3fd   :  { %v3604_v25 = vadd.f32 %v5867_v21, %v3603_v24 }
 0x3ff   :  { %3608 = vst [vmem:[#allocation2] sm:$0xff] %v3604_v25 }
 0x404   :  { %v3605_v22 = vpop.f32.mrf.mxu2 }
 0x405   :  { %v3606_v27 = vadd.f32 %v5867_v21, %v3605_v22 }
 0x407   :  { %3609 = vst [vmem:[#allocation2 + $0x8] sm:$0xff] %v3606_v27 }
 0x408   :  { %3622 = dma.vmem_to_hbm [thread:$0]  %s3615_s22, 256, %s3617_s24, [#allocation3], %s5896_s25, %s5896_s25, %s5897_s1  }
 0x409   :  { %5893 = dma.done.wait [#allocation3], 256  }
 0x40a   :  { %5894 = vsyncadd [#allocation3], 4294967040 }
 0x40b   :  { %3627 = vsyncpa [#allocation3], 1 }

</bundles_post_ra>
